<compile_context>
chip_gen: v5e
topology: v5e:2x2
jax: 0.10.0
libtpu: 0.0.40
codegen_flags: <defaults>
</compile_context>

<pallas_src>
import functools

import jax
import jax.numpy as jnp
from jax.experimental import pallas as pl
from jax.experimental.pallas import tpu as pltpu


def _attention_kernel(enc_ref, att2_ref, we_ref, wf_ref, awe_ref, alpha_ref,
                      *, tb, n):
    """One grid step processes a tile of `tb` batch elements.

    enc_ref   : (tb*n, E)  flattened (batch, region) encoder rows (f32 or bf16)
    att2_ref  : (tb, A)    decoder projection + both Linear biases (f32)
    we_ref    : (E, A)     encoder_att weight (same dtype as enc_ref)
    wf_ref    : (1, A)     full_att weight as a lane-dense row (f32)
    awe_ref   : (tb, E)    attention-weighted encoding (f32)
    alpha_ref : (tb, n)    attention weights, lane-dense (f32)
    """
    a = att2_ref.shape[-1]

    # --- encoder projection: one wide MXU matmul for the whole batch tile ----
    att1 = jnp.dot(enc_ref[...], we_ref[...],
                   preferred_element_type=jnp.float32)            # (tb*n, A)

    # --- scores: single slab VPU pass + ONE lane reduction -------------------
    # ReLU(att1 + att2) * wf summed over A (lanes).  The full_att bias is
    # dropped: softmax is shift-invariant, so it cannot affect alpha or awe.
    h = jnp.maximum(att1.reshape(tb, n, a) + att2_ref[...][:, None, :], 0.0)
    scores = jnp.sum(h * wf_ref[...], axis=-1)                    # (tb, n) f32

    # --- softmax over regions (lane-dense) ------------------------------------
    m = jnp.max(scores, axis=-1, keepdims=True)
    e = jnp.exp(scores - m)
    inv = pl.reciprocal(jnp.sum(e, axis=-1, keepdims=True), approx=False)
    alpha = e * inv                                                # (tb, n) f32
    alpha_ref[...] = alpha.astype(alpha_ref.dtype)

    # --- weighted encoding: ONE block-diagonal MXU matmul ---------------------
    # alpha_bd[i, i*n + r] = alpha[i, r], zero elsewhere, so
    # awe = alpha_bd @ enc computes every sub-batch weighted sum in one dot.
    col = jax.lax.broadcasted_iota(jnp.int32, (tb, tb * n), 1)
    lo = jax.lax.broadcasted_iota(jnp.int32, (tb, tb * n), 0) * n
    mask = (col >= lo) & (col < lo + n)
    alpha_bd = jnp.where(mask, jnp.tile(alpha, (1, tb)), 0.0)
    awe = jnp.dot(alpha_bd.astype(enc_ref.dtype), enc_ref[...],
                  preferred_element_type=jnp.float32)              # (tb, E)
    awe_ref[...] = awe.astype(awe_ref.dtype)


def _pick_batch_tile(B, batch_tile):
    """Largest multiple-of-8 divisor of B that is <= batch_tile.

    Keeps the grid at >= 2 steps when B >= 16 so both v7x TensorCores (and
    v5e/v6e megacore scheduling) get work.  Falls back to the full batch when
    no multiple-of-8 divisor exists (full-array blocks side-step the (8,128)
    tiling constraint)."""
    cap = min(batch_tile, B)
    cands = [t for t in range(8, cap + 1, 8) if B % t == 0]
    if not cands:
        return B
    tb = max(cands)
    if B >= 16 and tb == B:
        smaller = [t for t in cands if t < B]
        if smaller:
            tb = max(smaller)
    return tb


def attention_forward(encoder_out, decoder_hidden, params, *, batch_tile=32,
                      compute_dtype=None):
    """params: we (E,A), be (A,), wd (D,A), bd (A,), wf (A,1), bf (1,).

    Weights stored (in, out) so y = x @ W + b matches PyTorch's x @ W_pt.T + b.
    `compute_dtype=jnp.bfloat16` ships enc / we to the kernel in bf16 (half the
    dominant HBM stream, full-rate MXU); outputs are always f32.
    """
    B, N, E = encoder_out.shape
    A = params["we"].shape[1]

    # Hoisted decoder projection: one (B,D)@(D,A) XLA matmul for the whole
    # batch instead of per-tile matvecs inside the kernel; fold both biases in.
    # The full_att bias is intentionally NOT passed (softmax shift-invariance).
    att2 = (decoder_hidden @ params["wd"]
            + params["bd"][None, :] + params["be"][None, :])      # (B, A) f32

    we = params["we"]
    wf_row = params["wf"].reshape(1, A)

    # Pad A to a lane-dense multiple of 128.  Zero-padded columns give
    # ReLU(0 + 0) * 0 == 0, so scores are unchanged.
    A_pad = ((A + 127) // 128) * 128
    if A_pad != A:
        pad = A_pad - A
        we = jnp.pad(we, ((0, 0), (0, pad)))
        wf_row = jnp.pad(wf_row, ((0, 0), (0, pad)))
        att2 = jnp.pad(att2, ((0, 0), (0, pad)))

    tb = _pick_batch_tile(B, batch_tile)
    grid = (B // tb,)

    enc2d = encoder_out.reshape(B * N, E)   # free row-major collapse in XLA
    if compute_dtype is not None and enc2d.dtype != compute_dtype:
        # MXU operands only; VPU elementwise / softmax stay f32 in the kernel.
        enc2d = enc2d.astype(compute_dtype)
        we = we.astype(compute_dtype)

    kernel = functools.partial(_attention_kernel, tb=tb, n=N)

    grid_spec = pltpu.PrefetchScalarGridSpec(
        num_scalar_prefetch=0,
        grid=grid,
        in_specs=[
            pl.BlockSpec((tb * N, E), lambda b: (b, 0)),   # encoder rows of tile
            pl.BlockSpec((tb, A_pad), lambda b: (b, 0)),   # precomputed att2
            pl.BlockSpec((E, A_pad),  lambda b: (0, 0)),   # encoder_att weight
            pl.BlockSpec((1, A_pad),  lambda b: (0, 0)),   # full_att weight row
        ],
        out_specs=[
            pl.BlockSpec((tb, E), lambda b: (b, 0)),       # weighted encoding
            pl.BlockSpec((tb, N), lambda b: (b, 0)),       # alpha (lane-dense)
        ],
    )

    awe, alpha = pl.pallas_call(
        kernel,
        grid_spec=grid_spec,
        out_shape=(
            jax.ShapeDtypeStruct((B, E), jnp.float32),
            jax.ShapeDtypeStruct((B, N), jnp.float32),
        ),
        compiler_params=pltpu.CompilerParams(
            dimension_semantics=("parallel",)),
    )(enc2d, att2, we, wf_row)
    return awe, alpha


def attention_reference(encoder_out, decoder_hidden, params):
    att1 = encoder_out @ params["we"] + params["be"]                  # (B, N, A)
    att2 = decoder_hidden @ params["wd"] + params["bd"]               # (B, A)
    h = jnp.maximum(att1 + att2[:, None, :], 0.0)
    att = (h @ params["wf"])[..., 0] + params["bf"][0]                # (B, N)
    alpha = jax.nn.softmax(att, axis=1)
    awe = jnp.sum(encoder_out * alpha[..., None], axis=1)
    return awe, alpha


if __name__ == "__main__":
    # Small shapes consistent with the module's forward signature.
    # B chosen so the batch-tiled grid has 2 steps (exercises the tiled path).
    B, N, E, D, A = 16, 64, 128, 96, 64

    key = jax.random.PRNGKey(0)
    k = jax.random.split(key, 8)
    encoder_out    = jax.random.normal(k[0], (B, N, E), dtype=jnp.float32)
    decoder_hidden = jax.random.normal(k[1], (B, D), dtype=jnp.float32)

    params = {
        "we": 0.1 * jax.random.normal(k[2], (E, A), dtype=jnp.float32),
        "be": 0.1 * jax.random.normal(k[3], (A,),   dtype=jnp.float32),
        "wd": 0.1 * jax.random.normal(k[4], (D, A), dtype=jnp.float32),
        "bd": 0.1 * jax.random.normal(k[5], (A,),   dtype=jnp.float32),
        "wf": 0.1 * jax.random.normal(k[6], (A, 1), dtype=jnp.float32),
        "bf": 0.1 * jax.random.normal(k[7], (1,),   dtype=jnp.float32),
    }

    awe_ref, alpha_ref = attention_reference(encoder_out, decoder_hidden, params)

    # f32 path — exact-to-tolerance against the XLA reference.
    awe, alpha = attention_forward(encoder_out, decoder_hidden, params)
    jax.block_until_ready((awe, alpha))
    assert awe.shape == (B, E) and alpha.shape == (B, N)
    assert jnp.allclose(awe, awe_ref, atol=1e-5, rtol=1e-5)
    assert jnp.allclose(alpha, alpha_ref, atol=1e-5, rtol=1e-5)

    # bf16 MXU-operand path — halves the dominant enc HBM stream; looser check.
    awe16, alpha16 = attention_forward(encoder_out, decoder_hidden, params,
                                       compute_dtype=jnp.bfloat16)
    jax.block_until_ready((awe16, alpha16))
    assert jnp.allclose(awe16, awe_ref, atol=5e-2, rtol=5e-2)
    assert jnp.allclose(alpha16, alpha_ref, atol=5e-2, rtol=5e-2)

    print("KERNEL_OK")
</pallas_src>

<mosaic_0001>
module attributes {stable_mosaic.version = 11 : i64} {
  func.func @_attention_kernel(%arg0: i32, %arg1: memref<512x128xf32, #tpu.memory_space<vmem>>, %arg2: memref<8x128xf32, #tpu.memory_space<vmem>>, %arg3: memref<128x128xf32, #tpu.memory_space<vmem>>, %arg4: memref<1x128xf32, #tpu.memory_space<vmem>>, %arg5: memref<8x128xf32, #tpu.memory_space<vmem>>, %arg6: memref<8x64xf32, #tpu.memory_space<vmem>>) attributes {dimension_semantics = [#tpu.dimension_semantics<parallel>], iteration_bounds = array<i64: 2>, scalar_prefetch = 0 : i64, scratch_operands = 0 : i64, tpu.core_type = #tpu.core_type<tc>, window_params = [{transform_indices = @transform_0, window_bounds = array<i64: 512, 128>}, {transform_indices = @transform_1, window_bounds = array<i64: 8, 128>}, {pipeline_mode = #tpu.pipeline_mode<synchronous>, transform_indices = @transform_2, window_bounds = array<i64: 128, 128>}, {pipeline_mode = #tpu.pipeline_mode<synchronous>, transform_indices = @transform_3, window_bounds = array<i64: 1, 128>}, {transform_indices = @transform_4, window_bounds = array<i64: 8, 128>}, {transform_indices = @transform_5, window_bounds = array<i64: 8, 64>}]} {
    %c0 = arith.constant 0 : index
    %c0_0 = arith.constant 0 : index
    %0 = vector.load %arg1[%c0, %c0_0] : memref<512x128xf32, #tpu.memory_space<vmem>>, vector<512x128xf32>
    %c0_1 = arith.constant 0 : index
    %c0_2 = arith.constant 0 : index
    %1 = vector.load %arg3[%c0_1, %c0_2] : memref<128x128xf32, #tpu.memory_space<vmem>>, vector<128x128xf32>
    %cst = arith.constant dense<0.000000e+00> : vector<512x128xf32>
    %2 = tpu.matmul %0, %1, %cst {dimension_numbers = #tpu.dot_dimension_numbers<[1], [0], [0], [1], [0, 0, 1, 1], [], []>} : vector<512x128xf32>, vector<128x128xf32>, vector<512x128xf32> -> vector<512x128xf32>
    %3 = vector.shape_cast %2 : vector<512x128xf32> to vector<8x64x128xf32>
    %c0_3 = arith.constant 0 : index
    %c0_4 = arith.constant 0 : index
    %4 = vector.load %arg2[%c0_3, %c0_4] : memref<8x128xf32, #tpu.memory_space<vmem>>, vector<8x128xf32>
    %5 = vector.shape_cast %4 : vector<8x128xf32> to vector<8x1x128xf32>
    %6 = vector.broadcast %5 : vector<8x1x128xf32> to vector<8x64x128xf32>
    %7 = arith.addf %3, %6 : vector<8x64x128xf32>
    %cst_5 = arith.constant 0.000000e+00 : f32
    %8 = vector.broadcast %cst_5 : f32 to vector<8x64x128xf32>
    %9 = arith.maximumf %7, %8 : vector<8x64x128xf32>
    %c0_6 = arith.constant 0 : index
    %c0_7 = arith.constant 0 : index
    %10 = vector.load %arg4[%c0_6, %c0_7] : memref<1x128xf32, #tpu.memory_space<vmem>>, vector<1x128xf32>
    %11 = vector.shape_cast %10 : vector<1x128xf32> to vector<1x1x128xf32>
    %12 = vector.broadcast %11 : vector<1x1x128xf32> to vector<8x64x128xf32>
    %13 = arith.mulf %9, %12 : vector<8x64x128xf32>
    %cst_8 = arith.constant dense<0.000000e+00> : vector<8x64xf32>
    %14 = vector.multi_reduction <add>, %13, %cst_8 [2] : vector<8x64x128xf32> to vector<8x64xf32>
    %cst_9 = arith.constant dense<0xFF800000> : vector<8xf32>
    %15 = vector.multi_reduction <maximumf>, %14, %cst_9 [1] : vector<8x64xf32> to vector<8xf32>
    %16 = vector.shape_cast %15 : vector<8xf32> to vector<8x1xf32>
    %17 = vector.broadcast %16 : vector<8x1xf32> to vector<8x64xf32>
    %18 = arith.subf %14, %17 : vector<8x64xf32>
    %19 = math.exp %18 : vector<8x64xf32>
    %cst_10 = arith.constant dense<0.000000e+00> : vector<8xf32>
    %20 = vector.multi_reduction <add>, %19, %cst_10 [1] : vector<8x64xf32> to vector<8xf32>
    %21 = vector.shape_cast %20 : vector<8xf32> to vector<8x1xf32>
    %22 = tpu.reciprocal %21 : vector<8x1xf32> -> vector<8x1xf32>
    %23 = vector.broadcast %22 : vector<8x1xf32> to vector<8x64xf32>
    %24 = arith.mulf %19, %23 : vector<8x64xf32>
    %c0_11 = arith.constant 0 : index
    %c0_12 = arith.constant 0 : index
    %25 = vector.load %arg6[%c0_11, %c0_12] : memref<8x64xf32, #tpu.memory_space<vmem>>, vector<8x64xf32>
    tpu.vector_store %arg6[%c0_11, %c0_12], %24 {strides = array<i32>} : memref<8x64xf32, #tpu.memory_space<vmem>>, vector<8x64xf32>,
    %26 = tpu.iota {dimensions = array<i32: 1>} : vector<8x512xi32>
    %27 = tpu.iota {dimensions = array<i32: 0>} : vector<8x512xi32>
    %c64_i32 = arith.constant 64 : i32
    %28 = vector.broadcast %c64_i32 : i32 to vector<8x512xi32>
    %29 = arith.muli %27, %28 : vector<8x512xi32>
    %30 = arith.cmpi sge, %26, %29 : vector<8x512xi32>
    %c64_i32_13 = arith.constant 64 : i32
    %31 = vector.broadcast %c64_i32_13 : i32 to vector<8x512xi32>
    %32 = arith.addi %29, %31 : vector<8x512xi32>
    %33 = arith.cmpi slt, %26, %32 : vector<8x512xi32>
    %34 = arith.andi %30, %33 : vector<8x512xi1>
    %35 = tpu.concatenate %24, %24, %24, %24, %24, %24, %24, %24 in 1 : vector<8x64xf32>, vector<8x64xf32>, vector<8x64xf32>, vector<8x64xf32>, vector<8x64xf32>, vector<8x64xf32>, vector<8x64xf32>, vector<8x64xf32> -> vector<8x512xf32>
    %cst_14 = arith.constant 0.000000e+00 : f32
    %36 = vector.broadcast %cst_14 : f32 to vector<8x512xf32>
    %37 = arith.select %34, %35, %36 : vector<8x512xi1>, vector<8x512xf32>
    %c0_15 = arith.constant 0 : index
    %c0_16 = arith.constant 0 : index
    %38 = vector.load %arg1[%c0_15, %c0_16] : memref<512x128xf32, #tpu.memory_space<vmem>>, vector<512x128xf32>
    %cst_17 = arith.constant dense<0.000000e+00> : vector<8x128xf32>
    %39 = tpu.matmul %37, %38, %cst_17 {dimension_numbers = #tpu.dot_dimension_numbers<[1], [0], [0], [1], [0, 0, 1, 1], [], []>} : vector<8x512xf32>, vector<512x128xf32>, vector<8x128xf32> -> vector<8x128xf32>
    %c0_18 = arith.constant 0 : index
    %c0_19 = arith.constant 0 : index
    %40 = vector.load %arg5[%c0_18, %c0_19] : memref<8x128xf32, #tpu.memory_space<vmem>>, vector<8x128xf32>
    tpu.vector_store %arg5[%c0_18, %c0_19], %39 {strides = array<i32>} : memref<8x128xf32, #tpu.memory_space<vmem>>, vector<8x128xf32>,
    return
  }
  func.func @transform_0(%arg0: i32) -> (i32, i32) {
    %c0_i32 = arith.constant 0 : i32
    %c0_i32_0 = arith.constant 0 : i32
    return %arg0, %c0_i32 : i32, i32
  }
  func.func @transform_1(%arg0: i32) -> (i32, i32) {
    %c0_i32 = arith.constant 0 : i32
    %c0_i32_0 = arith.constant 0 : i32
    return %arg0, %c0_i32 : i32, i32
  }
  func.func @transform_2(%arg0: i32) -> (i32, i32) {
    %c0_i32 = arith.constant 0 : i32
    %c0_i32_0 = arith.constant 0 : i32
    %c0_i32_1 = arith.constant 0 : i32
    return %c0_i32, %c0_i32_0 : i32, i32
  }
  func.func @transform_3(%arg0: i32) -> (i32, i32) {
    %c0_i32 = arith.constant 0 : i32
    %c0_i32_0 = arith.constant 0 : i32
    %c0_i32_1 = arith.constant 0 : i32
    return %c0_i32, %c0_i32_0 : i32, i32
  }
  func.func @transform_4(%arg0: i32) -> (i32, i32) {
    %c0_i32 = arith.constant 0 : i32
    %c0_i32_0 = arith.constant 0 : i32
    return %arg0, %c0_i32 : i32, i32
  }
  func.func @transform_5(%arg0: i32) -> (i32, i32) {
    %c0_i32 = arith.constant 0 : i32
    %c0_i32_0 = arith.constant 0 : i32
    return %arg0, %c0_i32 : i32, i32
  }
}

</mosaic_0001>

<bundles_post_ra>
// kernel: tpu_custom_call.1
= control target key start
LH: loop header
LB: loop body
LE: loop exit
PB: predicated region body
PF: predicated region fallthrough
CT: control target
= control target key end

     0   :  { %s5166_s0 = inlined_call_operand.hbm [shape: f32[1024,128], index: 0, kind: input, shape index: {}]   ;;  %s5167_s1 = inlined_call_operand.hbm [shape: f32[16,128], index: 1, kind: input, shape index: {}]   ;;  %s5168_s2 = inlined_call_operand.hbm [shape: f32[128,128], index: 2, kind: input, shape index: {}]   ;;  %s5169_s3 = inlined_call_operand.vmem [shape: f32[1,128], index: 3, kind: input, shape index: {}]   ;;  %s5170_s4 = inlined_call_operand.hbm [shape: f32[16,128], index: 4, kind: output, shape index: {0}]   ;;  %s5171_s5 = inlined_call_operand.hbm [shape: f32[16,64], index: 5, kind: output, shape index: {1}]  }
   0x1   :  { %5265 = sst [smem:[#allocation57_spill]] %s5168_s2 }
   0x2   :  { %11 = vsyncpa [#allocation3], 0 }
   0x3   :  { %13 = vsyncpa [#allocation3 + $0x1], 0 }
   0x4   :  { %14 = vsyncpa [#allocation6], 0 }
   0x5   :  { %16 = vsyncpa [#allocation6 + $0x1], 0 }
   0x6   :  { %17 = vsyncpa [#allocation4], 0 }
   0x7   :  { %19 = vsyncpa [#allocation4 + $0x1], 0 }
   0x8   :  { %20 = vsyncpa [#allocation10], 0 }
   0x9   :  { %22 = vsyncpa [#allocation10 + $0x1], 0  ;;  %s3237_s18 = smov 0   ;;  %s3239_s19 = smov 0  }
   0xa   :  { %s3241_s20 = smov 0   ;;  %s3243_s21 = smov 0  }
   0xb LB: > { %5266 = sst [smem:[#allocation16_spill]] %s3197_s20  ;;  %s3258_s22 = sadd.s32 4294967295, %s3201_s21   ;;  %s3201_s21 = sphi %s3243_s21, %s5456_s21   ;;  %s3197_s20 = sphi %s3241_s20, %s5458_s20   ;;  %s3193_s19 = sphi %s3239_s19, %s5460_s19   ;;  %s3189_s18 = sphi %s3237_s18, %s5459_s18  }
   0xc   : > { %s2727_s23 = sadd.s32 4294967294, %s3201_s21   ;;  %p48_p0 = scmp.ne.s32.totalorder %s3193_s19, %s3189_s18 }
   0xd   : > { %p49_p1 = scmp.eq.s32.totalorder %s3258_s22, 0  ;;  %p140_p2 = scmp.eq.s32.totalorder %s3258_s22, 1 }
   0xe   : > { %p146_p3 = scmp.eq.s32.totalorder %s2727_s23, 1  ;;  %p2728_p5 = scmp.ge.s32.totalorder %s3201_s21, 1 }
   0xf   : > { %p3267_p4 = por %p49_p1, %p48_p0  ;;  %p179_p7 = scmp.lt.s32.totalorder %s3201_s21, 3 }
  0x10   : > { %p3272_p6 = por %p146_p3, %p48_p0  ;;  %s5269_s2 = sld [smem:[#allocation57_spill]] }
  0x11   : > { %p3280_p8 = pnand %p2728_p5, %p179_p7  ;;  %s3203_s30 = smov [#allocation7]  }
  0x12   : > { %s192_s6 = sshll.u32 %s3203_s30, 4  ;;  %s3290_s7 = sadd.s32 1, %s3201_s21   ;;  %s193_s6 = int_to_ptr.vmem [resolvable:$true] %s192_s6 }
  0x13   : > { %p2813_p9 = pneg %p3280_p8  ;;  %5271 = sst [smem:[#allocation17_spill]] %s3290_s7 }
  0x14   : > { %s5172_s8 = smov 128   ;;  %s5173_s9 = smov 8  }
  0x15   : > { %p2814_p10 = pnand %p2813_p9, %p49_p1  ;;  %s32_s10 = ssub.s32 %s3201_s21, %s3290_s7 }
  0x16   : > { %s190_s28 = sshll.u32 %s5269_s2, 4  ;;  %s35_s11 = sadd.s32 1, %s3197_s20  ;;  %s191_s28 = int_to_ptr.hbm [resolvable:$true] %s190_s28 }
  0x17   : > { %2816 = dma.hbm_to_vmem [thread:$0]  (!%p2814_p10), %s191_s28, 2048, %s193_s6, [#allocation6], %s5172_s8, %s5172_s8, %s5173_s9  }
  0x18   : > { %p33_p12 = scmp.eq.s32.totalorder %s32_s10, 0  ;;  %p42_p13 = scmp.ne.s32.totalorder %s3197_s20, %s3193_s19 }
  0x19   : > { %p43_p0 = scmp.eq.s32.totalorder %s3201_s21, 0  ;;  %p2832_p3 = scmp.lt.s32.totalorder %s3201_s21, 2 }
  0x1a   : > { %s3303_s12 = scalar_select %p33_p12, %s3197_s20, %s35_s11  }
  0x1b   : > { %p44_p5 = por %p43_p0, %p42_p13  ;;  %p3307_p7 = por %p140_p2, %p42_p13 }
  0x1c   : > { %5272 = sst [smem:[#allocation18_spill]] %s3303_s12  ;;  %s3312_s14 = sand.u32 1, %s3197_s20  }
  0x1d   : > { %s2752_s15 = sshll.u32 %s3201_s21, 9  ;;  %s2731_s16 = sshll.u32 %s3312_s14, 9 }
  0x1e   : > { %s218_s26 = scalar_lea.hbm %s5166_s0, %s2752_s15  ;;  %s213_s28 = scalar_lea.vmem [#allocation2], %s2731_s16 }
  0x1f   : > { %s219_s27 = sshll.u32 %s218_s26, 4  ;;  %s221_s30 = sshll.u32 %s213_s28, 4  ;;  %s220_s27 = int_to_ptr.hbm [resolvable:$true] %s219_s27  ;;  %s222_s30 = int_to_ptr.vmem [resolvable:$true] %s221_s30 }
  0x20   : > { %p3321_p2 = pnand %p2832_p3, %p44_p5  ;;  %s231_s10 = sand.u32 1, %s3201_s21  }
  0x21   : > { %s2734_s11 = sshll.u32 %s3312_s14, 3  ;;  %s210_s8 = scalar_lea.sflag [#allocation3], %s3312_s14 }
  0x22   : > { %s3035_s9 = sshra.s32 %s220_s27, 4  ;;  %p3039_p10 = pneg %p3321_p2  ;;  %s3036_s9 = int_to_ptr.hbm [resolvable:$true] %s3035_s9 }
  0x23   : > { %s3037_s2 = scalar_lea.hbm %s3036_s9, 512  ;;  %s3042_s17 = scalar_lea.hbm %s5166_s0, 1024 }
  0x24   : > { %p3038_p9 = scmp.ne.s32.totalorder %s3036_s9, %s3037_s2  ;;  %p3043_p0 = scmp.lt.s32.totalorder %s3036_s9, %s5166_s0 }
  0x25   : > { %p3044_p3 = scmp.lt.s32.totalorder %s3042_s17, %s3037_s2 }
  0x26   : > { %p3040_p12 = pnand %p3039_p10, %p3038_p9 }
  0x27   : > { %p3045_p5 = por %p3044_p3, %p3043_p0 }
  0x28   : > { %p3041_p13 = pneg %p3040_p12 }
  0x2a   : > { %p3046_p11 = pnand %p3045_p5, %p3041_p13 }
  0x2c   : > { %3049 = shalt.err (!%p3046_p11)
}
  0x2d   : > { %s5275_s14 = smov 8   ;;  %s5276_s28 = smov 128  }
  0x2e   : > { %2820 = dma.hbm_to_vmem [thread:$0]  (!%p3321_p2), %s220_s27, 8192, %s222_s30, %s210_s8, %s5276_s28, %s5276_s28, %s5275_s14  }
  0x2f   : > { %s2735_s12 = sshll.u32 %s3201_s21, 3  ;;  %s235_s20 = scalar_lea.vmem [#allocation5], %s2734_s11 }
  0x30   : > { %s243_s15 = sshll.u32 %s235_s20, 4  ;;  %s239_s23 = scalar_lea.hbm %s5167_s1, %s2735_s12  ;;  %s244_s15 = int_to_ptr.vmem [resolvable:$true] %s243_s15 }
  0x31   : > { %s241_s2 = sshll.u32 %s239_s23, 4  ;;  %s232_s9 = scalar_lea.sflag [#allocation6], %s231_s10  ;;  %s242_s2 = int_to_ptr.hbm [resolvable:$true] %s241_s2 }
  0x32   : > { %s3065_s17 = sshra.s32 %s242_s2, 4  ;;  %s3072_s20 = scalar_lea.hbm %s5167_s1, 16  ;;  %s3066_s17 = int_to_ptr.hbm [resolvable:$true] %s3065_s17 }
  0x33   : > { %s3067_s26 = scalar_lea.hbm %s3066_s17, 8  ;;  %p3073_p13 = scmp.lt.s32.totalorder %s3066_s17, %s5167_s1 }
  0x34   : > { %p3068_p11 = scmp.ne.s32.totalorder %s3066_s17, %s3067_s26  ;;  %p3074_p0 = scmp.lt.s32.totalorder %s3072_s20, %s3067_s26 }
  0x36   : > { %p3070_p9 = pnand %p3068_p11, %p3039_p10  ;;  %p3075_p3 = por %p3074_p0, %p3073_p13 }
  0x38   : > { %p3071_p12 = pneg %p3070_p9 }
  0x3a   : > { %p3076_p5 = pnand %p3075_p3, %p3071_p12 }
  0x3c   : > { %3079 = shalt.err (!%p3076_p5)
}
  0x3d   : > { %2823 = dma.hbm_to_vmem [thread:$0]  (!%p3321_p2), %s242_s2, 128, %s244_s15, %s232_s9  }
  0x3e   : > { %252 = sbr.rel (%p3280_p8) target bundleno = 1536 (0x600), region = 36 }
  0x43   : > { %s3362_s7 = sand.u32 1, %s3193_s19  }
  0x44   : > { %s2737_s12 = sshll.u32 %s3362_s7, 9  ;;  %s255_s10 = scalar_lea.sflag [#allocation3], %s3362_s7 }
  0x45   : > { %s3366_s14 = scalar_lea.vmem [#allocation2], %s2737_s12 }
  0x46   : > { %3168 = dma.done.wait (%p3267_p4), %s255_s10, 8192  }
  0x47   : > { %3170 = vsyncadd (%p3267_p4), %s255_s10, 4294959104  ;;  %s264_s29 = sand.u32 1, %s3258_s22   ;;  %s3374_s6 = sshll.u32 %s3362_s7, 3 }
  0x48   : > { %s265_s28 = scalar_lea.sflag [#allocation6], %s264_s29  ;;  %s268_s15 = scalar_lea.vmem [#allocation5], %s3374_s6 }
  0x49   : > { %3172 = dma.done.wait (%p3267_p4), %s265_s28, 128  }
  0x4a   : > { %3174 = vsyncadd (%p3267_p4), %s265_s28, 4294967168 }
  0x4b   : > { %3176 = dma.done.wait (%p49_p1), [#allocation6], 2048  }
  0x4c   : > { %3178 = vsyncadd (%p49_p1), [#allocation6], 4294965248  ;;  %v391_v0 = vld [vmem:[#allocation7 + $0x78] sm:$0xff]  ;;  %v390_v1 = vld [vmem:[#allocation7 + $0x70] sm:$0xff]  ;;  %vm1019_vm0 = vcmask 130112   ;;  %vm1023_vm1 = vcmask 195712  }
  0x4d   : > { %392 = vmatpush.msra.mxu0 %v391_v0  ;;  %2753 = vmatpush.msra.mxu1 %v391_v0  ;;  %v389_v2 = vld [vmem:[#allocation7 + $0x68] sm:$0xff]  ;;  %v388_v3 = vld [vmem:[#allocation7 + $0x60] sm:$0xff]  ;;  %v387_v4 = vld [vmem:[#allocation7 + $0x58] sm:$0xff]  ;;  %vm1027_vm2 = vcmask 261312   ;;  %vm1031_vm3 = vcmask 326912   ;;  %vm1035_vm4 = vcmask 392512  }
  0x4e   : > { %2754 = vmatpush.msra.mxu2 %v391_v0  ;;  %2755 = vmatpush.msra.mxu3 %v391_v0  ;;  %v386_v5 = vld [vmem:[#allocation7 + $0x50] sm:$0xff]  ;;  %v385_v6 = vld [vmem:[#allocation7 + $0x48] sm:$0xff]  ;;  %v384_v7 = vld [vmem:[#allocation7 + $0x40] sm:$0xff]  ;;  %vm5263_vm5 = vcmask 458112   ;;  %vm1043_vm6 = vcmask 523712   ;;  %vm1150_vm7 = vcmask 1041409  }
  0x4f   : > { %393 = vmatpush.msra.mxu0 %v390_v1  ;;  %2756 = vmatpush.msra.mxu1 %v390_v1  ;;  %v383_v8 = vld [vmem:[#allocation7 + $0x38] sm:$0xff]  ;;  %v382_v9 = vld [vmem:[#allocation7 + $0x30] sm:$0xff]  ;;  %v381_v10 = vld [vmem:[#allocation7 + $0x28] sm:$0xff]  ;;  %vm1152_vm8 = vcmask 1042434   ;;  %vm5262_vm9 = vcmask 1043459   ;;  %vm5258_vm10 = vcmask 1044484  }
  0x50   : > { %2757 = vmatpush.msra.mxu2 %v390_v1  ;;  %2758 = vmatpush.msra.mxu3 %v390_v1  ;;  %v380_v11 = vld [vmem:[#allocation7 + $0x20] sm:$0xff]  ;;  %v379_v12 = vld [vmem:[#allocation7 + $0x18] sm:$0xff]  ;;  %v378_v13 = vld [vmem:[#allocation7 + $0x10] sm:$0xff]  ;;  %vm5257_vm11 = vcmask 1045509   ;;  %vm5259_vm12 = vcmask 1046534   ;;  %vm5261_vm13 = vcmask 1047559  }
  0x51   : > { %394 = vmatpush.msra.mxu0 %v389_v2  ;;  %2759 = vmatpush.msra.mxu1 %v389_v2  ;;  %v377_v14 = vld [vmem:[#allocation7 + $0x8] sm:$0xff]  ;;  %v376_v15 = vld [vmem:[#allocation7] sm:$0xff]  ;;  %v312_v16 = vld [vmem:[%s3366_s14] sm:$0xff]  ;;  %vm5260_vm14 = vcmask 523264   ;;  %s310_s23 = scalar_lea.vmem [#allocation9], %s3374_s6  ;;  %s2748_s2 = sshll.u32 %s3258_s22, 3 }
  0x52   : > { %2760 = vmatpush.msra.mxu2 %v389_v2  ;;  %2761 = vmatpush.msra.mxu3 %v389_v2  ;;  %v330_v17 = vld [vmem:[%s3366_s14 + $0x90] sm:$0xff]  ;;  %v359_v19 = vld [vmem:[%s3366_s14 + $0x178] sm:$0xff]  ;;  %v313_v21 = vld [vmem:[%s3366_s14 + $0x8] sm:$0xff]  ;;  %s2587_s26 = scalar_lea.hbm %s5171_s5, %s2748_s2  ;;  %s2589_s8 = sshll.u32 %s310_s23, 4  ;;  %s2590_s8 = int_to_ptr.vmem [resolvable:$true] %s2589_s8 }
  0x53   : > { %395 = vmatpush.msra.mxu0 %v388_v3  ;;  %2762 = vmatpush.msra.mxu1 %v388_v3  ;;  %v342_v18 = vld [vmem:[%s3366_s14 + $0xf0] sm:$0xff]  ;;  %v331_v20 = vld [vmem:[%s3366_s14 + $0x98] sm:$0xff]  ;;  %v360_v23 = vld [vmem:[%s3366_s14 + $0x180] sm:$0xff]  ;;  %s2591_s27 = sshll.u32 %s2587_s26, 4  ;;  %s2563_s20 = scalar_lea.sflag [#allocation10], %s3362_s7  ;;  %s2592_s27 = int_to_ptr.hbm [resolvable:$true] %s2591_s27 }
  0x54   : > { %2763 = vmatpush.msra.mxu2 %v388_v3  ;;  %2764 = vmatpush.msra.mxu3 %v388_v3  ;;  %v343_v22 = vld [vmem:[%s3366_s14 + $0xf8] sm:$0xff]  ;;  %v332_v24 = vld [vmem:[%s3366_s14 + $0xa0] sm:$0xff]  ;;  %v314_v25 = vld [vmem:[%s3366_s14 + $0x10] sm:$0xff]  ;;  %s3109_s30 = sshra.s32 %s2592_s27, 4  ;;  %s3115_s22 = scalar_lea.hbm %s5171_s5, 16  ;;  %s3110_s30 = int_to_ptr.hbm [resolvable:$true] %s3109_s30 }
  0x55   : > { %396 = vmatpush.msra.mxu0 %v387_v4  ;;  %2765 = vmatpush.msra.mxu1 %v387_v4  ;;  %v344_v26 = vld [vmem:[%s3366_s14 + $0x100] sm:$0xff]  ;;  %v361_v27 = vld [vmem:[%s3366_s14 + $0x188] sm:$0xff]  ;;  %v315_v28 = vld [vmem:[%s3366_s14 + $0x18] sm:$0xff]  ;;  %s3111_s11 = scalar_lea.hbm %s3110_s30, 8  ;;  %p3116_p2 = scmp.lt.s32.totalorder %s3110_s30, %s5171_s5 }
  0x56   : > { %2766 = vmatpush.msra.mxu2 %v387_v4  ;;  %2767 = vmatpush.msra.mxu3 %v387_v4  ;;  %v333_v29 = vld [vmem:[%s3366_s14 + $0xa8] sm:$0xff]  ;;  %v362_v30 = vld [vmem:[%s3366_s14 + $0x190] sm:$0xff]  ;;  %v316_v32 = vld [vmem:[%s3366_s14 + $0x20] sm:$0xff]  ;;  %p3112_p1 = scmp.ne.s32.totalorder %s3110_s30, %s3111_s11  ;;  %p3117_p10 = scmp.lt.s32.totalorder %s3115_s22, %s3111_s11 }
  0x57   : > { %397 = vmatpush.msra.mxu0 %v386_v5  ;;  %2768 = vmatpush.msra.mxu1 %v386_v5  ;;  %v345_v31 = vld [vmem:[%s3366_s14 + $0x108] sm:$0xff]  ;;  %v334_v33 = vld [vmem:[%s3366_s14 + $0xb0] sm:$0xff]  ;;  %v363_v35 = vld [vmem:[%s3366_s14 + $0x198] sm:$0xff] }
  0x58   : > { %2769 = vmatpush.msra.mxu2 %v386_v5  ;;  %2770 = vmatpush.msra.mxu3 %v386_v5  ;;  %v346_v34 = vld [vmem:[%s3366_s14 + $0x110] sm:$0xff]  ;;  %v317_v36 = vld [vmem:[%s3366_s14 + $0x28] sm:$0xff]  ;;  %v335_v37 = vld [vmem:[%s3366_s14 + $0xb8] sm:$0xff]  ;;  %p3113_p4 = pnand %p3112_p1, %p3307_p7  ;;  %p3118_p11 = por %p3117_p10, %p3116_p2 }
  0x59   : > { %398 = vmatpush.msra.mxu0 %v385_v6  ;;  %2771 = vmatpush.msra.mxu1 %v385_v6  ;;  %v347_v38 = vld [vmem:[%s3366_s14 + $0x118] sm:$0xff]  ;;  %v364_v39 = vld [vmem:[%s3366_s14 + $0x1a0] sm:$0xff]  ;;  %v318_v40 = vld [vmem:[%s3366_s14 + $0x30] sm:$0xff] }
  0x5a   : > { %2772 = vmatpush.msra.mxu2 %v385_v6  ;;  %2773 = vmatpush.msra.mxu3 %v385_v6  ;;  %v336_v41 = vld [vmem:[%s3366_s14 + $0xc0] sm:$0xff]  ;;  %v365_v42 = vld [vmem:[%s3366_s14 + $0x1a8] sm:$0xff]  ;;  %v319_v44 = vld [vmem:[%s3366_s14 + $0x38] sm:$0xff]  ;;  %p3114_p8 = pneg %p3113_p4 }
  0x5b   : > { %399 = vmatpush.msra.mxu0 %v384_v7  ;;  %2774 = vmatpush.msra.mxu1 %v384_v7  ;;  %v348_v43 = vld [vmem:[%s3366_s14 + $0x120] sm:$0xff]  ;;  %v337_v45 = vld [vmem:[%s3366_s14 + $0xc8] sm:$0xff]  ;;  %v366_v47 = vld [vmem:[%s3366_s14 + $0x1b0] sm:$0xff] }
  0x5c   : > { %2775 = vmatpush.msra.mxu2 %v384_v7  ;;  %2776 = vmatpush.msra.mxu3 %v384_v7  ;;  %v349_v46 = vld [vmem:[%s3366_s14 + $0x128] sm:$0xff]  ;;  %v320_v48 = vld [vmem:[%s3366_s14 + $0x40] sm:$0xff]  ;;  %v338_v49 = vld [vmem:[%s3366_s14 + $0xd0] sm:$0xff]  ;;  %p3119_p9 = pnand %p3118_p11, %p3114_p8 }
  0x5d   : > { %400 = vmatpush.msra.mxu0 %v383_v8  ;;  %2777 = vmatpush.msra.mxu1 %v383_v8  ;;  %v350_v50 = vld [vmem:[%s3366_s14 + $0x130] sm:$0xff]  ;;  %v367_v51 = vld [vmem:[%s3366_s14 + $0x1b8] sm:$0xff]  ;;  %v321_v52 = vld [vmem:[%s3366_s14 + $0x48] sm:$0xff] }
  0x5e   : > { %2778 = vmatpush.msra.mxu2 %v383_v8  ;;  %2779 = vmatpush.msra.mxu3 %v383_v8  ;;  %v339_v53 = vld [vmem:[%s3366_s14 + $0xd8] sm:$0xff]  ;;  %v368_v54 = vld [vmem:[%s3366_s14 + $0x1c0] sm:$0xff]  ;;  %v322_v56 = vld [vmem:[%s3366_s14 + $0x50] sm:$0xff] }
  0x5f   : > { %401 = vmatpush.msra.mxu0 %v382_v9  ;;  %2780 = vmatpush.msra.mxu1 %v382_v9  ;;  %v351_v55 = vld [vmem:[%s3366_s14 + $0x138] sm:$0xff]  ;;  %v340_v57 = vld [vmem:[%s3366_s14 + $0xe0] sm:$0xff]  ;;  %v369_v59 = vld [vmem:[%s3366_s14 + $0x1c8] sm:$0xff] }
  0x60   : > { %2781 = vmatpush.msra.mxu2 %v382_v9  ;;  %2782 = vmatpush.msra.mxu3 %v382_v9  ;;  %v352_v58 = vld [vmem:[%s3366_s14 + $0x140] sm:$0xff]  ;;  %v323_v60 = vld [vmem:[%s3366_s14 + $0x58] sm:$0xff]  ;;  %v341_v61 = vld [vmem:[%s3366_s14 + $0xe8] sm:$0xff] }
  0x61   : > { %402 = vmatpush.msra.mxu0 %v381_v10  ;;  %2783 = vmatpush.msra.mxu1 %v381_v10  ;;  %v353_v62 = vld [vmem:[%s3366_s14 + $0x148] sm:$0xff]  ;;  %v370_v63 = vld [vmem:[%s3366_s14 + $0x1d0] sm:$0xff]  ;;  %v324_v0 = vld [vmem:[%s3366_s14 + $0x60] sm:$0xff] }
  0x62   : > { %2784 = vmatpush.msra.mxu2 %v381_v10  ;;  %2785 = vmatpush.msra.mxu3 %v381_v10  ;;  %v354_v1 = vld [vmem:[%s3366_s14 + $0x150] sm:$0xff]  ;;  %v371_v2 = vld [vmem:[%s3366_s14 + $0x1d8] sm:$0xff]  ;;  %v325_v3 = vld [vmem:[%s3366_s14 + $0x68] sm:$0xff] }
  0x63   : > { %403 = vmatpush.msra.mxu0 %v380_v11  ;;  %2786 = vmatpush.msra.mxu1 %v380_v11  ;;  %v355_v4 = vld [vmem:[%s3366_s14 + $0x158] sm:$0xff]  ;;  %v372_v5 = vld [vmem:[%s3366_s14 + $0x1e0] sm:$0xff]  ;;  %v326_v6 = vld [vmem:[%s3366_s14 + $0x70] sm:$0xff] }
  0x64   : > { %2787 = vmatpush.msra.mxu2 %v380_v11  ;;  %2788 = vmatpush.msra.mxu3 %v380_v11  ;;  %v356_v7 = vld [vmem:[%s3366_s14 + $0x160] sm:$0xff]  ;;  %v373_v8 = vld [vmem:[%s3366_s14 + $0x1e8] sm:$0xff]  ;;  %v327_v10 = vld [vmem:[%s3366_s14 + $0x78] sm:$0xff] }
  0x65   : > { %404 = vmatpush.msra.mxu0 %v379_v12  ;;  %2789 = vmatpush.msra.mxu1 %v379_v12  ;;  %v3444_v9 = vld [vmem:[%s268_s15] sm:$0xff] }
  0x66   : > { %2790 = vmatpush.msra.mxu2 %v379_v12  ;;  %2791 = vmatpush.msra.mxu3 %v379_v12  ;;  %v357_v11 = vld [vmem:[%s3366_s14 + $0x168] sm:$0xff]  ;;  %v374_v12 = vld [vmem:[%s3366_s14 + $0x1f0] sm:$0xff] }
  0x67   : > { %405 = vmatpush.msra.mxu0 %v378_v13  ;;  %2792 = vmatpush.msra.mxu1 %v378_v13 }
  0x68   : > { %2793 = vmatpush.msra.mxu2 %v378_v13  ;;  %2794 = vmatpush.msra.mxu3 %v378_v13  ;;  %v3450_v13 = vperm.slane %v3444_v9, 0 }
  0x69   : > { %406 = vmatpush.msra.mxu0 %v377_v14  ;;  %2795 = vmatpush.msra.mxu1 %v377_v14 }
  0x6a   : > { %2796 = vmatpush.msra.mxu2 %v377_v14  ;;  %2797 = vmatpush.msra.mxu3 %v377_v14  ;;  %v604_v14 = vrot.slane %v3444_v9, 2 }
  0x6b   : > { %407 = vmatpush.msra.mxu0 %v376_v15  ;;  %2798 = vmatpush.msra.mxu1 %v376_v15 }
  0x6c   : > { %408 = vmatmul.f32.vlgmr.msra.gmra.mxu0 %v312_v16  ;;  %462 = vmatmul.f32.vlgmr.msra.gmra.mxu1 %v330_v17 }
  0x6d   : > { %2799 = vmatpush.msra.mxu2 %v376_v15  ;;  %2800 = vmatpush.msra.mxu3 %v376_v15 }
  0x6e   : > { %498 = vmatmul.f32.vlgmr.msra.gmra.mxu2 %v342_v18  ;;  %549 = vmatmul.f32.vlgmr.msra.gmra.mxu3 %v359_v19  ;;  %v3454_v18 = vperm.slane %v604_v14, 0  ;;  %v3459_v19 = vld [vmem:[%s5169_s3] ss:$0 sm:$0xff] }
  0x74   : > { %465 = vmatmul.f32.gmra.mxu1 %v331_v20  ;;  %411 = vmatmul.f32.gmra.mxu0 %v313_v21  ;;  %v607_v20 = vrot.slane %v3444_v9, 5 }
  0x76   : > { %501 = vmatmul.f32.gmra.mxu2 %v343_v22  ;;  %552 = vmatmul.f32.gmra.mxu3 %v360_v23  ;;  %v328_v22 = vld [vmem:[%s3366_s14 + $0x80] sm:$0xff]  ;;  %v358_v23 = vld [vmem:[%s3366_s14 + $0x170] sm:$0xff] }
  0x7c   : > { %468 = vmatmul.f32.gmra.mxu1 %v332_v24  ;;  %414 = vmatmul.f32.gmra.mxu0 %v314_v25  ;;  %v375_v24 = vld [vmem:[%s3366_s14 + $0x1f8] sm:$0xff] }
  0x7e   : > { %504 = vmatmul.f32.gmra.mxu2 %v344_v26  ;;  %555 = vmatmul.f32.gmra.mxu3 %v361_v27  ;;  %v605_v27 = vrot.slane %v3444_v9, 3 }
  0x84   : > { %417 = vmatmul.f32.gmra.mxu0 %v315_v28  ;;  %471 = vmatmul.f32.gmra.mxu1 %v333_v29  ;;  %v3468_v28 = vperm.slane %v607_v20, 0 }
  0x86   : > { %558 = vmatmul.f32.gmra.mxu3 %v362_v30  ;;  %507 = vmatmul.f32.gmra.mxu2 %v345_v31 }
  0x8c   : > { %420 = vmatmul.f32.gmra.mxu0 %v316_v32  ;;  %474 = vmatmul.f32.gmra.mxu1 %v334_v33  ;;  %v3471_v33 = vperm.slane %v605_v27, 0 }
  0x8e   : > { %510 = vmatmul.f32.gmra.mxu2 %v346_v34  ;;  %561 = vmatmul.f32.gmra.mxu3 %v363_v35 }
  0x94   : > { %423 = vmatmul.f32.gmra.mxu0 %v317_v36  ;;  %477 = vmatmul.f32.gmra.mxu1 %v335_v37  ;;  %v329_v36 = vld [vmem:[%s3366_s14 + $0x88] sm:$0xff] }
  0x96   : > { %513 = vmatmul.f32.gmra.mxu2 %v347_v38  ;;  %564 = vmatmul.f32.gmra.mxu3 %v364_v39 }
  0x9c   : > { %426 = vmatmul.f32.gmra.mxu0 %v318_v40  ;;  %480 = vmatmul.f32.gmra.mxu1 %v336_v41 }
  0x9e   : > { %567 = vmatmul.f32.gmra.mxu3 %v365_v42  ;;  %516 = vmatmul.f32.gmra.mxu2 %v348_v43 }
  0xa4   : > { %429 = vmatmul.f32.gmra.mxu0 %v319_v44  ;;  %483 = vmatmul.f32.gmra.mxu1 %v337_v45 }
  0xa6   : > { %519 = vmatmul.f32.gmra.mxu2 %v349_v46  ;;  %570 = vmatmul.f32.gmra.mxu3 %v366_v47  ;;  %v606_v46 = vrot.slane %v3444_v9, 4 }
  0xac   : > { %432 = vmatmul.f32.gmra.mxu0 %v320_v48  ;;  %486 = vmatmul.f32.gmra.mxu1 %v338_v49 }
  0xae   : > { %522 = vmatmul.f32.gmra.mxu2 %v350_v50  ;;  %573 = vmatmul.f32.gmra.mxu3 %v367_v51 }
  0xb4   : > { %435 = vmatmul.f32.gmra.mxu0 %v321_v52  ;;  %489 = vmatmul.f32.gmra.mxu1 %v339_v53 }
  0xb6   : > { %576 = vmatmul.f32.gmra.mxu3 %v368_v54  ;;  %525 = vmatmul.f32.gmra.mxu2 %v351_v55  ;;  %v608_v55 = vrot.slane %v3444_v9, 6 }
  0xbc   : > { %438 = vmatmul.f32.gmra.mxu0 %v322_v56  ;;  %492 = vmatmul.f32.gmra.mxu1 %v340_v57  ;;  %v3484_v56 = vperm.slane %v606_v46, 0 }
  0xbe   : > { %528 = vmatmul.f32.gmra.mxu2 %v352_v58  ;;  %579 = vmatmul.f32.gmra.mxu3 %v369_v59 }
  0xc4   : > { %441 = vmatmul.f32.gmra.mxu0 %v323_v60  ;;  %495 = vmatmul.f32.gmra.mxu1 %v341_v61 }
  0xc6   : > { %531 = vmatmul.f32.gmra.mxu2 %v353_v62  ;;  %582 = vmatmul.f32.gmra.mxu3 %v370_v63 }
  0xcc   : > { %444 = vmatmul.f32.gmra.mxu0 %v324_v0  ;;  %v3490_v0 = vperm.slane %v608_v55, 0 }
  0xce   : > { %534 = vmatmul.f32.gmra.mxu2 %v354_v1  ;;  %585 = vmatmul.f32.gmra.mxu3 %v371_v2 }
  0xd4   : > { %447 = vmatmul.f32.gmra.mxu0 %v325_v3 }
  0xd6   : > { %537 = vmatmul.f32.gmra.mxu2 %v355_v4  ;;  %588 = vmatmul.f32.gmra.mxu3 %v372_v5 }
  0xdc   : > { %450 = vmatmul.f32.gmra.mxu0 %v326_v6 }
  0xde   : > { %540 = vmatmul.f32.gmra.mxu2 %v356_v7  ;;  %591 = vmatmul.f32.gmra.mxu3 %v373_v8 }
  0xe4   : > { %453 = vmatmul.f32.gmra.mxu0 %v327_v10 }
  0xe6   : > { %543 = vmatmul.f32.gmra.mxu2 %v357_v11  ;;  %594 = vmatmul.f32.gmra.mxu3 %v374_v12 }
  0xe9   : > { %v409_v15 = vpop.f32.mrf.mxu0  ;;  %v463_v16 = vpop.f32.mrf.mxu1 }
  0xea   : > { %v626_v17 = vadd.f32 %v3450_v13, %v409_v15  ;;  %v644_v25 = vadd.f32 %v3454_v18, %v463_v16 }
  0xec   : > { %v690_v21 = vmax.f32 %v626_v17, 0.0  ;;  %456 = vmatmul.f32.gmra.mxu0 %v328_v22  ;;  %v708_v31 = vmax.f32 %v644_v25, 0.0 }
  0xee   : > { %v758_v26 = vmul.f32 %v3459_v19, %v690_v21  ;;  %546 = vmatmul.f32.gmra.mxu2 %v358_v23  ;;  %597 = vmatmul.f32.gmra.mxu3 %v375_v24  ;;  %v776_v42 = vmul.f32 %v3459_v19, %v708_v31 }
  0xf0   : > { %822 = vadd.xlane.f32.xlu0 %v758_v26 }
  0xf1   : > { %v466_v29 = vpop.f32.mrf.mxu1  ;;  %v499_v30 = vpop.f32.mrf.mxu2 }
  0xf2   : > { %v645_v32 = vadd.f32 %v3454_v18, %v466_v29  ;;  %v550_v34 = vpop.f32.mrf.mxu3  ;;  %v412_v35 = vpop.f32.mrf.mxu0  ;;  %v656_v40 = vadd.f32 %v3471_v33, %v499_v30 }
  0xf3   : > { %v673_v37 = vadd.f32 %v3468_v28, %v550_v34  ;;  %v627_v57 = vadd.f32 %v3450_v13, %v412_v35 }
  0xf4   : > { %v709_v38 = vmax.f32 %v645_v32, 0.0  ;;  %459 = vmatmul.f32.gmra.mxu0 %v329_v36  ;;  %v720_v47 = vmax.f32 %v656_v40, 0.0 }
  0xf5   : > { %v737_v39 = vmax.f32 %v673_v37, 0.0  ;;  %v691_v63 = vmax.f32 %v627_v57, 0.0 }
  0xf6   : > { %v777_v41 = vmul.f32 %v3459_v19, %v709_v38  ;;  %v788_v60 = vmul.f32 %v3459_v19, %v720_v47 }
  0xf7   : > { %v805_v43 = vmul.f32 %v3459_v19, %v737_v39  ;;  %v759_v10 = vmul.f32 %v3459_v19, %v691_v63 }
  0xf8   : > { %860 = vadd.xlane.f32.xlu1 %v777_v41  ;;  %858 = vadd.xlane.f32.xlu0 %v776_v42 }
  0xf9   : > { %916 = vadd.xlane.f32.xlu2 %v805_v43  ;;  %v469_v44 = vpop.f32.mrf.mxu1  ;;  %v502_v45 = vpop.f32.mrf.mxu2 }
  0xfa   : > { %v646_v48 = vadd.f32 %v3454_v18, %v469_v44  ;;  %v657_v49 = vadd.f32 %v3471_v33, %v502_v45  ;;  %v553_v50 = vpop.f32.mrf.mxu3  ;;  %v415_v51 = vpop.f32.mrf.mxu0 }
  0xfb   : > { %v628_v54 = vadd.f32 %v3450_v13, %v415_v51  ;;  %v674_v6 = vadd.f32 %v3490_v0, %v553_v50 }
  0xfc   : > { %v710_v52 = vmax.f32 %v646_v48, 0.0  ;;  %v721_v53 = vmax.f32 %v657_v49, 0.0 }
  0xfd   : > { %v692_v61 = vmax.f32 %v628_v54, 0.0  ;;  %v738_v14 = vmax.f32 %v674_v6, 0.0 }
  0xfe   : > { %v789_v58 = vmul.f32 %v3459_v19, %v721_v53  ;;  %v778_v59 = vmul.f32 %v3459_v19, %v710_v52 }
  0xff   : > { %v760_v5 = vmul.f32 %v3459_v19, %v692_v61  ;;  %v806_v25 = vmul.f32 %v3459_v19, %v738_v14 }
 0x100   : > { %884 = vadd.xlane.f32.xlu1 %v789_v58  ;;  %882 = vadd.xlane.f32.xlu0 %v788_v60 }
 0x101   : > { %862 = vadd.xlane.f32.xlu2 %v778_v59  ;;  %v505_v62 = vpop.f32.mrf.mxu2  ;;  %v472_v11 = vpop.f32.mrf.mxu1 }
 0x102   : > { %v658_v1 = vadd.f32 %v3484_v56, %v505_v62  ;;  %v556_v2 = vpop.f32.mrf.mxu3  ;;  %v418_v3 = vpop.f32.mrf.mxu0  ;;  %v647_v21 = vadd.f32 %v3454_v18, %v472_v11 }
 0x103   : > { %v675_v7 = vadd.f32 %v3490_v0, %v556_v2  ;;  %v629_v24 = vadd.f32 %v3450_v13, %v418_v3 }
 0x104   : > { %v722_v4 = vmax.f32 %v658_v1, 0.0  ;;  %v711_v29 = vmax.f32 %v647_v21, 0.0 }
 0x105   : > { %v739_v15 = vmax.f32 %v675_v7, 0.0  ;;  %v693_v32 = vmax.f32 %v629_v24, 0.0 }
 0x106   : > { %v790_v8 = vmul.f32 %v3459_v19, %v722_v4  ;;  %v779_v36 = vmul.f32 %v3459_v19, %v711_v29 }
 0x107   : > { %v807_v26 = vmul.f32 %v3459_v19, %v739_v15  ;;  %v761_v42 = vmul.f32 %v3459_v19, %v693_v32 }
 0x108   : > { %824 = vadd.xlane.f32.xlu0 %v759_v10  ;;  %826 = vadd.xlane.f32.xlu1 %v760_v5 }
 0x109   : > { %886 = vadd.xlane.f32.xlu2 %v790_v8  ;;  %v508_v12 = vpop.f32.mrf.mxu2  ;;  %v475_v30 = vpop.f32.mrf.mxu1 }
 0x10a   : > { %v559_v16 = vpop.f32.mrf.mxu3  ;;  %v421_v17 = vpop.f32.mrf.mxu0  ;;  %v648_v37 = vadd.f32 %v3454_v18, %v475_v30  ;;  %v659_v38 = vadd.f32 %v3484_v56, %v508_v12 }
 0x10b   : > { %v676_v20 = vadd.f32 %v3490_v0, %v559_v16  ;;  %v630_v23 = vadd.f32 %v3450_v13, %v421_v17 }
 0x10c   : > { %v712_v43 = vmax.f32 %v648_v37, 0.0  ;;  %v723_v44 = vmax.f32 %v659_v38, 0.0 }
 0x10d   : > { %v740_v22 = vmax.f32 %v676_v20, 0.0  ;;  %v694_v31 = vmax.f32 %v630_v23, 0.0  ;;  %v603_v20 = vrot.slane %v3444_v9, 1 }
 0x10e   : > { %v791_v47 = vmul.f32 %v3459_v19, %v723_v44  ;;  %v780_v48 = vmul.f32 %v3459_v19, %v712_v43 }
 0x10f   : > { %v808_v27 = vmul.f32 %v3459_v19, %v740_v22  ;;  %v762_v40 = vmul.f32 %v3459_v19, %v694_v31 }
 0x110   : > { %918 = vadd.xlane.f32.xlu0 %v806_v25  ;;  %920 = vadd.xlane.f32.xlu1 %v807_v26 }
 0x111   : > { %922 = vadd.xlane.f32.xlu2 %v808_v27  ;;  %v511_v35 = vpop.f32.mrf.mxu2  ;;  %v478_v46 = vpop.f32.mrf.mxu1  ;;  %v3530_v27 = vperm.slane %v603_v20, 0 }
 0x112   : > { %v424_v34 = vpop.f32.mrf.mxu0  ;;  %v562_v39 = vpop.f32.mrf.mxu3  ;;  %v660_v49 = vadd.f32 %v3484_v56, %v511_v35  ;;  %v649_v52 = vadd.f32 %v3454_v18, %v478_v46 }
 0x113   : > { %v631_v41 = vadd.f32 %v3450_v13, %v424_v34  ;;  %v677_v50 = vadd.f32 %v3490_v0, %v562_v39 }
 0x114   : > { %v724_v57 = vmax.f32 %v660_v49, 0.0  ;;  %v713_v59 = vmax.f32 %v649_v52, 0.0 }
 0x115   : > { %v695_v45 = vmax.f32 %v631_v41, 0.0  ;;  %v741_v58 = vmax.f32 %v677_v50, 0.0 }
 0x116   : > { %v792_v61 = vmul.f32 %v3459_v19, %v724_v57  ;;  %v781_v1 = vmul.f32 %v3459_v19, %v713_v59 }
 0x117   : > { %v763_v51 = vmul.f32 %v3459_v19, %v695_v45  ;;  %v809_v60 = vmul.f32 %v3459_v19, %v741_v58 }
 0x118   : > { %864 = vadd.xlane.f32.xlu0 %v779_v36  ;;  %828 = vadd.xlane.f32.xlu1 %v761_v42 }
 0x119   : > { %830 = vadd.xlane.f32.xlu2 %v762_v40  ;;  %v514_v53 = vpop.f32.mrf.mxu2  ;;  %v481_v3 = vpop.f32.mrf.mxu1 }
 0x11a   : > { %v427_v54 = vpop.f32.mrf.mxu0  ;;  %v565_v55 = vpop.f32.mrf.mxu3  ;;  %v661_v2 = vadd.f32 %v3484_v56, %v514_v53  ;;  %v650_v15 = vadd.f32 %v3471_v33, %v481_v3 }
 0x11b   : > { %v632_v62 = vadd.f32 %v3450_v13, %v427_v54  ;;  %v678_v63 = vadd.f32 %v3490_v0, %v565_v55 }
 0x11c   : > { %v725_v10 = vmax.f32 %v661_v2, 0.0  ;;  %v714_v23 = vmax.f32 %v650_v15, 0.0 }
 0x11d   : > { %v696_v5 = vmax.f32 %v632_v62, 0.0  ;;  %v742_v6 = vmax.f32 %v678_v63, 0.0 }
 0x11e   : > { %v793_v16 = vmul.f32 %v3459_v19, %v725_v10  ;;  %v782_v29 = vmul.f32 %v3459_v19, %v714_v23 }
 0x11f   : > { %v810_v11 = vmul.f32 %v3459_v19, %v742_v6  ;;  %v764_v12 = vmul.f32 %v3459_v19, %v696_v5 }
 0x120   : > { %888 = vadd.xlane.f32.xlu0 %v791_v47  ;;  %866 = vadd.xlane.f32.xlu1 %v780_v48 }
 0x121   : > { %832 = vadd.xlane.f32.xlu2 %v763_v51  ;;  %v517_v4 = vpop.f32.mrf.mxu2  ;;  %v484_v21 = vpop.f32.mrf.mxu1 }
 0x122   : > { %v430_v7 = vpop.f32.mrf.mxu0  ;;  %v568_v8 = vpop.f32.mrf.mxu3  ;;  %v651_v31 = vadd.f32 %v3471_v33, %v484_v21  ;;  %v662_v32 = vadd.f32 %v3484_v56, %v517_v4 }
 0x123   : > { %v633_v14 = vadd.f32 %v3450_v13, %v430_v7  ;;  %v679_v17 = vadd.f32 %v3490_v0, %v568_v8 }
 0x124   : > { %v715_v36 = vmax.f32 %v651_v31, 0.0  ;;  %v726_v37 = vmax.f32 %v662_v32, 0.0 }
 0x125   : > { %v697_v22 = vmax.f32 %v633_v14, 0.0  ;;  %v743_v26 = vmax.f32 %v679_v17, 0.0 }
 0x126   : > { %v794_v42 = vmul.f32 %v3459_v19, %v726_v37  ;;  %v783_v43 = vmul.f32 %v3459_v19, %v715_v36 }
 0x127   : > { %v765_v30 = vmul.f32 %v3459_v19, %v697_v22  ;;  %v811_v34 = vmul.f32 %v3459_v19, %v743_v26 }
 0x128   : > { %924 = vadd.xlane.f32.xlu0 %v809_v60  ;;  %890 = vadd.xlane.f32.xlu1 %v792_v61  ;;  %v609_v61 = vrot.slane %v3444_v9, 7 }
 0x129   : > { %868 = vadd.xlane.f32.xlu2 %v781_v1  ;;  %v520_v24 = vpop.f32.mrf.mxu2  ;;  %v487_v39 = vpop.f32.mrf.mxu1 }
 0x12a   : > { %v571_v25 = vpop.f32.mrf.mxu3  ;;  %v433_v13 = vpop.f32.mrf.mxu0  ;;  %v663_v44 = vadd.f32 %v3484_v56, %v520_v24  ;;  %v652_v48 = vadd.f32 %v3471_v33, %v487_v39  ;;  %v3551_v4 = vperm.slane %v609_v61, 0 }
 0x12b   : > { %v634_v35 = vadd.f32 %v3530_v27, %v433_v13  ;;  %v680_v45 = vadd.f32 %v3490_v0, %v571_v25 }
 0x12c   : > { %v727_v49 = vmax.f32 %v663_v44, 0.0  ;;  %v716_v51 = vmax.f32 %v652_v48, 0.0 }
 0x12d   : > { %v698_v38 = vmax.f32 %v634_v35, 0.0  ;;  %v744_v50 = vmax.f32 %v680_v45, 0.0 }
 0x12e   : > { %v795_v54 = vmul.f32 %v3459_v19, %v727_v49  ;;  %v784_v59 = vmul.f32 %v3459_v19, %v716_v51 }
 0x12f   : > { %v766_v47 = vmul.f32 %v3459_v19, %v698_v38  ;;  %v812_v53 = vmul.f32 %v3459_v19, %v744_v50 }
 0x130   : > { %926 = vadd.xlane.f32.xlu1 %v810_v11  ;;  %834 = vadd.xlane.f32.xlu0 %v764_v12 }
 0x131   : > { %892 = vadd.xlane.f32.xlu2 %v793_v16  ;;  %v523_v40 = vpop.f32.mrf.mxu2  ;;  %v490_v63 = vpop.f32.mrf.mxu1 }
 0x132   : > { %v574_v41 = vpop.f32.mrf.mxu3  ;;  %v436_v46 = vpop.f32.mrf.mxu0  ;;  %v664_v60 = vadd.f32 %v3484_v56, %v523_v40  ;;  %v653_v7 = vadd.f32 %v3471_v33, %v490_v63 }
 0x133   : > { %v635_v55 = vadd.f32 %v3530_v27, %v436_v46  ;;  %v681_v57 = vadd.f32 %v3490_v0, %v574_v41 }
 0x134   : > { %v728_v3 = vmax.f32 %v664_v60, 0.0  ;;  %v717_v14 = vmax.f32 %v653_v7, 0.0 }
 0x135   : > { %v699_v1 = vmax.f32 %v635_v55, 0.0  ;;  %v745_v2 = vmax.f32 %v681_v57, 0.0 }
 0x136   : > { %v796_v10 = vmul.f32 %v3459_v19, %v728_v3  ;;  %v785_v20 = vmul.f32 %v3459_v19, %v717_v14 }
 0x137   : > { %v813_v5 = vmul.f32 %v3459_v19, %v745_v2  ;;  %v767_v0 = vmul.f32 %v3459_v19, %v699_v1 }
 0x138   : > { %870 = vadd.xlane.f32.xlu0 %v782_v29  ;;  %836 = vadd.xlane.f32.xlu1 %v765_v30 }
 0x139   : > { %928 = vadd.xlane.f32.xlu2 %v811_v34  ;;  %v526_v52 = vpop.f32.mrf.mxu2  ;;  %v493_v16 = vpop.f32.mrf.mxu1 }
 0x13a   : > { %v577_v58 = vpop.f32.mrf.mxu3  ;;  %v439_v62 = vpop.f32.mrf.mxu0  ;;  %v654_v22 = vadd.f32 %v3471_v33, %v493_v16  ;;  %v665_v23 = vadd.f32 %v3484_v56, %v526_v52 }
 0x13b   : > { %v636_v6 = vadd.f32 %v3530_v27, %v439_v62  ;;  %v682_v11 = vadd.f32 %v3551_v4, %v577_v58 }
 0x13c   : > { %v718_v29 = vmax.f32 %v654_v22, 0.0  ;;  %v729_v30 = vmax.f32 %v665_v23, 0.0 }
 0x13d   : > { %v700_v12 = vmax.f32 %v636_v6, 0.0  ;;  %v746_v17 = vmax.f32 %v682_v11, 0.0 }
 0x13e   : > { %v797_v35 = vmul.f32 %v3459_v19, %v729_v30  ;;  %v786_v36 = vmul.f32 %v3459_v19, %v718_v29 }
 0x13f   : > { %v768_v21 = vmul.f32 %v3459_v19, %v700_v12  ;;  %v814_v24 = vmul.f32 %v3459_v19, %v746_v17 }
 0x140   : > { %894 = vadd.xlane.f32.xlu0 %v794_v42  ;;  %872 = vadd.xlane.f32.xlu1 %v783_v43 }
 0x141   : > { %838 = vadd.xlane.f32.xlu2 %v766_v47  ;;  %v529_v8 = vpop.f32.mrf.mxu2  ;;  %v496_v34 = vpop.f32.mrf.mxu1 }
 0x142   : > { %v580_v9 = vpop.f32.mrf.mxu3  ;;  %v442_v15 = vpop.f32.mrf.mxu0  ;;  %v666_v56 = vadd.f32 %v3468_v28, %v529_v8  ;;  %v655_v39 = vadd.f32 %v3471_v33, %v496_v34 }
 0x143   : > { %v637_v25 = vadd.f32 %v3530_v27, %v442_v15  ;;  %v683_v37 = vadd.f32 %v3551_v4, %v580_v9 }
 0x144   : > { %v730_v40 = vmax.f32 %v666_v56, 0.0  ;;  %v719_v44 = vmax.f32 %v655_v39, 0.0 }
 0x145   : > { %v701_v32 = vmax.f32 %v637_v25, 0.0  ;;  %v747_v41 = vmax.f32 %v683_v37, 0.0 }
 0x146   : > { %v798_v48 = vmul.f32 %v3459_v19, %v730_v40  ;;  %v787_v33 = vmul.f32 %v3459_v19, %v719_v44 }
 0x147   : > { %v769_v38 = vmul.f32 %v3459_v19, %v701_v32  ;;  %v815_v47 = vmul.f32 %v3459_v19, %v747_v41 }
 0x148   : > { %930 = vadd.xlane.f32.xlu0 %v812_v53  ;;  %896 = vadd.xlane.f32.xlu1 %v795_v54 }
 0x149   : > { %874 = vadd.xlane.f32.xlu2 %v784_v59  ;;  %v532_v26 = vpop.f32.mrf.mxu2 }
 0x14a   : > { %v583_v13 = vpop.f32.mrf.mxu3  ;;  %v445_v31 = vpop.f32.mrf.mxu0  ;;  %v667_v51 = vadd.f32 %v3468_v28, %v532_v26 }
 0x14b   : > { %v638_v49 = vadd.f32 %v3530_v27, %v445_v31  ;;  %v684_v50 = vadd.f32 %v3551_v4, %v583_v13 }
 0x14c   : > { %v731_v54 = vmax.f32 %v667_v51, 0.0 }
 0x14d   : > { %v702_v52 = vmax.f32 %v638_v49, 0.0  ;;  %v748_v53 = vmax.f32 %v684_v50, 0.0 }
 0x14e   : > { %v799_v3 = vmul.f32 %v3459_v19, %v731_v54 }
 0x14f   : > { %v816_v61 = vmul.f32 %v3459_v19, %v748_v53  ;;  %v770_v62 = vmul.f32 %v3459_v19, %v702_v52 }
 0x150   : > { %932 = vadd.xlane.f32.xlu1 %v813_v5  ;;  %840 = vadd.xlane.f32.xlu0 %v767_v0 }
 0x151   : > { %898 = vadd.xlane.f32.xlu2 %v796_v10  ;;  %v535_v42 = vpop.f32.mrf.mxu2 }
 0x152   : > { %v586_v43 = vpop.f32.mrf.mxu3  ;;  %v448_v45 = vpop.f32.mrf.mxu0  ;;  %v668_v1 = vadd.f32 %v3468_v28, %v535_v42 }
 0x153   : > { %v639_v63 = vadd.f32 %v3530_v27, %v448_v45  ;;  %v685_v5 = vadd.f32 %v3551_v4, %v586_v43 }
 0x154   : > { %v732_v6 = vmax.f32 %v668_v1, 0.0 }
 0x155   : > { %v703_v0 = vmax.f32 %v639_v63, 0.0  ;;  %v749_v7 = vmax.f32 %v685_v5, 0.0 }
 0x156   : > { %v800_v11 = vmul.f32 %v3459_v19, %v732_v6 }
 0x157   : > { %v771_v12 = vmul.f32 %v3459_v19, %v703_v0  ;;  %v817_v16 = vmul.f32 %v3459_v19, %v749_v7 }
 0x158   : > { %876 = vadd.xlane.f32.xlu0 %v785_v20  ;;  %842 = vadd.xlane.f32.xlu1 %v768_v21 }
 0x159   : > { %934 = vadd.xlane.f32.xlu2 %v814_v24  ;;  %v538_v55 = vpop.f32.mrf.mxu2 }
 0x15a   : > { %v589_v57 = vpop.f32.mrf.mxu3  ;;  %v451_v2 = vpop.f32.mrf.mxu0  ;;  %v669_v14 = vadd.f32 %v3468_v28, %v538_v55 }
 0x15b   : > { %v686_v15 = vadd.f32 %v3551_v4, %v589_v57  ;;  %v640_v17 = vadd.f32 %v3530_v27, %v451_v2 }
 0x15c   : > { %v733_v23 = vmax.f32 %v669_v14, 0.0 }
 0x15d   : > { %v750_v24 = vmax.f32 %v686_v15, 0.0  ;;  %v704_v25 = vmax.f32 %v640_v17, 0.0 }
 0x15e   : > { %v801_v31 = vmul.f32 %v3459_v19, %v733_v23 }
 0x15f   : > { %v818_v30 = vmul.f32 %v3459_v19, %v750_v24 }
 0x160   : > { %900 = vadd.xlane.f32.xlu0 %v797_v35  ;;  %878 = vadd.xlane.f32.xlu1 %v786_v36  ;;  %v772_v35 = vmul.f32 %v3459_v19, %v704_v25 }
 0x161   : > { %844 = vadd.xlane.f32.xlu2 %v769_v38  ;;  %v541_v20 = vpop.f32.mrf.mxu2 }
 0x162   : > { %v592_v21 = vpop.f32.mrf.mxu3  ;;  %v454_v22 = vpop.f32.mrf.mxu0  ;;  %v670_v36 = vadd.f32 %v3468_v28, %v541_v20 }
 0x163   : > { %v3571_v46 = vpop.xlane.xlu0 %822  ;;  %v641_v32 = vadd.f32 %v3530_v27, %v454_v22  ;;  %v687_v34 = vadd.f32 %v3551_v4, %v592_v21 }
 0x164   : > { %5277 = vst [vmem:[#allocation19_spill] sm:$0xff] %v3571_v46  ;;  %v734_v41 = vmax.f32 %v670_v36, 0.0 }
 0x165   : > { %v705_v38 = vmax.f32 %v641_v32, 0.0  ;;  %v751_v39 = vmax.f32 %v687_v34, 0.0 }
 0x166   : > { %v802_v49 = vmul.f32 %v3459_v19, %v734_v41 }
 0x167   : > { %v819_v44 = vmul.f32 %v3459_v19, %v751_v39  ;;  %v773_v45 = vmul.f32 %v3459_v19, %v705_v38 }
 0x168   : > { %936 = vadd.xlane.f32.xlu0 %v815_v47  ;;  %902 = vadd.xlane.f32.xlu1 %v798_v48 }
 0x169   : > { %880 = vadd.xlane.f32.xlu2 %v787_v33  ;;  %v544_v56 = vpop.f32.mrf.mxu2 }
 0x16a   : > { %v595_v37 = vpop.f32.mrf.mxu3  ;;  %v457_v40 = vpop.f32.mrf.mxu0  ;;  %v671_v48 = vadd.f32 %v3468_v28, %v544_v56 }
 0x16b   : > { %v3579_v58 = vpop.xlane.xlu1 %860  ;;  %v3581_v59 = vpop.xlane.xlu0 %858  ;;  %v642_v47 = vadd.f32 %v3454_v18, %v457_v40  ;;  %v688_v50 = vadd.f32 %v3551_v4, %v595_v37 }
 0x16c   : > { %5278 = vst [vmem:[#allocation20_spill] sm:$0xff] %v3579_v58  ;;  %v3583_v60 = vpop.xlane.xlu2 %916  ;;  %v735_v51 = vmax.f32 %v671_v48, 0.0 }
 0x16d   : > { %5279 = vst [vmem:[#allocation21_spill] sm:$0xff] %v3583_v60  ;;  %v706_v33 = vmax.f32 %v642_v47, 0.0  ;;  %v752_v52 = vmax.f32 %v688_v50, 0.0 }
 0x16e   : > { %v803_v63 = vmul.f32 %v3459_v19, %v735_v51 }
 0x16f   : > { %v774_v1 = vmul.f32 %v3459_v19, %v706_v33  ;;  %v820_v5 = vmul.f32 %v3459_v19, %v752_v52 }
 0x170   : > { %938 = vadd.xlane.f32.xlu1 %v816_v61  ;;  %846 = vadd.xlane.f32.xlu0 %v770_v62 }
 0x171   : > { %904 = vadd.xlane.f32.xlu2 %v799_v3  ;;  %v547_v53 = vpop.f32.mrf.mxu2 }
 0x172   : > { %v598_v54 = vpop.f32.mrf.mxu3  ;;  %v460_v55 = vpop.f32.mrf.mxu0  ;;  %v672_v2 = vadd.f32 %v3468_v28, %v547_v53  ;;  %v5177_v53 = vlaneseq }
 0x173   : > { %v3591_v8 = vpop.xlane.xlu1 %884  ;;  %v3593_v9 = vpop.xlane.xlu0 %882  ;;  %v689_v3 = vadd.f32 %v3551_v4, %v598_v54  ;;  %v643_v0 = vadd.f32 %v3454_v18, %v460_v55 }
 0x174   : > { %v3595_v10 = vpop.xlane.xlu2 %862  ;;  %v736_v6 = vmax.f32 %v672_v2, 0.0 }
 0x175   : > { %v753_v7 = vmax.f32 %v689_v3, 0.0 }
 0x176   : > { %v804_v4 = vmul.f32 %v3459_v19, %v736_v6 }
 0x177   : > { %v821_v28 = vmul.f32 %v3459_v19, %v753_v7 }
 0x178   : > { %906 = vadd.xlane.f32.xlu0 %v800_v11  ;;  %848 = vadd.xlane.f32.xlu1 %v771_v12  ;;  %v707_v11 = vmax.f32 %v643_v0, 0.0 }
 0x179   : > { %940 = vadd.xlane.f32.xlu2 %v817_v16 }
 0x17a   : > { %v775_v16 = vmul.f32 %v3459_v19, %v707_v11 }
 0x17b   : > { %v3603_v26 = vpop.xlane.xlu0 %824  ;;  %v3605_v13 = vpop.xlane.xlu1 %826 }
 0x17c   : > { %5280 = vst [vmem:[#allocation22_spill] sm:$0xff] %v3603_v26  ;;  %v3607_v29 = vpop.xlane.xlu2 %886 }
 0x17d   : > { %5281 = vst [vmem:[#allocation23_spill] sm:$0xff] %v3605_v13 }
 0x17e   : > { %5282 = vst [vmem:[#allocation24_spill] sm:$0xff] %v3607_v29 }
 0x180   : > { %942 = vadd.xlane.f32.xlu0 %v818_v30  ;;  %908 = vadd.xlane.f32.xlu1 %v801_v31 }
 0x181   : > { %850 = vadd.xlane.f32.xlu2 %v772_v35 }
 0x183   : > { %v3615_v42 = vpop.xlane.xlu0 %918  ;;  %v3617_v43 = vpop.xlane.xlu1 %920 }
 0x184   : > { %5283 = vst [vmem:[#allocation25_spill] sm:$0xff] %v3615_v42  ;;  %v3619_v27 = vpop.xlane.xlu2 %922 }
 0x185   : > { %5284 = vst [vmem:[#allocation26_spill] sm:$0xff] %v3617_v43 }
 0x186   : > { %5285 = vst [vmem:[#allocation27_spill] sm:$0xff] %v3619_v27 }
 0x188   : > { %944 = vadd.xlane.f32.xlu1 %v819_v44  ;;  %852 = vadd.xlane.f32.xlu0 %v773_v45 }
 0x189   : > { %910 = vadd.xlane.f32.xlu2 %v802_v49 }
 0x18b   : > { %v3627_v57 = vpop.xlane.xlu0 %864  ;;  %v3629_v61 = vpop.xlane.xlu1 %828 }
 0x18c   : > { %5286 = vst [vmem:[#allocation28_spill] sm:$0xff] %v3629_v61  ;;  %v3631_v62 = vpop.xlane.xlu2 %830 }
 0x190   : > { %912 = vadd.xlane.f32.xlu0 %v803_v63  ;;  %854 = vadd.xlane.f32.xlu1 %v774_v1  ;;  %v3715_v1 = vand.u32 127, %v5177_v53 }
 0x191   : > { %946 = vadd.xlane.f32.xlu2 %v820_v5 }
 0x192   : > { %5306 = vst [vmem:[#allocation48_spill] sm:$0xff] %v3715_v1  ;;  %v3718_v2 = vadd.s32 4294967288, %v3715_v1  ;;  %v3727_v6 = vadd.s32 4294967272, %v3715_v1  ;;  %v3730_v7 = vadd.s32 4294967280, %v3715_v1  ;;  %v1120_v53 = vperm.slane %v3615_v42, %v3715_v1 }
 0x193   : > { %v3639_v12 = vpop.xlane.xlu0 %888  ;;  %v3641_v14 = vpop.xlane.xlu1 %866  ;;  %v3757_v42 = vadd.s32 4294967256, %v3715_v1 }
 0x194   : > { %5287 = vst [vmem:[#allocation29_spill] sm:$0xff] %v3639_v12  ;;  %v3643_v15 = vpop.xlane.xlu2 %832  ;;  %v1018_v5 = vperm.slane %v3603_v26, %v3718_v2  ;;  %v1121_v26 = vperm.slane %v3617_v43, %v3718_v2 }
 0x195   : > { %5307 = vst [vmem:[#allocation49_spill] sm:$0xff] %v3718_v2 }
 0x196   : > { %5310 = vst [vmem:[#allocation52_spill] sm:$0xff] %v3730_v7  ;;  %v1122_v58 = vsel %vm1019_vm0, %v1121_v26, %v1120_v53 }
 0x198   : > { %948 = vadd.xlane.f32.xlu0 %v821_v28  ;;  %914 = vadd.xlane.f32.xlu1 %v804_v4  ;;  %v1016_v28 = vperm.slane %v3571_v46, %v3715_v1  ;;  %v3737_v4 = vadd.s32 4294967240, %v3715_v1  ;;  %v1026_v46 = vperm.slane %v3629_v61, %v3727_v6 }
 0x199   : > { %856 = vadd.xlane.f32.xlu2 %v775_v16  ;;  %v1022_v16 = vperm.slane %v3605_v13, %v3730_v7  ;;  %v3754_v13 = vadd.s32 4294967264, %v3715_v1 }
 0x19b   : > { %v3648_v18 = vpop.xlane.xlu0 %924  ;;  %v3650_v17 = vpop.xlane.xlu1 %890 }
 0x19c   : > { %5288 = vst [vmem:[#allocation30_spill] sm:$0xff] %v3648_v18  ;;  %v3652_v20 = vpop.xlane.xlu2 %868  ;;  %v1125_v53 = vperm.slane %v3648_v18, %v3727_v6 }
 0x19d   : > { %5289 = vst [vmem:[#allocation31_spill] sm:$0xff] %v3650_v17 }
 0x1a3   : > { %v3654_v21 = vpop.xlane.xlu1 %926  ;;  %v3656_v22 = vpop.xlane.xlu0 %834 }
 0x1a4   : > { %5290 = vst [vmem:[#allocation32_spill] sm:$0xff] %v3654_v21  ;;  %v3658_v23 = vpop.xlane.xlu2 %892  ;;  %v1127_v26 = vperm.slane %v3654_v21, %v3754_v13 }
 0x1a5   : > { %5291 = vst [vmem:[#allocation33_spill] sm:$0xff] %v3658_v23 }
 0x1ab   : > { %v3660_v24 = vpop.xlane.xlu0 %870  ;;  %v3662_v25 = vpop.xlane.xlu1 %836 }
 0x1ac   : > { %5292 = vst [vmem:[#allocation34_spill] sm:$0xff] %v3660_v24  ;;  %v3664_v19 = vpop.xlane.xlu2 %928 }
 0x1ad   : > { %5293 = vst [vmem:[#allocation35_spill] sm:$0xff] %v3664_v19 }
 0x1b3   : > { %v3666_v30 = vpop.xlane.xlu0 %894  ;;  %v3668_v31 = vpop.xlane.xlu1 %872 }
 0x1b4   : > { %5294 = vst [vmem:[#allocation36_spill] sm:$0xff] %v3666_v30  ;;  %v3670_v32 = vpop.xlane.xlu2 %838 }
 0x1bb   : > { %v3672_v34 = vpop.xlane.xlu0 %930  ;;  %v3674_v35 = vpop.xlane.xlu1 %896 }
 0x1bc   : > { %5295 = vst [vmem:[#allocation37_spill] sm:$0xff] %v3672_v34  ;;  %v3676_v36 = vpop.xlane.xlu2 %874 }
 0x1bd   : > { %5296 = vst [vmem:[#allocation38_spill] sm:$0xff] %v3674_v35  ;;  %v1078_v21 = vperm.slane %v3676_v36, %v3730_v7 }
 0x1c3   : > { %v3678_v56 = vpop.xlane.xlu1 %932  ;;  %v3680_v37 = vpop.xlane.xlu0 %840 }
 0x1c4   : > { %v3682_v38 = vpop.xlane.xlu2 %898 }
 0x1c5   : > { %5297 = vst [vmem:[#allocation39_spill] sm:$0xff] %v3682_v38 }
 0x1cb   : > { %v3684_v39 = vpop.xlane.xlu0 %876  ;;  %v3686_v40 = vpop.xlane.xlu1 %842 }
 0x1cc   : > { %5298 = vst [vmem:[#allocation40_spill] sm:$0xff] %v3684_v39  ;;  %v3688_v41 = vpop.xlane.xlu2 %934 }
 0x1cd   : > { %5299 = vst [vmem:[#allocation41_spill] sm:$0xff] %v3688_v41 }
 0x1d3   : > { %v3690_v44 = vpop.xlane.xlu0 %900  ;;  %v3692_v45 = vpop.xlane.xlu1 %878 }
 0x1d4   : > { %5300 = vst [vmem:[#allocation42_spill] sm:$0xff] %v3690_v44  ;;  %v3694_v47 = vpop.xlane.xlu2 %844 }
 0x1db   : > { %v3696_v48 = vpop.xlane.xlu0 %936  ;;  %v3698_v49 = vpop.xlane.xlu1 %902 }
 0x1dc   : > { %5301 = vst [vmem:[#allocation43_spill] sm:$0xff] %v3696_v48  ;;  %v3700_v50 = vpop.xlane.xlu2 %880 }
 0x1dd   : > { %5302 = vst [vmem:[#allocation44_spill] sm:$0xff] %v3698_v49 }
 0x1e3   : > { %v3702_v33 = vpop.xlane.xlu1 %938  ;;  %v3704_v51 = vpop.xlane.xlu0 %846 }
 0x1e4   : > { %5303 = vst [vmem:[#allocation45_spill] sm:$0xff] %v3702_v33  ;;  %v3706_v52 = vpop.xlane.xlu2 %904 }
 0x1eb   : > { %v3708_v54 = vpop.xlane.xlu0 %906  ;;  %v3710_v55 = vpop.xlane.xlu1 %848 }
 0x1ec   : > { %5304 = vst [vmem:[#allocation46_spill] sm:$0xff] %v3708_v54  ;;  %v3712_v63 = vpop.xlane.xlu2 %940 }
 0x1ed   : > { %5305 = vst [vmem:[#allocation47_spill] sm:$0xff] %v3712_v63  ;;  %v3746_v63 = vadd.s32 4294967248, %v3715_v1 }
 0x1ef   : > { %v1038_v18 = vperm.slane %v3656_v22, %v3746_v63 }
 0x1f3   : > { %v3720_v3 = vpop.xlane.xlu1 %908  ;;  %v3732_v11 = vpop.xlane.xlu0 %942 }
 0x1f4   : > { %5308 = vst [vmem:[#allocation50_spill] sm:$0xff] %v3720_v3  ;;  %v3724_v0 = vpop.xlane.xlu2 %850  ;;  %v1034_v3 = vperm.slane %v3643_v15, %v3757_v42 }
 0x1f5   : > { %5309 = vst [vmem:[#allocation51_spill] sm:$0xff] %v3724_v0  ;;  %v1030_v0 = vperm.slane %v3631_v62, %v3754_v13 }
 0x1f6   : > { %5311 = vst [vmem:[#allocation53_spill] sm:$0xff] %v3732_v11  ;;  %v1020_v11 = vsel %vm1019_vm0, %v1018_v5, %v1016_v28  ;;  %v1123_v28 = vperm.slane %v3619_v27, %v3730_v7  ;;  %v1091_v27 = vperm.slane %v3639_v12, %v3718_v2 }
 0x1f7   : > { %v1024_v61 = vsel %vm1023_vm1, %v1022_v16, %v1020_v11  ;;  %v1093_v11 = vperm.slane %v3650_v17, %v3730_v7 }
 0x1f8   : > { %v1028_v5 = vsel %vm1027_vm2, %v1026_v46, %v1024_v61  ;;  %v1090_v46 = vperm.slane %v3607_v29, %v3715_v1  ;;  %v1124_v16 = vsel %vm1023_vm1, %v1123_v28, %v1122_v58  ;;  %v1076_v58 = vperm.slane %v3668_v31, %v3718_v2 }
 0x1f9   : > { %v1032_v43 = vsel %vm1031_vm3, %v1030_v0, %v1028_v5  ;;  %v1126_v0 = vsel %vm1027_vm2, %v1125_v53, %v1124_v16  ;;  %v1082_v16 = vperm.slane %v3692_v45, %v3754_v13  ;;  %v1129_v28 = vperm.slane %v3664_v19, %v3757_v42 }
 0x1fa   : > { %v1092_v17 = vsel %vm1019_vm0, %v1091_v27, %v1090_v46  ;;  %v1036_v61 = vsel %vm1035_vm4, %v1034_v3, %v1032_v43  ;;  %v1095_v27 = vperm.slane %v3658_v23, %v3727_v6  ;;  %v1075_v46 = vperm.slane %v3660_v24, %v3715_v1 }
 0x1fb   : > { %v3771_v54 = vpop.xlane.xlu1 %944  ;;  %v3798_v12 = vpop.xlane.xlu0 %852  ;;  %v1094_v5 = vsel %vm1023_vm1, %v1093_v11, %v1092_v17  ;;  %v1042_v43 = vperm.slane %v3662_v25, %v3737_v4  ;;  %v1080_v3 = vperm.slane %v3684_v39, %v3727_v6  ;;  %v1128_v17 = vsel %vm1031_vm3, %v1127_v26, %v1126_v0 }
 0x1fc   : > { %v3780_v60 = vpop.xlane.xlu2 %910  ;;  %v1040_v53 = vsel %vm5263_vm5, %v1038_v18, %v1036_v61  ;;  %v1097_v11 = vperm.slane %v3666_v30, %v3754_v13  ;;  %v1077_v29 = vsel %vm1019_vm0, %v1076_v58, %v1075_v46  ;;  %v1099_v23 = vperm.slane %v3674_v35, %v3757_v42 }
 0x1fd   : > { %v1084_v39 = vperm.slane %v3700_v50, %v3757_v42  ;;  %v1131_v61 = vperm.slane %v3672_v34, %v3746_v63  ;;  %v1079_v0 = vsel %vm1023_vm1, %v1078_v21, %v1077_v29  ;;  %v1101_v19 = vperm.slane %v3682_v38, %v3746_v63 }
 0x1fe   : > { %v1046_v58 = vperm.slane %v3680_v37, %v3718_v2  ;;  %v1096_v46 = vsel %vm1027_vm2, %v1095_v27, %v1094_v5  ;;  %v3846_v30 = vsel %vm1043_vm6, %v1042_v43, %v1040_v53  ;;  %v1081_v35 = vsel %vm1027_vm2, %v1080_v3, %v1079_v0 }
 0x1ff   : > { %v1048_v24 = vperm.slane %v3686_v40, %v3730_v7  ;;  %v1098_v34 = vsel %vm1031_vm3, %v1097_v11, %v1096_v46  ;;  %v1045_v29 = vperm.slane %v3670_v32, %v3715_v1  ;;  %v1083_v21 = vsel %vm1031_vm3, %v1082_v16, %v1081_v35 }
 0x200   : > { %v1050_v38 = vperm.slane %v3694_v47, %v3727_v6  ;;  %v1130_v5 = vsel %vm1035_vm4, %v1129_v28, %v1128_v17  ;;  %v1100_v27 = vsel %vm1035_vm4, %v1099_v23, %v1098_v34  ;;  %v1136_v43 = vperm.slane %v3696_v48, %v3718_v2  ;;  %v5317_v48 = vld [vmem:[#allocation50_spill] sm:$0xff] }
 0x201   : > { %v1085_v3 = vsel %vm1035_vm4, %v1084_v39, %v1083_v21  ;;  %v3863_v53 = vsel %vm5263_vm5, %v1131_v61, %v1130_v5  ;;  %v1102_v35 = vsel %vm5263_vm5, %v1101_v19, %v1100_v27  ;;  %v1047_v16 = vsel %vm1019_vm0, %v1046_v58, %v1045_v29  ;;  %v5314_v5 = vld [vmem:[#allocation46_spill] sm:$0xff] }
 0x202   : > { %v1135_v23 = vperm.slane %v3688_v41, %v3715_v1  ;;  %v1049_v34 = vsel %vm1023_vm1, %v1048_v24, %v1047_v16  ;;  %v1103_v39 = vperm.slane %v3690_v44, %v3737_v4  ;;  %v1138_v28 = vperm.slane %v3702_v33, %v3730_v7 }
 0x203   : > { %v3835_v18 = vpop.xlane.xlu1 %854  ;;  %v3869_v0 = vpop.xlane.xlu0 %912  ;;  %v1051_v17 = vsel %vm1027_vm2, %v1050_v38, %v1049_v34  ;;  %v5313_v19 = vperm.slane %v3593_v9, %v3746_v63  ;;  %v1106_v58 = vperm.slane %v3706_v52, %v3718_v2  ;;  %v1052_v46 = vperm.slane %v3704_v51, %v3754_v13 }
 0x204   : > { %v3833_v26 = vpop.xlane.xlu2 %946  ;;  %5312 = vst [vmem:[#allocation54_spill] sm:$0xff] %v3869_v0  ;;  %v1137_v24 = vsel %vm1019_vm0, %v1136_v43, %v1135_v23  ;;  %v1105_v29 = vperm.slane %v3698_v49, %v3715_v1  ;;  %v1054_v21 = vperm.slane %v3710_v55, %v3757_v42  ;;  %v1108_v27 = vperm.slane %v5314_v5, %v3730_v7 }
 0x205   : > { %v1087_v61 = vsel %vm5263_vm5, %v5313_v19, %v1085_v3  ;;  %v5315_v3 = vld [vmem:[#allocation51_spill] sm:$0xff]  ;;  %v1060_v34 = vperm.slane %v3835_v18, %v3715_v1  ;;  %v5316_v23 = vperm.slane %v3591_v8, %v3737_v4  ;;  %v1139_v11 = vsel %vm1023_vm1, %v1138_v28, %v1137_v24 }
 0x206   : > { %v1056_v16 = vperm.slane %v5315_v3, %v3746_v63  ;;  %v1110_v33 = vperm.slane %v5317_v48, %v3727_v6  ;;  %v1058_v41 = vperm.slane %v3798_v12, %v3737_v4  ;;  %v1107_v1 = vsel %vm1019_vm0, %v1106_v58, %v1105_v29 }
 0x207   : > { %v1089_v19 = vsel %vm1043_vm6, %v5316_v23, %v1087_v61  ;;  %v1053_v44 = vsel %vm1031_vm3, %v1052_v46, %v1051_v17  ;;  %v5318_v61 = vld [vmem:[#allocation47_spill] sm:$0xff]  ;;  %v1114_v23 = vperm.slane %v3869_v0, %v3757_v42  ;;  %v5319_v48 = vperm.slane %v3581_v59, %v3730_v7 }
 0x208   : > { %v1140_v28 = vperm.slane %v5318_v61, %v3727_v6  ;;  %v1055_v24 = vsel %vm1035_vm4, %v1054_v21, %v1053_v44  ;;  %v1109_v17 = vsel %vm1023_vm1, %v1108_v27, %v1107_v1  ;;  %v5322_v21 = vld [vmem:[#allocation53_spill] sm:$0xff] }
 0x209   : > { %v1057_v46 = vsel %vm5263_vm5, %v1056_v16, %v1055_v24  ;;  %v1142_v61 = vperm.slane %v5322_v21, %v3754_v13  ;;  %v1111_v0 = vsel %vm1027_vm2, %v1110_v33, %v1109_v17  ;;  %v5324_v16 = vperm.slane %v3627_v57, %v3757_v42 }
 0x20a   : > { %v1059_v7 = vsel %vm1043_vm6, %v1058_v41, %v1057_v46  ;;  %v1144_v33 = vperm.slane %v3771_v54, %v3757_v42 }
 0x20b   : > { %v3911_v5 = vpop.xlane.xlu1 %914  ;;  %v3944_v27 = vpop.xlane.xlu0 %948 }
 0x20c   : > { %v3892_v38 = vpop.xlane.xlu2 %856  ;;  %v1116_v29 = vperm.slane %v3911_v5, %v3746_v63 }
 0x20d   : > { %v1061_v43 = vperm.slane %v3892_v38, %v3718_v2  ;;  %v1112_v2 = vperm.slane %v3780_v60, %v3754_v13 }
 0x20f   : > { %v1062_v49 = vsel %vm1019_vm0, %v1061_v43, %v1060_v34  ;;  %v5320_v34 = vld [vmem:[#allocation20_spill] sm:$0xff]  ;;  %v1113_v1 = vsel %vm1031_vm3, %v1112_v2, %v1111_v0  ;;  %v1151_v2 = vsel %vm1150_vm7, %v1059_v7, %v3846_v30  ;;  %v1146_v0 = vperm.slane %v3833_v26, %v3746_v63 }
 0x210   : > { %v1064_v58 = vsel %vm1023_vm1, %v5319_v48, %v1062_v49  ;;  %v5321_v43 = vperm.slane %v5320_v34, %v3727_v6  ;;  %v5323_v48 = vperm.slane %v3595_v10, %v3754_v13  ;;  %v1115_v41 = vsel %vm1035_vm4, %v1114_v23, %v1113_v1 }
 0x211   : > { %v1117_v46 = vsel %vm5263_vm5, %v1116_v29, %v1115_v41  ;;  %v1141_v23 = vsel %vm1027_vm2, %v1140_v28, %v1139_v11  ;;  %v1104_v30 = vsel %vm1043_vm6, %v1103_v39, %v1102_v35  ;;  %v5329_v41 = vperm.slane %v3678_v56, %v3737_v4 }
 0x212   : > { %v1066_v44 = vsel %vm1027_vm2, %v5321_v43, %v1064_v58  ;;  %v5325_v58 = vperm.slane %v3641_v14, %v3746_v63  ;;  %v5326_v43 = vperm.slane %v3652_v20, %v3737_v4  ;;  %v1143_v7 = vsel %vm1031_vm3, %v1142_v61, %v1141_v23 }
 0x213   : > { %v1068_v49 = vsel %vm1031_vm3, %v5323_v48, %v1066_v44  ;;  %v1148_v48 = vperm.slane %v3944_v27, %v3737_v4  ;;  %v1145_v29 = vsel %vm1035_vm4, %v1144_v33, %v1143_v7  ;;  %v1134_v35 = vsel %vm1043_vm6, %v5329_v41, %v3863_v53 }
 0x214   : > { %v1070_v24 = vsel %vm1035_vm4, %v5324_v16, %v1068_v49  ;;  %v5327_v16 = vld [vmem:[#allocation21_spill] sm:$0xff]  ;;  %v1147_v39 = vsel %vm5263_vm5, %v1146_v0, %v1145_v29  ;;  %v5330_v0 = vld [vmem:[#allocation23_spill] sm:$0xff] }
 0x215   : > { %v1072_v17 = vsel %vm5263_vm5, %v5325_v58, %v1070_v24  ;;  %v5328_v24 = vperm.slane %v5327_v16, %v3737_v4  ;;  %v1149_v61 = vsel %vm1043_vm6, %v1148_v48, %v1147_v39  ;;  %v5332_v48 = vld [vmem:[#allocation19_spill] sm:$0xff] }
 0x216   : > { %v1074_v44 = vsel %vm1043_vm6, %v5326_v43, %v1072_v17 }
 0x217   : > { %v1153_v49 = vsel %vm1152_vm8, %v1074_v44, %v1151_v2  ;;  %v1119_v11 = vsel %vm1043_vm6, %v5328_v24, %v1117_v46  ;;  %v3206_v2 = vmov 0   ;;  %v5331_v44 = vld [vmem:[#allocation22_spill] sm:$0xff] }
 0x218   : > { %v1155_v1 = vsel %vm5262_vm9, %v1089_v19, %v1153_v49  ;;  %2873 = vset.pattern.permute.xlu1 %v3206_v2  ;;  %2872 = vset.pattern.permute.xlu0 %v3206_v2 }
 0x219   : > { %v1157_v28 = vsel %vm5258_vm10, %v1104_v30, %v1155_v1  ;;  %2871 = vset.pattern.permute.xlu2 %v3206_v2 }
 0x21a   : > { %v1159_v19 = vsel %vm5257_vm11, %v1119_v11, %v1157_v28  ;;  %v5333_v28 = vld [vmem:[#allocation28_spill] sm:$0xff] }
 0x21b   : > { %v1161_v33 = vsel %vm5259_vm12, %v1134_v35, %v1159_v19 }
 0x21c   : > { %v1163_v58 = vsel %vm5261_vm13, %v1149_v61, %v1161_v33 }
 0x21d   : > { %v1166_v17 = vsel %vm5260_vm14, %v1163_v58, -inf }
 0x21e   : > { %1167 = vmax.xlane.f32.xlu1 %v1166_v17 }
 0x291   : > { %v3990_v46 = vpop.xlane.xlu1 %1167 }
 0x292   : > { %v1170_v53 = vperm.slane %v3990_v46, 0  ;;  %v3997_v30 = vperm.slane %v3990_v46, 1 }
 0x294   : > { %v1188_v43 = vsub.f32 %v5330_v0, %v1170_v53  ;;  %v1187_v23 = vsub.f32 %v5331_v44, %v1170_v53  ;;  %v1186_v49 = vsub.f32 %v5332_v48, %v1170_v53  ;;  %v1191_v24 = vsub.f32 %v3643_v15, %v1170_v53 }
 0x295   : > { %v1194_v11 = vsub.f32 %v3670_v32, %v3997_v30  ;;  %v1189_v41 = vsub.f32 %v5333_v28, %v1170_v53  ;;  %v1193_v15 = vsub.f32 %v3662_v25, %v1170_v53  ;;  %v1197_v32 = vsub.f32 %v3694_v47, %v3997_v30 }
 0x296   : > { %v1254_v7 = vmul.f32 1.442695, %v1188_v43  ;;  %v1252_v1 = vmul.f32 1.442695, %v1187_v23  ;;  %v1250_v29 = vmul.f32 1.442695, %v1186_v49  ;;  %v1190_v17 = vsub.f32 %v3631_v62, %v1170_v53 }
 0x297   : > { %v1260_v35 = vmul.f32 1.442695, %v1191_v24  ;;  %v1266_v39 = vmul.f32 1.442695, %v1194_v11  ;;  %v1256_v61 = vmul.f32 1.442695, %v1189_v41  ;;  %v1196_v25 = vsub.f32 %v3686_v40, %v3997_v30 }
 0x298   : > { %2875 = vpow2.f32 %v1254_v7  ;;  %v1264_v2 = vmul.f32 1.442695, %v1193_v15  ;;  %v1272_v0 = vmul.f32 1.442695, %v1197_v32  ;;  %v1258_v44 = vmul.f32 1.442695, %v1190_v17 }
 0x299   : > { %2877 = vpow2.f32 %v1252_v1  ;;  %v1200_v62 = vsub.f32 %v5315_v3, %v3997_v30  ;;  %v1192_v47 = vsub.f32 %v3656_v22, %v1170_v53  ;;  %v1270_v49 = vmul.f32 1.442695, %v1196_v25 }
 0x29a   : > { %2879 = vpow2.f32 %v1250_v29  ;;  %v4031_v7 = vperm.slane %v3990_v46, 2  ;;  %v1199_v22 = vsub.f32 %v3710_v55, %v3997_v30  ;;  %v1195_v53 = vsub.f32 %v3680_v37, %v3997_v30 }
 0x29b   : > { %2881 = vpow2.f32 %v1260_v35  ;;  %v1278_v1 = vmul.f32 1.442695, %v1200_v62  ;;  %v1262_v24 = vmul.f32 1.442695, %v1192_v47  ;;  %v1198_v15 = vsub.f32 %v3704_v51, %v3997_v30 }
 0x29c   : > { %2883 = vpow2.f32 %v1266_v39  ;;  %v1203_v3 = vsub.f32 %v3892_v38, %v4031_v7  ;;  %v1276_v28 = vmul.f32 1.442695, %v1199_v22  ;;  %v1268_v39 = vmul.f32 1.442695, %v1195_v53 }
 0x29d   : > { %2885 = vpow2.f32 %v1256_v61  ;;  %v1202_v38 = vsub.f32 %v3835_v18, %v4031_v7  ;;  %v1206_v37 = vsub.f32 %v3595_v10, %v4031_v7  ;;  %v1205_v10 = vsub.f32 %v5320_v34, %v4031_v7 }
 0x29e   : > { %v4003_v19 = vpop.eup %2875  ;;  %2887 = vpow2.f32 %v1264_v2  ;;  %v1284_v41 = vmul.f32 1.442695, %v1203_v3  ;;  %v1209_v51 = vsub.f32 %v3652_v20, %v4031_v7  ;;  %v1201_v25 = vsub.f32 %v3798_v12, %v3997_v30 }
 0x29f   : > { %v4005_v33 = vpop.eup %2877  ;;  %1449 = vperm.xlu1 %2873, %v4003_v19   ;;  %2889 = vpow2.f32 %v1272_v0  ;;  %v1282_v32 = vmul.f32 1.442695, %v1202_v38  ;;  %v1290_v17 = vmul.f32 1.442695, %v1206_v37  ;;  %v1274_v0 = vmul.f32 1.442695, %v1198_v15 }
 0x2a0   : > { %v4008_v58 = vpop.eup %2879  ;;  %1446 = vperm.xlu0 %2872, %v4005_v33   ;;  %2891 = vpow2.f32 %v1258_v44  ;;  %v1288_v62 = vmul.f32 1.442695, %v1205_v10  ;;  %v4079_v47 = vperm.slane %v3990_v46, 3  ;;  %v1208_v12 = vsub.f32 %v3641_v14, %v4031_v7 }
 0x2a1   : > { %1443 = vperm.xlu2 %2871, %v4008_v58   ;;  %v4016_v43 = vpop.eup %2881  ;;  %2893 = vpow2.f32 %v1270_v49  ;;  %v1296_v49 = vmul.f32 1.442695, %v1209_v51  ;;  %v1204_v30 = vsub.f32 %v3581_v59, %v4031_v7  ;;  %v1207_v38 = vsub.f32 %v3627_v57, %v4031_v7  ;;  %v5337_v51 = vld [vmem:[#allocation34_spill] sm:$0xff] }
 0x2a2   : > { %v4018_v23 = vpop.eup %2883  ;;  %2895 = vpow2.f32 %v1278_v1  ;;  %v1212_v20 = vsub.f32 %v3676_v36, %v4079_v47  ;;  %v1294_v3 = vmul.f32 1.442695, %v1208_v12  ;;  %v1211_v36 = vsub.f32 %v3668_v31, %v4079_v47 }
 0x2a3   : > { %v4021_v48 = vpop.eup %2885  ;;  %2897 = vpow2.f32 %v1262_v24  ;;  %v1280_v24 = vmul.f32 1.442695, %v1201_v25  ;;  %v1215_v59 = vsub.f32 %v3700_v50, %v4079_v47  ;;  %v4112_v15 = vperm.slane %v3990_v46, 4  ;;  %v5336_v50 = vld [vmem:[#allocation24_spill] sm:$0xff] }
 0x2a4   : > { %v4033_v29 = vpop.eup %2887  ;;  %2899 = vpow2.f32 %v1276_v28  ;;  %v1302_v53 = vmul.f32 1.442695, %v1212_v20  ;;  %v1300_v37 = vmul.f32 1.442695, %v1211_v36  ;;  %v1214_v57 = vsub.f32 %v3692_v45, %v4079_v47 }
 0x2a5   : > { %v4035_v11 = vpop.eup %2889  ;;  %2901 = vpow2.f32 %v1284_v41  ;;  %v1286_v41 = vmul.f32 1.442695, %v1204_v30  ;;  %v1218_v7 = vsub.f32 %v5336_v50, %v4112_v15  ;;  %v1210_v25 = vsub.f32 %v5337_v51, %v4079_v47 }
 0x2a6   : > { %v4038_v40 = vpop.eup %2891  ;;  %2903 = vpow2.f32 %v1268_v39  ;;  %v1217_v30 = vsub.f32 %v3591_v8, %v4079_v47 }
 0x2a7   : > { %1458 = vperm.xlu1 %2873, %v4016_v43   ;;  %v4048_v35 = vpop.eup %2893  ;;  %2905 = vpow2.f32 %v1282_v32  ;;  %v1308_v32 = vmul.f32 1.442695, %v1215_v59  ;;  %v1298_v12 = vmul.f32 1.442695, %v1210_v25  ;;  %v1216_v25 = vsub.f32 %v3593_v9, %v4079_v47 }
 0x2a8   : > { %1467 = vperm.xlu0 %2872, %v4018_v23   ;;  %v4050_v61 = vpop.eup %2895  ;;  %2907 = vpow2.f32 %v1290_v17  ;;  %v1312_v59 = vmul.f32 1.442695, %v1217_v30 }
 0x2a9   : > { %1452 = vperm.xlu2 %2871, %v4021_v48   ;;  %v4053_v55 = vpop.eup %2897  ;;  %2909 = vpow2.f32 %v1274_v0  ;;  %v1292_v0 = vmul.f32 1.442695, %v1207_v38 }
 0x2aa   : > { %v4063_v2 = vpop.eup %2899  ;;  %2911 = vpow2.f32 %v1288_v62  ;;  %v1306_v62 = vmul.f32 1.442695, %v1214_v57  ;;  %v5344_v57 = vld [vmem:[#allocation31_spill] sm:$0xff] }
 0x2ab   : > { %v4065_v44 = vpop.eup %2901  ;;  %2913 = vpow2.f32 %v1296_v49  ;;  %v1314_v49 = vmul.f32 1.442695, %v1218_v7  ;;  %v1220_v50 = vsub.f32 %v5344_v57, %v4112_v15  ;;  %v5345_v7 = vld [vmem:[#allocation39_spill] sm:$0xff] }
 0x2ac   : > { %v4068_v18 = vpop.eup %2903  ;;  %2915 = vpow2.f32 %v1280_v24  ;;  %v1224_v51 = vsub.f32 %v5345_v7, %v4112_v15 }
 0x2ad   : > { %v4081_v1 = vpop.eup %2905  ;;  %2917 = vpow2.f32 %v1294_v3  ;;  %v5340_v3 = vld [vmem:[#allocation33_spill] sm:$0xff] }
 0x2ae   : > { %v4083_v22 = vpop.eup %2907  ;;  %2919 = vpow2.f32 %v1302_v53  ;;  %v1221_v53 = vsub.f32 %v5340_v3, %v4112_v15  ;;  %v1310_v3 = vmul.f32 1.442695, %v1216_v25 }
 0x2af   : > { %1464 = vperm.xlu1 %2873, %v4033_v29   ;;  %v4086_v34 = vpop.eup %2909  ;;  %2921 = vpow2.f32 %v1286_v41  ;;  %v5341_v41 = vld [vmem:[#allocation40_spill] sm:$0xff] }
 0x2b0   : > { %1476 = vperm.xlu0 %2872, %v4035_v11   ;;  %v4096_v28 = vpop.eup %2911  ;;  %2923 = vpow2.f32 %v1300_v37  ;;  %v1213_v36 = vsub.f32 %v5341_v41, %v4079_v47  ;;  %v1320_v38 = vmul.f32 1.442695, %v1221_v53 }
 0x2b1   : > { %1455 = vperm.xlu2 %2871, %v4038_v40   ;;  %v4098_v39 = vpop.eup %2913  ;;  %2925 = vpow2.f32 %v1308_v32 }
 0x2b2   : > { %v4101_v14 = vpop.eup %2915  ;;  %2927 = vpow2.f32 %v1292_v0  ;;  %v1304_v32 = vmul.f32 1.442695, %v1213_v36  ;;  %v5349_v36 = vld [vmem:[#allocation38_spill] sm:$0xff] }
 0x2b3   : > { %v4114_v17 = vpop.eup %2917  ;;  %2929 = vpow2.f32 %v1306_v62  ;;  %v1318_v62 = vmul.f32 1.442695, %v1220_v50  ;;  %v1223_v9 = vsub.f32 %v5349_v36, %v4112_v15 }
 0x2b4   : > { %5334 = vst [vmem:[#allocation51_spill] sm:$0xff] %v4114_v17  ;;  %v4116_v10 = vpop.eup %2919  ;;  %2931 = vpow2.f32 %v1314_v49  ;;  %v4160_v49 = vperm.slane %v3990_v46, 5 }
 0x2b5   : > { %v4119_v31 = vpop.eup %2921  ;;  %2933 = vpow2.f32 %v1298_v12  ;;  %v1326_v12 = vmul.f32 1.442695, %v1224_v51 }
 0x2b6   : > { %5335 = vst [vmem:[#allocation20_spill] sm:$0xff] %v4119_v31  ;;  %v4129_v24 = vpop.eup %2923  ;;  %2935 = vpow2.f32 %v1312_v59  ;;  %v1227_v47 = vsub.f32 %v3706_v52, %v4160_v49  ;;  %v5350_v59 = vld [vmem:[#allocation29_spill] sm:$0xff]  ;;  %v5354_v52 = vld [vmem:[#allocation44_spill] sm:$0xff] }
 0x2b7   : > { %1473 = vperm.xlu1 %2873, %v4048_v35   ;;  %5338 = vst [vmem:[#allocation53_spill] sm:$0xff] %v4129_v24  ;;  %v4131_v20 = vpop.eup %2925  ;;  %2937 = vpow2.f32 %v1320_v38  ;;  %v1219_v38 = vsub.f32 %v5350_v59, %v4112_v15 }
 0x2b8   : > { %1485 = vperm.xlu0 %2872, %v4050_v61   ;;  %v4134_v45 = vpop.eup %2927  ;;  %2939 = vpow2.f32 %v1304_v32  ;;  %v1324_v32 = vmul.f32 1.442695, %v1223_v9  ;;  %v1332_v57 = vmul.f32 1.442695, %v1227_v47 }
 0x2b9   : > { %1461 = vperm.xlu2 %2871, %v4053_v55   ;;  %5339 = vst [vmem:[#allocation21_spill] sm:$0xff] %v4134_v45  ;;  %v4144_v37 = vpop.eup %2929  ;;  %2941 = vpow2.f32 %v1318_v62  ;;  %v1316_v7 = vmul.f32 1.442695, %v1219_v38  ;;  %v1226_v62 = vsub.f32 %v5354_v52, %v4160_v49 }
 0x2ba   : > { %5342 = vst [vmem:[#allocation23_spill] sm:$0xff] %v4144_v37  ;;  %v4146_v0 = vpop.eup %2931  ;;  %2943 = vpow2.f32 %v1326_v12  ;;  %v1230_v12 = vsub.f32 %v3780_v60, %v4160_v49  ;;  %v5359_v60 = vld [vmem:[#allocation50_spill] sm:$0xff] }
 0x2bb   : > { %v4149_v8 = vpop.eup %2933  ;;  %2945 = vpow2.f32 %v1310_v3  ;;  %v5355_v3 = vld [vmem:[#allocation36_spill] sm:$0xff]  ;;  %v1330_v47 = vmul.f32 1.442695, %v1226_v62  ;;  %v5360_v62 = vld [vmem:[#allocation42_spill] sm:$0xff] }
 0x2bc   : > { %5343 = vst [vmem:[#allocation22_spill] sm:$0xff] %v4149_v8  ;;  %v4162_v30 = vpop.eup %2935  ;;  %2947 = vpow2.f32 %v1324_v32  ;;  %v1222_v36 = vsub.f32 %v5355_v3, %v4112_v15  ;;  %v1338_v59 = vmul.f32 1.442695, %v1230_v12  ;;  %v1225_v12 = vsub.f32 %v5360_v62, %v4112_v15  ;;  %v5363_v15 = vld [vmem:[#allocation27_spill] sm:$0xff] }
 0x2bd   : > { %5346 = vst [vmem:[#allocation19_spill] sm:$0xff] %v4162_v30  ;;  %v4164_v53 = vpop.eup %2937  ;;  %2949 = vpow2.f32 %v1332_v57  ;;  %v1229_v57 = vsub.f32 %v5359_v60, %v4160_v49 }
 0x2be   : > { %5347 = vst [vmem:[#allocation28_spill] sm:$0xff] %v4164_v53  ;;  %v4167_v41 = vpop.eup %2939  ;;  %2951 = vpow2.f32 %v1316_v7  ;;  %v1233_v7 = vsub.f32 %v5327_v16, %v4160_v49  ;;  %v1232_v16 = vsub.f32 %v3911_v5, %v4160_v49 }
 0x2bf   : > { %1482 = vperm.xlu1 %2873, %v4063_v2   ;;  %5348 = vst [vmem:[#allocation24_spill] sm:$0xff] %v4167_v41  ;;  %v4177_v50 = vpop.eup %2941  ;;  %2953 = vpow2.f32 %v1330_v47 }
 0x2c0   : > { %1494 = vperm.xlu0 %2872, %v4065_v44   ;;  %5351 = vst [vmem:[#allocation34_spill] sm:$0xff] %v4177_v50  ;;  %v4179_v51 = vpop.eup %2943  ;;  %2955 = vpow2.f32 %v1338_v59 }
 0x2c1   : > { %1470 = vperm.xlu2 %2871, %v4068_v18   ;;  %5352 = vst [vmem:[#allocation33_spill] sm:$0xff] %v4179_v51  ;;  %v4182_v25 = vpop.eup %2945 }
 0x2c2   : > { %5353 = vst [vmem:[#allocation40_spill] sm:$0xff] %v4182_v25  ;;  %v4192_v38 = vpop.eup %2947 }
 0x2c3   : > { %5356 = vst [vmem:[#allocation31_spill] sm:$0xff] %v4192_v38  ;;  %v4194_v32 = vpop.eup %2949 }
 0x2c4   : > { %5357 = vst [vmem:[#allocation39_spill] sm:$0xff] %v4194_v32  ;;  %v4197_v52 = vpop.eup %2951 }
 0x2c5   : > { %5358 = vst [vmem:[#allocation38_spill] sm:$0xff] %v4197_v52  ;;  %v4210_v47 = vpop.eup %2953 }
 0x2c6   : > { %v4212_v60 = vpop.eup %2955 }
 0x2c7   : > { %1491 = vperm.xlu1 %2873, %v4081_v1   ;;  %5361 = vst [vmem:[#allocation29_spill] sm:$0xff] %v4212_v60 }
 0x2c8   : > { %1503 = vperm.xlu0 %2872, %v4083_v22  }
 0x2c9   : > { %1479 = vperm.xlu2 %2871, %v4086_v34  }
 0x2cf   : > { %1500 = vperm.xlu1 %2873, %v4096_v28  }
 0x2d0   : > { %1512 = vperm.xlu0 %2872, %v4098_v39  }
 0x2d1   : > { %1488 = vperm.xlu2 %2871, %v4101_v14  }
 0x2d7   : > { %1509 = vperm.xlu1 %2873, %v4114_v17  }
 0x2d8   : > { %1521 = vperm.xlu0 %2872, %v4116_v10  }
 0x2d9   : > { %1497 = vperm.xlu2 %2871, %v4119_v31  }
 0x2df   : > { %1518 = vperm.xlu1 %2873, %v4129_v24  }
 0x2e0   : > { %1530 = vperm.xlu0 %2872, %v4131_v20  }
 0x2e1   : > { %1506 = vperm.xlu2 %2871, %v4134_v45  }
 0x2e7   : > { %1527 = vperm.xlu1 %2873, %v4144_v37   ;;  %v5372_v37 = vld [vmem:[#allocation48_spill] sm:$0xff] }
 0x2e8   : > { %1539 = vperm.xlu0 %2872, %v4146_v0  }
 0x2e9   : > { %1515 = vperm.xlu2 %2871, %v4149_v8  }
 0x2ef   : > { %1536 = vperm.xlu1 %2873, %v4162_v30  }
 0x2f0   : > { %1548 = vperm.xlu0 %2872, %v4164_v53   ;;  %v1322_v53 = vmul.f32 1.442695, %v1222_v36  ;;  %v1336_v36 = vmul.f32 1.442695, %v1229_v57  ;;  %v5364_v57 = vld [vmem:[#allocation46_spill] sm:$0xff] }
 0x2f1   : > { %1524 = vperm.xlu2 %2871, %v4167_v41  }
 0x2f2   : > { %2957 = vpow2.f32 %v1322_v53 }
 0x2f3   : > { %2959 = vpow2.f32 %v1336_v36 }
 0x2f7   : > { %1545 = vperm.xlu1 %2873, %v4177_v50   ;;  %v1328_v50 = vmul.f32 1.442695, %v1225_v12  ;;  %v1342_v12 = vmul.f32 1.442695, %v1232_v16  ;;  %v5369_v16 = vld [vmem:[#allocation35_spill] sm:$0xff] }
 0x2f8   : > { %1557 = vperm.xlu0 %2872, %v4179_v51   ;;  %v4215_v59 = vpop.eup %2957 }
 0x2f9   : > { %1533 = vperm.xlu2 %2871, %v4182_v25   ;;  %5362 = vst [vmem:[#allocation44_spill] sm:$0xff] %v4215_v59  ;;  %v4225_v25 = vpop.eup %2959 }
 0x2fa   : > { %5365 = vst [vmem:[#allocation36_spill] sm:$0xff] %v4225_v25 }
 0x2fb   : > { %v1444_v9 = vpop.permute.xlu2 %1443 }
 0x2ff   : > { %1554 = vperm.xlu1 %2873, %v4192_v38   ;;  %v4208_v38 = vperm.slane %v3990_v46, 6 }
 0x300   : > { %1566 = vperm.xlu0 %2872, %v4194_v32   ;;  %v1344_v32 = vmul.f32 1.442695, %v1233_v7  ;;  %v1228_v7 = vsub.f32 %v5364_v57, %v4160_v49  ;;  %v5370_v57 = vld [vmem:[#allocation52_spill] sm:$0xff] }
 0x301   : > { %1542 = vperm.xlu2 %2871, %v4197_v52   ;;  %v1236_v53 = vsub.f32 %v5363_v15, %v4208_v38 }
 0x302   : > { %2961 = vpow2.f32 %v1344_v32  ;;  %v1334_v30 = vmul.f32 1.442695, %v1228_v7 }
 0x303   : > { %v1453_v3 = vpop.permute.xlu2 %1452  ;;  %2963 = vpow2.f32 %v1328_v50  ;;  %v1350_v52 = vmul.f32 1.442695, %v1236_v53  ;;  %v5368_v50 = vld [vmem:[#allocation26_spill] sm:$0xff]  ;;  %v1239_v53 = vsub.f32 %v5369_v16, %v4208_v38 }
 0x304   : > { %2965 = vpow2.f32 %v1342_v12  ;;  %v1235_v32 = vsub.f32 %v5368_v50, %v4208_v38  ;;  %v5373_v12 = vld [vmem:[#allocation49_spill] sm:$0xff] }
 0x305   : > { %2967 = vpow2.f32 %v1350_v52  ;;  %v1639_v52 = vperm.slane %v1453_v3, %v3727_v6  ;;  %v1356_v24 = vmul.f32 1.442695, %v1239_v53 }
 0x306   : > { %2969 = vpow2.f32 %v1334_v30  ;;  %v1348_v50 = vmul.f32 1.442695, %v1235_v32 }
 0x307   : > { %1563 = vperm.xlu1 %2873, %v4210_v47  }
 0x308   : > { %1575 = vperm.xlu0 %2872, %v4212_v60   ;;  %v4227_v36 = vpop.eup %2961  ;;  %2971 = vpow2.f32 %v1348_v50 }
 0x309   : > { %1551 = vperm.xlu2 %2871, %v4215_v59   ;;  %5366 = vst [vmem:[#allocation50_spill] sm:$0xff] %v4227_v36  ;;  %v4230_v5 = vpop.eup %2963  ;;  %2973 = vpow2.f32 %v1356_v24 }
 0x30a   : > { %5367 = vst [vmem:[#allocation42_spill] sm:$0xff] %v4230_v5 }
 0x30b   : > { %v1456_v62 = vpop.permute.xlu2 %1455 }
 0x30c   : > { %v1641_v30 = vperm.slane %v1456_v62, %v3754_v13 }
 0x30f   : > { %1572 = vperm.xlu1 %2873, %v4225_v25   ;;  %v5371_v25 = vld [vmem:[#allocation54_spill] sm:$0xff] }
 0x310   : > { %1584 = vperm.xlu0 %2872, %v4227_v36   ;;  %v1231_v41 = vsub.f32 %v5371_v25, %v4160_v49  ;;  %v1634_v36 = vperm.slane %v1444_v9, %v5372_v37 }
 0x311   : > { %1560 = vperm.xlu2 %2871, %v4230_v5   ;;  %v1450_v15 = vpop.permute.xlu1 %1449  ;;  %v4244_v5 = vperm.slane %v3990_v46, 7 }
 0x312   : > { %v1637_v7 = vperm.slane %v1450_v15, %v5370_v57  ;;  %v1447_v51 = vpop.permute.xlu0 %1446  ;;  %v4248_v15 = vpop.eup %2965  ;;  %v1340_v25 = vmul.f32 1.442695, %v1231_v41  ;;  %v5377_v41 = vld [vmem:[#allocation41_spill] sm:$0xff] }
 0x313   : > { %v1635_v60 = vperm.slane %v1447_v51, %v5373_v12  ;;  %v1462_v8 = vpop.permute.xlu2 %1461  ;;  %5374 = vst [vmem:[#allocation27_spill] sm:$0xff] %v4248_v15  ;;  %v4252_v9 = vpop.eup %2967  ;;  %v1242_v32 = vsub.f32 %v5377_v41, %v4244_v5 }
 0x314   : > { %5375 = vst [vmem:[#allocation46_spill] sm:$0xff] %v4252_v9  ;;  %v4256_v46 = vpop.eup %2969  ;;  %2975 = vpow2.f32 %v1340_v25 }
 0x315   : > { %v1636_v16 = vsel %vm1019_vm0, %v1635_v60, %v1634_v36  ;;  %v5376_v60 = vld [vmem:[#allocation32_spill] sm:$0xff]  ;;  %v1362_v41 = vmul.f32 1.442695, %v1242_v32  ;;  %v5382_v32 = vld [vmem:[#allocation47_spill] sm:$0xff] }
 0x316   : > { %v1638_v49 = vsel %vm1023_vm1, %v1637_v7, %v1636_v16  ;;  %v1238_v36 = vsub.f32 %v5376_v60, %v4208_v38 }
 0x317   : > { %1581 = vperm.xlu1 %2873, %v4248_v15   ;;  %v1640_v51 = vsel %vm1027_vm2, %v1639_v52, %v1638_v49  ;;  %v5378_v52 = vld [vmem:[#allocation25_spill] sm:$0xff] }
 0x318   : > { %1593 = vperm.xlu0 %2872, %v4252_v9   ;;  %v1642_v3 = vsel %vm1031_vm3, %v1641_v30, %v1640_v51  ;;  %v1234_v16 = vsub.f32 %v5378_v52, %v4208_v38  ;;  %v1645_v30 = vperm.slane %v1462_v8, %v3746_v63  ;;  %v1354_v24 = vmul.f32 1.442695, %v1238_v36  ;;  %v4273_v9 = vpop.eup %2971 }
 0x319   : > { %1569 = vperm.xlu2 %2871, %v4256_v46   ;;  %v1459_v62 = vpop.permute.xlu1 %1458  ;;  %5379 = vst [vmem:[#allocation26_spill] sm:$0xff] %v4273_v9  ;;  %v4276_v45 = vpop.eup %2973 }
 0x31a   : > { %v1643_v53 = vperm.slane %v1459_v62, %v3757_v42  ;;  %v1468_v7 = vpop.permute.xlu0 %1467  ;;  %v1346_v62 = vmul.f32 1.442695, %v1234_v16  ;;  %5380 = vst [vmem:[#allocation35_spill] sm:$0xff] %v4276_v45  ;;  %v4279_v8 = vpop.eup %2975  ;;  %2977 = vpow2.f32 %v1354_v24  ;;  %v5383_v16 = vld [vmem:[#allocation30_spill] sm:$0xff] }
 0x31b   : > { %v1649_v50 = vperm.slane %v1468_v7, %v5372_v37  ;;  %v1471_v49 = vpop.permute.xlu2 %1470  ;;  %5381 = vst [vmem:[#allocation52_spill] sm:$0xff] %v4279_v8  ;;  %2979 = vpow2.f32 %v1362_v41 }
 0x31c   : > { %v1644_v51 = vsel %vm1035_vm4, %v1643_v53, %v1642_v3  ;;  %v1650_v60 = vperm.slane %v1471_v49, %v5373_v12  ;;  %v1241_v3 = vsub.f32 %v3678_v56, %v4208_v38  ;;  %v1245_v53 = vsub.f32 %v5382_v32, %v4244_v5 }
 0x31d   : > { %v1646_v15 = vsel %vm5263_vm5, %v1645_v30, %v1644_v51  ;;  %2981 = vpow2.f32 %v1346_v62  ;;  %v1237_v30 = vsub.f32 %v5383_v16, %v4208_v38  ;;  %v5387_v62 = vld [vmem:[#allocation45_spill] sm:$0xff] }
 0x31e   : > { %v1651_v25 = vsel %vm1019_vm0, %v1650_v60, %v1649_v50  ;;  %v1360_v51 = vmul.f32 1.442695, %v1241_v3  ;;  %v1368_v56 = vmul.f32 1.442695, %v1245_v53  ;;  %v1248_v3 = vsub.f32 %v3833_v26, %v4244_v5  ;;  %v5388_v16 = vld [vmem:[#allocation37_spill] sm:$0xff] }
 0x31f   : > { %1590 = vperm.xlu1 %2873, %v4273_v9   ;;  %v1352_v24 = vmul.f32 1.442695, %v1237_v30  ;;  %v1240_v30 = vsub.f32 %v5388_v16, %v4208_v38 }
 0x320   : > { %1602 = vperm.xlu0 %2872, %v4276_v45   ;;  %v4293_v60 = vpop.eup %2977  ;;  %2983 = vpow2.f32 %v1360_v51  ;;  %v1374_v9 = vmul.f32 1.442695, %v1248_v3 }
 0x321   : > { %1578 = vperm.xlu2 %2871, %v4279_v8   ;;  %v1465_v36 = vpop.permute.xlu1 %1464  ;;  %5384 = vst [vmem:[#allocation54_spill] sm:$0xff] %v4293_v60  ;;  %v4295_v41 = vpop.eup %2979  ;;  %2985 = vpow2.f32 %v1368_v56 }
 0x322   : > { %v1647_v7 = vperm.slane %v1465_v36, %v3737_v4  ;;  %v1477_v52 = vpop.permute.xlu0 %1476  ;;  %5385 = vst [vmem:[#allocation48_spill] sm:$0xff] %v4295_v41  ;;  %v1244_v36 = vsub.f32 %v5387_v62, %v4244_v5  ;;  %2987 = vpow2.f32 %v1352_v24 }
 0x323   : > { %v1480_v50 = vpop.permute.xlu2 %1479  ;;  %v4298_v32 = vpop.eup %2981  ;;  %v1654_v8 = vperm.slane %v1477_v52, %v3727_v6 }
 0x324   : > { %v4291_v49 = vsel %vm1043_vm6, %v1647_v7, %v1646_v15  ;;  %5386 = vst [vmem:[#allocation49_spill] sm:$0xff] %v4298_v32 }
 0x326   : > { %v4313_v45 = vpop.eup %2983 }
 0x327   : > { %1599 = vperm.xlu1 %2873, %v4293_v60   ;;  %v1656_v60 = vperm.slane %v1480_v50, %v3754_v13  ;;  %5389 = vst [vmem:[#allocation32_spill] sm:$0xff] %v4313_v45  ;;  %v4316_v24 = vpop.eup %2985 }
 0x328   : > { %1611 = vperm.xlu0 %2872, %v4295_v41   ;;  %5390 = vst [vmem:[#allocation41_spill] sm:$0xff] %v4316_v24  ;;  %v4319_v38 = vpop.eup %2987 }
 0x329   : > { %1587 = vperm.xlu2 %2871, %v4298_v32   ;;  %v1474_v15 = vpop.permute.xlu1 %1473  ;;  %v1366_v32 = vmul.f32 1.442695, %v1244_v36  ;;  %5391 = vst [vmem:[#allocation25_spill] sm:$0xff] %v4319_v38 }
 0x32a   : > { %v1652_v53 = vperm.slane %v1474_v15, %v5370_v57  ;;  %v1486_v7 = vpop.permute.xlu0 %1485  ;;  %v1358_v15 = vmul.f32 1.442695, %v1240_v30 }
 0x32b   : > { %v1489_v51 = vpop.permute.xlu2 %1488  ;;  %2989 = vpow2.f32 %v1366_v32  ;;  %v1660_v3 = vperm.slane %v1486_v7, %v3746_v63 }
 0x32c   : > { %v1653_v62 = vsel %vm1023_vm1, %v1652_v53, %v1651_v25  ;;  %v1247_v25 = vsub.f32 %v3771_v54, %v4244_v5  ;;  %2991 = vpow2.f32 %v1374_v9  ;;  %v1662_v16 = vperm.slane %v1489_v51, %v3737_v4 }
 0x32d   : > { %v1655_v56 = vsel %vm1027_vm2, %v1654_v8, %v1653_v62  ;;  %2993 = vpow2.f32 %v1358_v15 }
 0x32e   : > { %v1657_v26 = vsel %vm1031_vm3, %v1656_v60, %v1655_v56  ;;  %v5392_v60 = vld [vmem:[#allocation43_spill] sm:$0xff]  ;;  %v1372_v30 = vmul.f32 1.442695, %v1247_v25 }
 0x32f   : > { %1608 = vperm.xlu1 %2873, %v4313_v45   ;;  %v1243_v36 = vsub.f32 %v5392_v60, %v4244_v5 }
 0x330   : > { %1620 = vperm.xlu0 %2872, %v4316_v24   ;;  %2995 = vpow2.f32 %v1372_v30 }
 0x331   : > { %1596 = vperm.xlu2 %2871, %v4319_v38   ;;  %v1483_v8 = vpop.permute.xlu1 %1482  ;;  %v4332_v62 = vpop.eup %2989  ;;  %v1364_v56 = vmul.f32 1.442695, %v1243_v36 }
 0x332   : > { %v1658_v52 = vperm.slane %v1483_v8, %v3757_v42  ;;  %v1495_v50 = vpop.permute.xlu0 %1494  ;;  %5393 = vst [vmem:[#allocation47_spill] sm:$0xff] %v4332_v62  ;;  %v4335_v8 = vpop.eup %2991 }
 0x333   : > { %v1498_v53 = vpop.permute.xlu2 %1497  ;;  %5394 = vst [vmem:[#allocation30_spill] sm:$0xff] %v4335_v8  ;;  %v4338_v15 = vpop.eup %2993  ;;  %v1665_v51 = vperm.slane %v1495_v50, %v5373_v12  ;;  %2997 = vpow2.f32 %v1364_v56 }
 0x334   : > { %v1659_v32 = vsel %vm1035_vm4, %v1658_v52, %v1657_v26  ;;  %5395 = vst [vmem:[#allocation45_spill] sm:$0xff] %v4338_v15  ;;  %v1246_v52 = vsub.f32 %v5322_v21, %v4244_v5  ;;  %v1667_v60 = vperm.slane %v1498_v53, %v5370_v57  ;;  %v1249_v53 = vsub.f32 %v3944_v27, %v4244_v5 }
 0x335   : > { %v1661_v54 = vsel %vm5263_vm5, %v1660_v3, %v1659_v32 }
 0x336   : > { %v1663_v9 = vsel %vm1043_vm6, %v1662_v16, %v1661_v54  ;;  %v4349_v32 = vpop.eup %2995  ;;  %v1370_v30 = vmul.f32 1.442695, %v1246_v52 }
 0x337   : > { %1617 = vperm.xlu1 %2873, %v4332_v62   ;;  %5396 = vst [vmem:[#allocation37_spill] sm:$0xff] %v4349_v32 }
 0x338   : > { %1629 = vperm.xlu0 %2872, %v4335_v8   ;;  %2999 = vpow2.f32 %v1370_v30 }
 0x339   : > { %1605 = vperm.xlu2 %2871, %v4338_v15   ;;  %v1492_v7 = vpop.permute.xlu1 %1491  ;;  %v4352_v50 = vpop.eup %2997 }
 0x33a   : > { %v1664_v26 = vperm.slane %v1492_v7, %v5372_v37  ;;  %v1504_v25 = vpop.permute.xlu0 %1503  ;;  %5397 = vst [vmem:[#allocation43_spill] sm:$0xff] %v4352_v50 }
 0x33b   : > { %v1507_v36 = vpop.permute.xlu2 %1506  ;;  %v1671_v7 = vperm.slane %v1504_v25, %v3754_v13 }
 0x33c   : > { %v1666_v3 = vsel %vm1019_vm0, %v1665_v51, %v1664_v26  ;;  %v1673_v26 = vperm.slane %v1507_v36, %v3757_v42 }
 0x33d   : > { %v1668_v16 = vsel %vm1023_vm1, %v1667_v60, %v1666_v3  ;;  %v1754_v60 = vsel %vm1150_vm7, %v1663_v9, %v4291_v49 }
 0x33e   : > { %v4365_v45 = vpop.eup %2999 }
 0x33f   : > { %1626 = vperm.xlu1 %2873, %v4349_v32   ;;  %5398 = vst [vmem:[#allocation55_spill] sm:$0xff] %v4365_v45 }
 0x341   : > { %1614 = vperm.xlu2 %2871, %v4352_v50   ;;  %v1501_v54 = vpop.permute.xlu1 %1500 }
 0x342   : > { %v1669_v56 = vperm.slane %v1501_v54, %v3727_v6  ;;  %v1513_v21 = vpop.permute.xlu0 %1512  ;;  %v1376_v54 = vmul.f32 1.442695, %v1249_v53 }
 0x343   : > { %v1516_v51 = vpop.permute.xlu2 %1515  ;;  %v1677_v36 = vperm.slane %v1513_v21, %v3737_v4 }
 0x344   : > { %v1670_v52 = vsel %vm1027_vm2, %v1669_v56, %v1668_v16  ;;  %3001 = vpow2.f32 %v1376_v54 }
 0x345   : > { %v1672_v3 = vsel %vm1031_vm3, %v1671_v7, %v1670_v52  ;;  %v1679_v7 = vperm.slane %v1516_v51, %v5372_v37 }
 0x346   : > { %v1674_v32 = vsel %vm1035_vm4, %v1673_v26, %v1672_v3 }
 0x349   : > { %1623 = vperm.xlu2 %2871, %v4365_v45   ;;  %v1510_v27 = vpop.permute.xlu1 %1509 }
 0x34a   : > { %v1675_v5 = vperm.slane %v1510_v27, %v3746_v63  ;;  %v1522_v25 = vpop.permute.xlu0 %1521  ;;  %v4373_v56 = vpop.eup %3001 }
 0x34b   : > { %v1525_v16 = vpop.permute.xlu2 %1524  ;;  %5399 = vst [vmem:[#allocation56_spill] sm:$0xff] %v4373_v56  ;;  %v1682_v3 = vperm.slane %v1522_v25, %v5370_v57 }
 0x34c   : > { %v1676_v30 = vsel %vm5263_vm5, %v1675_v5, %v1674_v32  ;;  %v1684_v54 = vperm.slane %v1525_v16, %v3727_v6 }
 0x34d   : > { %v1678_v49 = vsel %vm1043_vm6, %v1677_v36, %v1676_v30 }
 0x34e   : > { %v1755_v9 = vsel %vm1152_vm8, %v1678_v49, %v1754_v60 }
 0x351   : > { %1632 = vperm.xlu2 %2871, %v4373_v56   ;;  %v1519_v53 = vpop.permute.xlu1 %1518 }
 0x352   : > { %v1680_v26 = vperm.slane %v1519_v53, %v5373_v12  ;;  %v1531_v52 = vpop.permute.xlu0 %1530 }
 0x353   : > { %v1534_v21 = vpop.permute.xlu2 %1533  ;;  %v1688_v51 = vperm.slane %v1531_v52, %v3757_v42 }
 0x354   : > { %v1681_v32 = vsel %vm1019_vm0, %v1680_v26, %v1679_v7  ;;  %v1690_v25 = vperm.slane %v1534_v21, %v3746_v63 }
 0x355   : > { %v1683_v27 = vsel %vm1023_vm1, %v1682_v3, %v1681_v32 }
 0x356   : > { %v1685_v60 = vsel %vm1027_vm2, %v1684_v54, %v1683_v27 }
 0x359   : > { %v1528_v5 = vpop.permute.xlu1 %1527 }
 0x35a   : > { %v1686_v36 = vperm.slane %v1528_v5, %v3754_v13  ;;  %v1540_v30 = vpop.permute.xlu0 %1539 }
 0x35b   : > { %v1694_v49 = vperm.slane %v1540_v30, %v5372_v37  ;;  %v1543_v53 = vpop.permute.xlu2 %1542 }
 0x35c   : > { %v1687_v56 = vsel %vm1031_vm3, %v1686_v36, %v1685_v60  ;;  %v1695_v16 = vperm.slane %v1543_v53, %v5373_v12 }
 0x35d   : > { %v1689_v7 = vsel %vm1035_vm4, %v1688_v51, %v1687_v56 }
 0x35e   : > { %v1696_v26 = vsel %vm1019_vm0, %v1695_v16, %v1694_v49  ;;  %v1691_v3 = vsel %vm5263_vm5, %v1690_v25, %v1689_v7 }
 0x361   : > { %v1537_v54 = vpop.permute.xlu1 %1536 }
 0x362   : > { %v1692_v32 = vperm.slane %v1537_v54, %v3737_v4  ;;  %v1549_v27 = vpop.permute.xlu0 %1548 }
 0x363   : > { %v1552_v52 = vpop.permute.xlu2 %1551  ;;  %v1699_v53 = vperm.slane %v1549_v27, %v3727_v6 }
 0x364   : > { %v1693_v5 = vsel %vm1043_vm6, %v1692_v32, %v1691_v3  ;;  %v1701_v51 = vperm.slane %v1552_v52, %v3754_v13 }
 0x365   : > { %v1756_v30 = vsel %vm5262_vm9, %v1693_v5, %v1755_v9  ;;  %vm2292_vm9 = vcmask 1048512  }
 0x369   : > { %v1546_v21 = vpop.permute.xlu1 %1545 }
 0x36a   : > { %v1697_v60 = vperm.slane %v1546_v21, %v5370_v57  ;;  %v1558_v36 = vpop.permute.xlu0 %1557 }
 0x36b   : > { %v1561_v56 = vpop.permute.xlu2 %1560 }
 0x36c   : > { %v1698_v49 = vsel %vm1023_vm1, %v1697_v60, %v1696_v26  ;;  %v1705_v60 = vperm.slane %v1558_v36, %v3746_v63 }
 0x36d   : > { %v1700_v25 = vsel %vm1027_vm2, %v1699_v53, %v1698_v49 }
 0x36e   : > { %v1702_v16 = vsel %vm1031_vm3, %v1701_v51, %v1700_v25  ;;  %v1707_v51 = vperm.slane %v1561_v56, %v3737_v4 }
 0x371   : > { %v1555_v7 = vpop.permute.xlu1 %1554 }
 0x372   : > { %v1567_v54 = vpop.permute.xlu0 %1566  ;;  %v1703_v27 = vperm.slane %v1555_v7, %v3757_v42 }
 0x373   : > { %v1570_v3 = vpop.permute.xlu2 %1569 }
 0x374   : > { %v1704_v26 = vsel %vm1035_vm4, %v1703_v27, %v1702_v16  ;;  %v1710_v16 = vperm.slane %v1567_v54, %v5373_v12 }
 0x375   : > { %v1706_v53 = vsel %vm5263_vm5, %v1705_v60, %v1704_v26 }
 0x376   : > { %v1708_v8 = vsel %vm1043_vm6, %v1707_v51, %v1706_v53  ;;  %v1712_v53 = vperm.slane %v1570_v3, %v5370_v57 }
 0x377   : > { %v1757_v24 = vsel %vm5258_vm10, %v1708_v8, %v1756_v30 }
 0x379   : > { %v1564_v32 = vpop.permute.xlu1 %1563 }
 0x37a   : > { %v1576_v9 = vpop.permute.xlu0 %1575  ;;  %v1709_v59 = vperm.slane %v1564_v32, %v5372_v37 }
 0x37b   : > { %v1579_v5 = vpop.permute.xlu2 %1578  ;;  %v1716_v3 = vperm.slane %v1576_v9, %v3754_v13 }
 0x37c   : > { %v1711_v26 = vsel %vm1019_vm0, %v1710_v16, %v1709_v59 }
 0x37d   : > { %v1713_v30 = vsel %vm1023_vm1, %v1712_v53, %v1711_v26  ;;  %v1718_v53 = vperm.slane %v1579_v5, %v3757_v42 }
 0x381   : > { %v1573_v45 = vpop.permute.xlu1 %1572 }
 0x382   : > { %v1585_v21 = vpop.permute.xlu0 %1584  ;;  %v1714_v56 = vperm.slane %v1573_v45, %v3727_v6 }
 0x383   : > { %v1588_v38 = vpop.permute.xlu2 %1587  ;;  %v1722_v5 = vperm.slane %v1585_v21, %v3737_v4 }
 0x384   : > { %v1724_v60 = vperm.slane %v1588_v38, %v5372_v37  ;;  %v1715_v54 = vsel %vm1027_vm2, %v1714_v56, %v1713_v30 }
 0x389   : > { %v1582_v62 = vpop.permute.xlu1 %1581 }
 0x38a   : > { %v1594_v50 = vpop.permute.xlu0 %1593  ;;  %v1720_v56 = vperm.slane %v1582_v62, %v3746_v63 }
 0x38b   : > { %v1597_v52 = vpop.permute.xlu2 %1596  ;;  %v1727_v51 = vperm.slane %v1594_v50, %v5370_v57  ;;  %v1717_v50 = vsel %vm1031_vm3, %v1716_v3, %v1715_v54 }
 0x38c   : > { %v1729_v16 = vperm.slane %v1597_v52, %v3727_v6  ;;  %v1719_v52 = vsel %vm1035_vm4, %v1718_v53, %v1717_v50 }
 0x38d   : > { %v1721_v30 = vsel %vm5263_vm5, %v1720_v56, %v1719_v52 }
 0x38e   : > { %v1723_v3 = vsel %vm1043_vm6, %v1722_v5, %v1721_v30 }
 0x38f   : > { %v1758_v50 = vsel %vm5257_vm11, %v1723_v3, %v1757_v24 }
 0x391   : > { %v1591_v49 = vpop.permute.xlu1 %1590 }
 0x392   : > { %v1603_v25 = vpop.permute.xlu0 %1602  ;;  %v1725_v36 = vperm.slane %v1591_v49, %v5373_v12 }
 0x393   : > { %v1606_v15 = vpop.permute.xlu2 %1605 }
 0x394   : > { %v1726_v8 = vsel %vm1019_vm0, %v1725_v36, %v1724_v60  ;;  %v1735_v54 = vperm.slane %v1606_v15, %v3746_v63 }
 0x395   : > { %v1728_v49 = vsel %vm1023_vm1, %v1727_v51, %v1726_v8 }
 0x396   : > { %v1730_v60 = vsel %vm1027_vm2, %v1729_v16, %v1728_v49 }
 0x399   : > { %v1600_v41 = vpop.permute.xlu1 %1599 }
 0x39a   : > { %v1612_v7 = vpop.permute.xlu0 %1611  ;;  %v1731_v59 = vperm.slane %v1600_v41, %v3754_v13 }
 0x39b   : > { %v1615_v17 = vpop.permute.xlu2 %1614  ;;  %v1739_v45 = vperm.slane %v1612_v7, %v5372_v37 }
 0x39c   : > { %v1740_v38 = vperm.slane %v1615_v17, %v5373_v12  ;;  %v1732_v41 = vsel %vm1031_vm3, %v1731_v59, %v1730_v60  ;;  %v1733_v17 = vperm.slane %v1603_v25, %v3757_v42 }
 0x39e   : > { %v1741_v7 = vsel %vm1019_vm0, %v1740_v38, %v1739_v45  ;;  %v1734_v62 = vsel %vm1035_vm4, %v1733_v17, %v1732_v41 }
 0x3a1   : > { %v1609_v27 = vpop.permute.xlu1 %1608 }
 0x3a2   : > { %v1621_v32 = vpop.permute.xlu0 %1620  ;;  %v1737_v51 = vperm.slane %v1609_v27, %v3737_v4 }
 0x3a3   : > { %v1624_v31 = vpop.permute.xlu2 %1623  ;;  %v1744_v8 = vperm.slane %v1621_v32, %v3727_v6  ;;  %v1736_v32 = vsel %vm5263_vm5, %v1735_v54, %v1734_v62 }
 0x3a4   : > { %v1746_v25 = vperm.slane %v1624_v31, %v3754_v13 }
 0x3a9   : > { %v1618_v36 = vpop.permute.xlu1 %1617 }
 0x3aa   : > { %v1742_v26 = vperm.slane %v1618_v36, %v5370_v57  ;;  %v1630_v59 = vpop.permute.xlu0 %1629  ;;  %v1738_v36 = vsel %vm1043_vm6, %v1737_v51, %v1736_v32 }
 0x3ab   : > { %v1633_v45 = vpop.permute.xlu2 %1632  ;;  %v1750_v27 = vperm.slane %v1630_v59, %v3746_v63  ;;  %v1759_v60 = vsel %vm5259_vm12, %v1738_v36, %v1758_v50  ;;  %v5402_v50 = vld [vmem:[#allocation51_spill] sm:$0xff] }
 0x3ac   : > { %v1743_v9 = vsel %vm1023_vm1, %v1742_v26, %v1741_v7  ;;  %v1752_v15 = vperm.slane %v1633_v45, %v3737_v4 }
 0x3ad   : > { %v1745_v49 = vsel %vm1027_vm2, %v1744_v8, %v1743_v9 }
 0x3ae   : > { %v1747_v21 = vsel %vm1031_vm3, %v1746_v25, %v1745_v49 }
 0x3b1   : > { %v1627_v38 = vpop.permute.xlu1 %1626 }
 0x3b2   : > { %v1748_v16 = vperm.slane %v1627_v38, %v3757_v42 }
 0x3b4   : > { %v1749_v26 = vsel %vm1035_vm4, %v1748_v16, %v1747_v21 }
 0x3b5   : > { %v1751_v31 = vsel %vm5263_vm5, %v1750_v27, %v1749_v26 }
 0x3b6   : > { %v1753_v56 = vsel %vm1043_vm6, %v1752_v15, %v1751_v31  ;;  %v5401_v31 = vld [vmem:[#allocation44_spill] sm:$0xff] }
 0x3b7   : > { %v1760_v53 = vsel %vm5261_vm13, %v1753_v56, %v1759_v60  ;;  %v5403_v56 = vld [vmem:[#allocation21_spill] sm:$0xff]  ;;  %vm5264_vm13 = vcmask 982912  }
 0x3b8   : > { %v1762_v41 = vsel %vm5260_vm14, %v1760_v53, 0.0  ;;  %v5405_v53 = vld [vmem:[#allocation53_spill] sm:$0xff]  ;;  %vm2284_vm14 = vcmask 917312  }
 0x3b9   : > { %1763 = vadd.xlane.f32.xlu1 %v1762_v41 }
 0x42c   : > { %v1764_v7 = vpop.xlane.xlu1 %1763 }
 0x42d   : > { %3003 = vrcp.f32 %v1764_v7  ;;  %v1776_v8 = vand.u32 2147483648, %v1764_v7  ;;  %v1774_v62 = vand.u32 2147483647, %v1764_v7  ;;  %vm1770_vm11 = vweird.f32 %v1764_v7 }
 0x42f   : > { %v1777_v24 = vor.u32 1.1754944e-38, %v1776_v8  ;;  %vm1775_vm12 = vcmp.eq.f32.partialorder %v1774_v62, 8.507059e+37  ;;  %v5408_v8 = vld [vmem:[#allocation23_spill] sm:$0xff]  ;;  %v5409_v62 = vld [vmem:[#allocation24_spill] sm:$0xff] }
 0x433   : > { %v3004_v17 = vpop.eup %3003 }
 0x434   : > { %v1766_v9 = vmul.f32 %v3004_v17, %v1764_v7  ;;  %vm1771_vm15 = vweird.f32 %v3004_v17  ;;  %v5406_v7 = vld [vmem:[#allocation22_spill] sm:$0xff] }
 0x435   : > { %vm1772_vm10 = vmor %vm1770_vm11, %vm1771_vm15  ;;  %vm2272_vm11 = vcmask 720512   ;;  %vm2280_vm15 = vcmask 851712  }
 0x436   : > { %v1767_v52 = vsub.f32 1.0, %v1766_v9  ;;  %v5407_v9 = vld [vmem:[#allocation29_spill] sm:$0xff] }
 0x438   : > { %v1768_v30 = vmul.f32 %v3004_v17, %v1767_v52 }
 0x43a   : > { %v1769_v51 = vadd.f32 %v3004_v17, %v1768_v30 }
 0x43c   : > { %v1773_v5 = vsel %vm1772_vm10, %v3004_v17, %v1769_v51  ;;  %vm2268_vm10 = vcmask 654912  }
 0x43d   : > { %v4457_v54 = vsel %vm1775_vm12, %v1777_v24, %v1773_v5  ;;  %v5410_v5 = vld [vmem:[#allocation33_spill] sm:$0xff]  ;;  %vm2276_vm12 = vcmask 786112  }
 0x43e   : > { %v1780_v49 = vperm.slane %v4457_v54, 0  ;;  %v1781_v59 = vperm.slane %v4457_v54, 1  ;;  %v1782_v3 = vperm.slane %v4457_v54, 2  ;;  %v4482_v21 = vperm.slane %v4457_v54, 4 }
 0x43f   : > { %v4504_v60 = vperm.slane %v4457_v54, 7 }
 0x440   : > { %v1806_v25 = vmul.f32 %v4048_v35, %v1781_v59  ;;  %v1797_v45 = vmul.f32 %v4005_v33, %v1780_v49  ;;  %v1796_v38 = vmul.f32 %v4008_v58, %v1780_v49  ;;  %v1813_v32 = vmul.f32 %v4065_v44, %v1782_v3 }
 0x441   : > { %v1799_v16 = vmul.f32 %v4021_v48, %v1780_v49  ;;  %v1798_v36 = vmul.f32 %v4003_v19, %v1780_v49  ;;  %v1816_v35 = vmul.f32 %v4083_v22, %v1782_v3  ;;  %v1801_v33 = vmul.f32 %v4016_v43, %v1780_v49 }
 0x442   : > { %1955 = vperm.xlu1 %2873, %v1806_v25   ;;  %1928 = vperm.xlu2 %2871, %v1797_v45   ;;  %v1800_v58 = vmul.f32 %v4038_v40, %v1780_v49  ;;  %v1819_v27 = vmul.f32 %v4098_v39, %v1782_v3  ;;  %v1803_v44 = vmul.f32 %v4033_v29, %v1780_v49  ;;  %v1783_v19 = vperm.slane %v4457_v54, 3  ;;  %v5412_v45 = vld [vmem:[#allocation40_spill] sm:$0xff] }
 0x443   : > { %1925 = vperm.xlu0 %2872, %v1796_v38   ;;  %v1802_v48 = vmul.f32 %v4053_v55, %v1780_v49  ;;  %v1805_v43 = vmul.f32 %v4068_v18, %v1781_v59  ;;  %v1804_v40 = vmul.f32 %v4018_v23, %v1781_v59  ;;  %v1808_v29 = vmul.f32 %v4086_v34, %v1781_v59 }
 0x444   : > { %v1822_v22 = vmul.f32 %v4116_v10, %v1783_v19  ;;  %v1825_v39 = vmul.f32 %v4131_v20, %v1783_v19  ;;  %v1807_v55 = vmul.f32 %v4035_v11, %v1781_v59  ;;  %v1828_v18 = vmul.f32 %v4146_v0, %v4482_v21  ;;  %v5400_v0 = vld [vmem:[#allocation20_spill] sm:$0xff] }
 0x445   : > { %v1810_v23 = vmul.f32 %v4050_v61, %v1781_v59  ;;  %v1809_v10 = vmul.f32 %v4063_v2, %v1781_v59  ;;  %v4489_v34 = vperm.slane %v4457_v54, 5  ;;  %v1812_v20 = vmul.f32 %v4081_v1, %v1782_v3 }
 0x446   : > { %v1811_v15 = vmul.f32 %v4101_v14, %v1781_v59  ;;  %v1815_v2 = vmul.f32 %v4096_v28, %v1782_v3  ;;  %v1814_v26 = vmul.f32 %v5400_v0, %v1782_v3  ;;  %v1818_v1 = vmul.f32 %v5402_v50, %v1782_v3  ;;  %v5404_v28 = vld [vmem:[#allocation48_spill] sm:$0xff]  ;;  %v5411_v59 = vld [vmem:[#allocation19_spill] sm:$0xff] }
 0x447   : > { %v1836_v11 = vmul.f32 %v4210_v47, %v4489_v34  ;;  %v1838_v61 = vmul.f32 %v4256_v46, %v4489_v34  ;;  %v1832_v47 = vmul.f32 %v5401_v31, %v4482_v21  ;;  %v1817_v14 = vmul.f32 %v5403_v56, %v1782_v3 }
 0x448   : > { %v1852_v46 = vmul.f32 %v5404_v28, %v4504_v60  ;;  %v1821_v41 = vmul.f32 %v5405_v53, %v1783_v19  ;;  %v1820_v17 = vmul.f32 %v5406_v7, %v1783_v19  ;;  %v1840_v52 = vmul.f32 %v5407_v9, %v4489_v34 }
 0x449   : > { %v1824_v30 = vmul.f32 %v5408_v8, %v1783_v19  ;;  %v1823_v51 = vmul.f32 %v5409_v62, %v1783_v19  ;;  %v1834_v49 = vmul.f32 %v5410_v5, %v4482_v21  ;;  %v1827_v25 = vmul.f32 %v5411_v59, %v1783_v19 }
 0x44a   : > { %1976 = vperm.xlu1 %2873, %v1813_v32   ;;  %1934 = vperm.xlu2 %2871, %v1799_v16   ;;  %v1826_v38 = vmul.f32 %v5412_v45, %v1783_v19  ;;  %v5413_v32 = vld [vmem:[#allocation41_spill] sm:$0xff]  ;;  %v4559_v56 = vadd.s32 4294967216, %v5372_v37  ;;  %v4578_v59 = vadd.s32 4294967200, %v5372_v37 }
 0x44b   : > { %1931 = vperm.xlu0 %2872, %v1798_v36   ;;  %v1855_v16 = vmul.f32 %v5413_v32, %v4504_v60  ;;  %v5414_v36 = vld [vmem:[#allocation34_spill] sm:$0xff] }
 0x452   : > { %1985 = vperm.xlu1 %2873, %v1816_v35   ;;  %1940 = vperm.xlu2 %2871, %v1801_v33   ;;  %v1830_v35 = vmul.f32 %v5414_v36, %v4482_v21  ;;  %v5415_v33 = vld [vmem:[#allocation38_spill] sm:$0xff] }
 0x453   : > { %1937 = vperm.xlu0 %2872, %v1800_v58   ;;  %v1829_v58 = vmul.f32 %v5415_v33, %v4482_v21 }
 0x45a   : > { %1994 = vperm.xlu1 %2873, %v1819_v27   ;;  %1946 = vperm.xlu2 %2871, %v1803_v44   ;;  %v4525_v27 = vperm.slane %v4457_v54, 6 }
 0x45b   : > { %1943 = vperm.xlu0 %2872, %v1802_v48   ;;  %v5416_v48 = vld [vmem:[#allocation35_spill] sm:$0xff] }
 0x45c   : > { %v1849_v19 = vmul.f32 %v5416_v48, %v4525_v27  ;;  %v5425_v48 = vld [vmem:[#allocation31_spill] sm:$0xff] }
 0x462   : > { %2003 = vperm.xlu1 %2873, %v1822_v22   ;;  %1952 = vperm.xlu2 %2871, %v1805_v43   ;;  %v5417_v22 = vld [vmem:[#allocation28_spill] sm:$0xff] }
 0x463   : > { %1949 = vperm.xlu0 %2872, %v1804_v40   ;;  %v1831_v43 = vmul.f32 %v5417_v22, %v4482_v21  ;;  %v5418_v40 = vld [vmem:[#allocation39_spill] sm:$0xff]  ;;  %v2443_v22 = vld [vmem:[%s3366_s14 + $0xf8] sm:$0xff] }
 0x464   : > { %2496 = vmatpush.msrb.mxu2 %v2443_v22 }
 0x46a   : > { %2012 = vperm.xlu1 %2873, %v1825_v39   ;;  %1961 = vperm.xlu2 %2871, %v1808_v29   ;;  %v1837_v39 = vmul.f32 %v5418_v40, %v4489_v34  ;;  %v4536_v29 = vadd.s32 4294967224, %v5372_v37 }
 0x46b   : > { %1958 = vperm.xlu0 %2872, %v1807_v55   ;;  %v4539_v55 = vadd.s32 4294967232, %v5372_v37 }
 0x472   : > { %2021 = vperm.xlu1 %2873, %v1828_v18   ;;  %1967 = vperm.xlu2 %2871, %v1810_v23  }
 0x473   : > { %1964 = vperm.xlu0 %2872, %v1809_v10  }
 0x47a   : > { %2045 = vperm.xlu1 %2873, %v1836_v11   ;;  %1973 = vperm.xlu2 %2871, %v1812_v20  }
 0x47b   : > { %1970 = vperm.xlu0 %2872, %v1811_v15  }
 0x482   : > { %2051 = vperm.xlu1 %2873, %v1838_v61   ;;  %1982 = vperm.xlu2 %2871, %v1815_v2   ;;  %v5419_v2 = vld [vmem:[#allocation45_spill] sm:$0xff] }
 0x483   : > { %1979 = vperm.xlu0 %2872, %v1814_v26   ;;  %v1850_v0 = vmul.f32 %v5419_v2, %v4525_v27  ;;  %v5420_v26 = vld [vmem:[#allocation26_spill] sm:$0xff] }
 0x484   : > { %v1845_v31 = vmul.f32 %v5420_v26, %v4525_v27 }
 0x48a   : > { %2033 = vperm.xlu1 %2873, %v1832_v47   ;;  %1991 = vperm.xlu2 %2871, %v1818_v1   ;;  %v5421_v47 = vld [vmem:[#allocation49_spill] sm:$0xff]  ;;  %v4556_v1 = vadd.s32 4294967208, %v5372_v37 }
 0x48b   : > { %1988 = vperm.xlu0 %2872, %v1817_v14   ;;  %v1844_v50 = vmul.f32 %v5421_v47, %v4525_v27 }
 0x492   : > { %2093 = vperm.xlu1 %2873, %v1852_v46   ;;  %2000 = vperm.xlu2 %2871, %v1821_v41  }
 0x493   : > { %1997 = vperm.xlu0 %2872, %v1820_v17  }
 0x49a   : > { %2057 = vperm.xlu1 %2873, %v1840_v52   ;;  %2009 = vperm.xlu2 %2871, %v1824_v30   ;;  %v5422_v52 = vld [vmem:[#allocation30_spill] sm:$0xff] }
 0x49b   : > { %2006 = vperm.xlu0 %2872, %v1823_v51   ;;  %v1858_v8 = vmul.f32 %v5422_v52, %v4504_v60  ;;  %v5423_v30 = vld [vmem:[#allocation46_spill] sm:$0xff]  ;;  %v5424_v51 = vld [vmem:[#allocation36_spill] sm:$0xff] }
 0x49c   : > { %v1929_v24 = vpop.permute.xlu2 %1928  ;;  %v1846_v62 = vmul.f32 %v5423_v30, %v4525_v27 }
 0x49d   : > { %v2117_v23 = vperm.slane %v1929_v24, %v5373_v12  ;;  %v2267_v10 = vperm.slane %v1929_v24, %v4536_v29  ;;  %v1839_v24 = vmul.f32 %v5424_v51, %v4489_v34 }
 0x4a2   : > { %2039 = vperm.xlu1 %2873, %v1834_v49   ;;  %2018 = vperm.xlu2 %2871, %v1827_v25   ;;  %v4581_v25 = vadd.s32 4294967192, %v5372_v37 }
 0x4a3   : > { %2015 = vperm.xlu0 %2872, %v1826_v38  }
 0x4a4   : > { %v1935_v3 = vpop.permute.xlu2 %1934 }
 0x4a5   : > { %v2121_v41 = vperm.slane %v1935_v3, %v3727_v6  ;;  %v2275_v7 = vperm.slane %v1935_v3, %v4556_v1 }
 0x4aa   : > { %2102 = vperm.xlu1 %2873, %v1855_v16   ;;  %2027 = vperm.xlu2 %2871, %v1830_v35  }
 0x4ab   : > { %2024 = vperm.xlu0 %2872, %v1829_v58  }
 0x4ac   : > { %v4527_v44 = vpop.permute.xlu2 %1940 }
 0x4ad   : > { %v2125_v36 = vperm.slane %v4527_v44, %v3757_v42  ;;  %v2283_v35 = vperm.slane %v4527_v44, %v4581_v25  ;;  %v4604_v44 = vadd.s32 4294967176, %v5372_v37 }
 0x4b2   : > { %2084 = vperm.xlu1 %2873, %v1849_v19   ;;  %2030 = vperm.xlu2 %2871, %v1831_v43   ;;  %v1833_v19 = vmul.f32 %v5425_v48, %v4482_v21  ;;  %v5426_v43 = vld [vmem:[#allocation43_spill] sm:$0xff]  ;;  %v5430_v48 = vld [vmem:[#allocation52_spill] sm:$0xff] }
 0x4b3   : > { %2048 = vperm.xlu0 %2872, %v1837_v39   ;;  %v1853_v40 = vmul.f32 %v5426_v43, %v4504_v60  ;;  %v2458_v43 = vld [vmem:[%s3366_s14 + $0x170] sm:$0xff] }
 0x4b4   : > { %v4541_v54 = vpop.permute.xlu2 %1946  ;;  %v1956_v3 = vpop.permute.xlu1 %1955 }
 0x4b5   : > { %v1926_v18 = vpop.permute.xlu0 %1925  ;;  %v2129_v2 = vperm.slane %v4541_v54, %v3737_v4 }
 0x4b6   : > { %v2116_v11 = vperm.slane %v1926_v18, %v5372_v37  ;;  %v2265_v20 = vperm.slane %v1926_v18, %v4539_v55 }
 0x4b8   : > { %v2118_v15 = vsel %vm1019_vm0, %v2117_v23, %v2116_v11  ;;  %v2269_v61 = vsel %vm2268_vm10, %v2267_v10, %v2265_v20  ;;  %v4601_v23 = vadd.s32 4294967184, %v5372_v37  ;;  %v2459_v10 = vld [vmem:[%s3366_s14 + $0x178] sm:$0xff] }
 0x4b9   : > { %2516 = vmatpush.msrb.mxu3 %v2459_v10 }
 0x4ba   : > { %2087 = vperm.xlu1 %2873, %v1850_v0   ;;  %2072 = vperm.xlu2 %2871, %v1845_v31   ;;  %v2291_v0 = vperm.slane %v4541_v54, %v4604_v44  ;;  %v2442_v54 = vld [vmem:[%s3366_s14 + $0xf0] sm:$0xff] }
 0x4bb   : > { %2069 = vperm.xlu0 %2872, %v1844_v50   ;;  %v5427_v50 = vld [vmem:[#allocation47_spill] sm:$0xff]  ;;  %2497 = vmatpush.msrb.mxu2 %v2442_v54  ;;  %v2457_v54 = vld [vmem:[%s3366_s14 + $0x168] sm:$0xff] }
 0x4bc   : > { %v4561_v14 = vpop.permute.xlu2 %1952  ;;  %v1977_v26 = vpop.permute.xlu1 %1976  ;;  %2517 = vmatpush.msrb.mxu3 %v2458_v43 }
 0x4bd   : > { %v1932_v28 = vpop.permute.xlu0 %1931  ;;  %v2310_v52 = vperm.slane %v1977_v26, %v4536_v29  ;;  %v2132_v51 = vperm.slane %v4561_v14, %v5373_v12 }
 0x4be   : > { %v2119_v46 = vperm.slane %v1932_v28, %v5370_v57  ;;  %v2271_v53 = vperm.slane %v1932_v28, %v4559_v56  ;;  %v1854_v28 = vmul.f32 %v5427_v50, %v4504_v60  ;;  %v5432_v50 = vld [vmem:[#allocation42_spill] sm:$0xff]  ;;  %2518 = vmatpush.msrb.mxu3 %v2457_v54 }
 0x4c0   : > { %v2120_v17 = vsel %vm1023_vm1, %v2119_v46, %v2118_v15  ;;  %v2273_v9 = vsel %vm2272_vm11, %v2271_v53, %v2269_v61 }
 0x4c1   : > { %v2122_v5 = vsel %vm1027_vm2, %v2121_v41, %v2120_v17  ;;  %v2277_v49 = vsel %vm2276_vm12, %v2275_v7, %v2273_v9  ;;  %v5428_v41 = vld [vmem:[#allocation25_spill] sm:$0xff]  ;;  %v2147_v9 = vperm.slane %v1977_v26, %v5373_v12 }
 0x4c2   : > { %2111 = vperm.xlu1 %2873, %v1858_v8   ;;  %2075 = vperm.xlu2 %2871, %v1846_v62   ;;  %v1847_v7 = vmul.f32 %v5428_v41, %v4525_v27 }
 0x4c3   : > { %2054 = vperm.xlu0 %2872, %v1839_v24   ;;  %v2295_v24 = vperm.slane %v4561_v14, %v4536_v29  ;;  %v5429_v14 = vld [vmem:[#allocation54_spill] sm:$0xff] }
 0x4c4   : > { %v4583_v45 = vpop.permute.xlu2 %1961 }
 0x4c5   : > { %v1938_v38 = vpop.permute.xlu0 %1937 }
 0x4c6   : > { %v2123_v32 = vperm.slane %v1938_v38, %v3754_v13  ;;  %v2279_v16 = vperm.slane %v1938_v38, %v4578_v59  ;;  %v2134_v38 = vperm.slane %v1956_v3, %v5370_v57 }
 0x4c8   : > { %v2124_v33 = vsel %vm1031_vm3, %v2123_v32, %v2122_v5  ;;  %v2281_v58 = vsel %vm2280_vm15, %v2279_v16, %v2277_v49  ;;  %v2297_v32 = vperm.slane %v1956_v3, %v4559_v56 }
 0x4c9   : > { %v2126_v39 = vsel %vm1035_vm4, %v2125_v36, %v2124_v33  ;;  %v2285_v18 = vsel %vm2284_vm14, %v2283_v35, %v2281_v58  ;;  %v1848_v58 = vmul.f32 %v5429_v14, %v4525_v27 }
 0x4ca   : > { %2036 = vperm.xlu2 %2871, %v1833_v19   ;;  %v1841_v19 = vmul.f32 %v5430_v48, %v4489_v34 }
 0x4cb   : > { %2096 = vperm.xlu0 %2872, %v1853_v40   ;;  %v4655_v40 = vpop.permute.xlu1 %1985 }
 0x4cc   : > { %v4607_v11 = vpop.permute.xlu2 %1967 }
 0x4cd   : > { %v1944_v20 = vpop.permute.xlu0 %1943 }
 0x4ce   : > { %v2127_v15 = vperm.slane %v1944_v20, %v3746_v63  ;;  %v2287_v61 = vperm.slane %v1944_v20, %v4601_v23 }
 0x4d0   : > { %v2128_v31 = vsel %vm5263_vm5, %v2127_v15, %v2126_v39  ;;  %v2289_v47 = vsel %vm5264_vm13, %v2287_v61, %v2285_v18  ;;  %v2441_v39 = vld [vmem:[%s3366_s14 + $0xe8] sm:$0xff]  ;;  %v2138_v61 = vperm.slane %v4583_v45, %v3754_v13 }
 0x4d1   : > { %v4620_v46 = vsel %vm1043_vm6, %v2129_v2, %v2128_v31  ;;  %v4623_v53 = vsel %vm2292_vm9, %v2291_v0, %v2289_v47  ;;  %2498 = vmatpush.msrb.mxu2 %v2441_v39  ;;  %v2301_v2 = vperm.slane %v4583_v45, %v4578_v59  ;;  %v5431_v31 = vld [vmem:[#allocation27_spill] sm:$0xff]  ;;  %v5435_v39 = vld [vmem:[#allocation32_spill] sm:$0xff] }
 0x4d2   : > { %2099 = vperm.xlu2 %2871, %v1854_v28   ;;  %v1842_v47 = vmul.f32 %v5431_v31, %v4489_v34  ;;  %v1835_v28 = vmul.f32 %v5432_v50, %v4482_v21 }
 0x4d3   : > { %2078 = vperm.xlu0 %2872, %v1847_v7   ;;  %v4676_v45 = vpop.permute.xlu1 %1994 }
 0x4d4   : > { %v1974_v17 = vpop.permute.xlu2 %1973 }
 0x4d5   : > { %v2146_v8 = vperm.slane %v1974_v17, %v5372_v37  ;;  %v2309_v30 = vperm.slane %v1974_v17, %v4539_v55  ;;  %v1950_v62 = vpop.permute.xlu0 %1949  ;;  %v2440_v17 = vld [vmem:[%s3366_s14 + $0xe0] sm:$0xff] }
 0x4d6   : > { %v2131_v5 = vperm.slane %v1950_v62, %v5372_v37  ;;  %v2294_v49 = vperm.slane %v1950_v62, %v4539_v55  ;;  %2499 = vmatpush.msrb.mxu2 %v2440_v17  ;;  %v2305_v62 = vperm.slane %v4607_v11, %v4601_v23 }
 0x4d7   : > { %v4641_v16 = vsel %vm1019_vm0, %v2147_v9, %v2146_v8  ;;  %v4644_v36 = vsel %vm2268_vm10, %v2310_v52, %v2309_v30  ;;  %v2142_v30 = vperm.slane %v4607_v11, %v3746_v63 }
 0x4d8   : > { %v2133_v35 = vsel %vm1019_vm0, %v2132_v51, %v2131_v5  ;;  %v2296_v33 = vsel %vm2268_vm10, %v2295_v24, %v2294_v49  ;;  %v5433_v5 = vld [vmem:[#allocation50_spill] sm:$0xff] }
 0x4d9   : > { %v2135_v22 = vsel %vm1023_vm1, %v2134_v38, %v2133_v35  ;;  %v2298_v3 = vsel %vm2272_vm11, %v2297_v32, %v2296_v33  ;;  %v1843_v49 = vmul.f32 %v5433_v5, %v4489_v34  ;;  %v2456_v38 = vld [vmem:[%s3366_s14 + $0x160] sm:$0xff]  ;;  %v2439_v32 = vld [vmem:[%s3366_s14 + $0xd8] sm:$0xff]  ;;  %v5434_v35 = vld [vmem:[#allocation55_spill] sm:$0xff] }
 0x4da   : > { %2081 = vperm.xlu2 %2871, %v1848_v58   ;;  %v1856_v33 = vmul.f32 %v5434_v35, %v4504_v60  ;;  %2519 = vmatpush.msrb.mxu3 %v2456_v38  ;;  %v2322_v35 = vperm.slane %v4676_v45, %v4604_v44 }
 0x4db   : > { %2060 = vperm.xlu0 %2872, %v1841_v19   ;;  %2500 = vmatpush.msrb.mxu2 %v2439_v32  ;;  %v4698_v19 = vpop.permute.xlu1 %2003  ;;  %v2159_v32 = vperm.slane %v4676_v45, %v3737_v4 }
 0x4dc   : > { %v4658_v18 = vpop.permute.xlu2 %1982 }
 0x4dd   : > { %v1959_v10 = vpop.permute.xlu0 %1958  ;;  %v2314_v50 = vperm.slane %v4658_v18, %v4556_v1 }
 0x4de   : > { %v2136_v20 = vperm.slane %v1959_v10, %v3727_v6  ;;  %v2299_v15 = vperm.slane %v1959_v10, %v4556_v1  ;;  %v1851_v10 = vmul.f32 %v5435_v39, %v4525_v27 }
 0x4e0   : > { %v2137_v0 = vsel %vm1027_vm2, %v2136_v20, %v2135_v22  ;;  %v2300_v26 = vsel %vm2276_vm12, %v2299_v15, %v2298_v3 }
 0x4e1   : > { %v2139_v41 = vsel %vm1031_vm3, %v2138_v61, %v2137_v0  ;;  %v2302_v7 = vsel %vm2280_vm15, %v2301_v2, %v2300_v26  ;;  %v5436_v61 = vld [vmem:[#allocation37_spill] sm:$0xff]  ;;  %v2455_v0 = vld [vmem:[%s3366_s14 + $0x158] sm:$0xff] }
 0x4e2   : > { %2063 = vperm.xlu2 %2871, %v1842_v47   ;;  %v1857_v2 = vmul.f32 %v5436_v61, %v4504_v60  ;;  %v2427_v26 = vld [vmem:[%s3366_s14 + $0x78] sm:$0xff]  ;;  %2520 = vmatpush.msrb.mxu3 %v2455_v0  ;;  %v2151_v47 = vperm.slane %v4658_v18, %v3727_v6 }
 0x4e3   : > { %2042 = vperm.xlu0 %2872, %v1835_v28   ;;  %2476 = vmatpush.msrb.mxu1 %v2427_v26  ;;  %v2153_v28 = vperm.slane %v4655_v40, %v3754_v13  ;;  %v5437_v18 = vld [vmem:[#allocation56_spill] sm:$0xff] }
 0x4e4   : > { %v4678_v9 = vpop.permute.xlu2 %1991 }
 0x4e5   : > { %v1965_v52 = vpop.permute.xlu0 %1964  ;;  %v2320_v38 = vperm.slane %v4678_v9, %v4601_v23 }
 0x4e6   : > { %v2140_v8 = vperm.slane %v1965_v52, %v3757_v42  ;;  %v2303_v21 = vperm.slane %v1965_v52, %v4581_v25 }
 0x4e8   : > { %v2141_v51 = vsel %vm1035_vm4, %v2140_v8, %v2139_v41  ;;  %v2304_v24 = vsel %vm2284_vm14, %v2303_v21, %v2302_v7  ;;  %v2316_v41 = vperm.slane %v4655_v40, %v4578_v59  ;;  %v4730_v7 = vpop.permute.xlu1 %2012  ;;  %v1859_v21 = vmul.f32 %v5437_v18, %v4504_v60 }
 0x4e9   : > { %v2143_v14 = vsel %vm5263_vm5, %v2142_v30, %v2141_v51  ;;  %v2306_v58 = vsel %vm5264_vm13, %v2305_v62, %v2304_v24  ;;  %v2438_v30 = vld [vmem:[%s3366_s14 + $0xd0] sm:$0xff] }
 0x4ea   : > { %2066 = vperm.xlu2 %2871, %v1843_v49   ;;  %v2454_v62 = vld [vmem:[%s3366_s14 + $0x150] sm:$0xff]  ;;  %2501 = vmatpush.msrb.mxu2 %v2438_v30  ;;  %v2157_v49 = vperm.slane %v4678_v9, %v3746_v63 }
 0x4eb   : > { %2105 = vperm.xlu0 %2872, %v1856_v33   ;;  %v2426_v51 = vld [vmem:[%s3366_s14 + $0x70] sm:$0xff]  ;;  %2521 = vmatpush.msrb.mxu3 %v2454_v62 }
 0x4ec   : > { %v4696_v11 = vpop.permute.xlu2 %2000  ;;  %2477 = vmatpush.msrb.mxu1 %v2426_v51  ;;  %v2170_v51 = vperm.slane %v4730_v7, %v3757_v42 }
 0x4ed   : > { %v1971_v48 = vpop.permute.xlu0 %1970  ;;  %v2162_v61 = vperm.slane %v4696_v11, %v5373_v12 }
 0x4ee   : > { %v2144_v34 = vperm.slane %v1971_v48, %v3737_v4  ;;  %v2307_v22 = vperm.slane %v1971_v48, %v4604_v44 }
 0x4f0   : > { %v2145_v3 = vsel %vm1043_vm6, %v2144_v34, %v2143_v14  ;;  %v2308_v43 = vsel %vm2292_vm9, %v2307_v22, %v2306_v58  ;;  %v2437_v34 = vld [vmem:[%s3366_s14 + $0xc8] sm:$0xff] }
 0x4f1   : > { %v4708_v20 = vsel %vm1150_vm7, %v2145_v3, %v4620_v46  ;;  %v4712_v15 = vsel %vm1150_vm7, %v2308_v43, %v4623_v53  ;;  %v2453_v22 = vld [vmem:[%s3366_s14 + $0x148] sm:$0xff]  ;;  %v4764_v43 = vpop.permute.xlu1 %2021  ;;  %2502 = vmatpush.msrb.mxu2 %v2437_v34  ;;  %vm5438_vm7 = vcmask 1043459  }
 0x4f2   : > { %2090 = vperm.xlu2 %2871, %v1851_v10   ;;  %v2425_v3 = vld [vmem:[%s3366_s14 + $0x68] sm:$0xff]  ;;  %2522 = vmatpush.msrb.mxu3 %v2453_v22 }
 0x4f3   : > { %2108 = vperm.xlu0 %2872, %v1857_v2   ;;  %2478 = vmatpush.msrb.mxu1 %v2425_v3  ;;  %v2325_v2 = vperm.slane %v4696_v11, %v4536_v29 }
 0x4f4   : > { %v4718_v27 = vpop.permute.xlu2 %2009 }
 0x4f5   : > { %v1980_v46 = vpop.permute.xlu0 %1979  ;;  %v2168_v30 = vperm.slane %v4718_v27, %v3754_v13  ;;  %v2331_v62 = vperm.slane %v4718_v27, %v4578_v59 }
 0x4f6   : > { %v2149_v31 = vperm.slane %v1980_v46, %v5370_v57  ;;  %v2312_v53 = vperm.slane %v1980_v46, %v4559_v56  ;;  %v2164_v46 = vperm.slane %v4698_v19, %v5370_v57 }
 0x4f8   : > { %v2150_v54 = vsel %vm1023_vm1, %v2149_v31, %v4641_v16  ;;  %v2313_v17 = vsel %vm2272_vm11, %v2312_v53, %v4644_v36  ;;  %v2327_v31 = vperm.slane %v4698_v19, %v4559_v56 }
 0x4f9   : > { %v2152_v52 = vsel %vm1027_vm2, %v2151_v47, %v2150_v54  ;;  %v2315_v8 = vsel %vm2276_vm12, %v2314_v50, %v2313_v17  ;;  %v2424_v50 = vld [vmem:[%s3366_s14 + $0x60] sm:$0xff]  ;;  %v2423_v17 = vld [vmem:[%s3366_s14 + $0x58] sm:$0xff]  ;;  %v4792_v19 = vpop.permute.xlu1 %2045 }
 0x4fa   : > { %v2154_v40 = vsel %vm1031_vm3, %v2153_v28, %v2152_v52  ;;  %v2317_v24 = vsel %vm2280_vm15, %v2316_v41, %v2315_v8  ;;  %v2436_v28 = vld [vmem:[%s3366_s14 + $0xc0] sm:$0xff]  ;;  %2479 = vmatpush.msrb.mxu1 %v2424_v50 }
 0x4fb   : > { %2114 = vperm.xlu0 %2872, %v1859_v21   ;;  %v2452_v41 = vld [vmem:[%s3366_s14 + $0x140] sm:$0xff]  ;;  %2503 = vmatpush.msrb.mxu2 %v2436_v28 }
 0x4fc   : > { %v4745_v16 = vpop.permute.xlu2 %2018  ;;  %2523 = vmatpush.msrb.mxu3 %v2452_v41  ;;  %2480 = vmatpush.msrb.mxu1 %v2423_v17 }
 0x4fd   : > { %v1989_v36 = vpop.permute.xlu0 %1988  ;;  %v2337_v34 = vperm.slane %v4745_v16, %v4604_v44 }
 0x4fe   : > { %v2155_v5 = vperm.slane %v1989_v36, %v3757_v42  ;;  %v2318_v60 = vperm.slane %v1989_v36, %v4581_v25 }
 0x500   : > { %v2156_v33 = vsel %vm1035_vm4, %v2155_v5, %v2154_v40  ;;  %v2319_v14 = vsel %vm2284_vm14, %v2318_v60, %v2317_v24  ;;  %v2333_v40 = vperm.slane %v4730_v7, %v4581_v25  ;;  %v2435_v5 = vld [vmem:[%s3366_s14 + $0xb8] sm:$0xff] }
 0x501   : > { %v2158_v58 = vsel %vm5263_vm5, %v2157_v49, %v2156_v33  ;;  %v2321_v48 = vsel %vm5264_vm13, %v2320_v38, %v2319_v14  ;;  %v2451_v60 = vld [vmem:[%s3366_s14 + $0x138] sm:$0xff]  ;;  %v2422_v49 = vld [vmem:[%s3366_s14 + $0x50] sm:$0xff]  ;;  %2504 = vmatpush.msrb.mxu2 %v2435_v5  ;;  %v4815_v33 = vpop.permute.xlu1 %2051 }
 0x502   : > { %v4767_v9 = vsel %vm1043_vm6, %v2159_v32, %v2158_v58  ;;  %v4770_v45 = vsel %vm2292_vm9, %v2322_v35, %v2321_v48  ;;  %2524 = vmatpush.msrb.mxu3 %v2451_v60  ;;  %2481 = vmatpush.msrb.mxu1 %v2422_v49  ;;  %v2174_v48 = vperm.slane %v4745_v16, %v3737_v4  ;;  %v2432_v60 = vld [vmem:[%s3366_s14 + $0xa0] sm:$0xff]  ;;  %v2418_v49 = vld [vmem:[%s3366_s14 + $0x30] sm:$0xff] }
 0x504   : > { %v4772_v39 = vpop.permute.xlu2 %2027 }
 0x505   : > { %v1998_v10 = vpop.permute.xlu0 %1997  ;;  %v2179_v28 = vperm.slane %v4772_v39, %v5370_v57  ;;  %v2342_v41 = vperm.slane %v4772_v39, %v4559_v56  ;;  %v2237_v39 = vsel %vm1152_vm8, %v4767_v9, %v4708_v20  ;;  %v2354_v20 = vperm.slane %v4792_v19, %v4539_v55 }
 0x506   : > { %v2161_v0 = vperm.slane %v1998_v10, %v5372_v37  ;;  %v2324_v26 = vperm.slane %v1998_v10, %v4539_v55 }
 0x508   : > { %v2163_v53 = vsel %vm1019_vm0, %v2162_v61, %v2161_v0  ;;  %v2326_v47 = vsel %vm2268_vm10, %v2325_v2, %v2324_v26  ;;  %v2434_v61 = vld [vmem:[%s3366_s14 + $0xb0] sm:$0xff]  ;;  %v2421_v2 = vld [vmem:[%s3366_s14 + $0x48] sm:$0xff] }
 0x509   : > { %v2165_v54 = vsel %vm1023_vm1, %v2164_v46, %v2163_v53  ;;  %v2328_v11 = vsel %vm2272_vm11, %v2327_v31, %v2326_v47  ;;  %v2450_v0 = vld [vmem:[%s3366_s14 + $0x130] sm:$0xff]  ;;  %2505 = vmatpush.msrb.mxu2 %v2434_v61  ;;  %2482 = vmatpush.msrb.mxu1 %v2421_v2  ;;  %v2176_v31 = vperm.slane %v4764_v43, %v5372_v37 }
 0x50a   : > { %2525 = vmatpush.msrb.mxu3 %v2450_v0  ;;  %v2339_v53 = vperm.slane %v4764_v43, %v4539_v55  ;;  %v2414_v0 = vld [vmem:[%s3366_s14 + $0x10] sm:$0xff] }
 0x50c   : > { %v4794_v8 = vpop.permute.xlu2 %2030 }
 0x50d   : > { %v2007_v52 = vpop.permute.xlu0 %2006 }
 0x50e   : > { %v2166_v18 = vperm.slane %v2007_v52, %v3727_v6  ;;  %v2329_v21 = vperm.slane %v2007_v52, %v4556_v1 }
 0x510   : > { %v2167_v24 = vsel %vm1027_vm2, %v2166_v18, %v2165_v54  ;;  %v2330_v36 = vsel %vm2276_vm12, %v2329_v21, %v2328_v11  ;;  %v4842_v54 = vpop.permute.xlu1 %2033  ;;  %v2420_v18 = vld [vmem:[%s3366_s14 + $0x40] sm:$0xff]  ;;  %v2433_v21 = vld [vmem:[%s3366_s14 + $0xa8] sm:$0xff] }
 0x511   : > { %v2169_v38 = vsel %vm1031_vm3, %v2168_v30, %v2167_v24  ;;  %v2332_v32 = vsel %vm2280_vm15, %v2331_v62, %v2330_v36  ;;  %v2449_v30 = vld [vmem:[%s3366_s14 + $0x128] sm:$0xff]  ;;  %v2400_v62 = vsel %vm1152_vm8, %v4770_v45, %v4712_v15  ;;  %2483 = vmatpush.msrb.mxu1 %v2420_v18  ;;  %2506 = vmatpush.msrb.mxu2 %v2433_v21  ;;  %vm5439_vm8 = vmmov %vm5438_vm7  ;;  %v2472_v21 = vld [vmem:[%s3366_s14 + $0x1e0] sm:$0xff] }
 0x512   : > { %v2171_v27 = vsel %vm1035_vm4, %v2170_v51, %v2169_v38  ;;  %v2334_v7 = vsel %vm2284_vm14, %v2333_v40, %v2332_v32  ;;  %v2419_v40 = vld [vmem:[%s3366_s14 + $0x38] sm:$0xff]  ;;  %2526 = vmatpush.msrb.mxu3 %v2449_v30  ;;  %v2191_v36 = vperm.slane %v4792_v19, %v5372_v37  ;;  %v2448_v38 = vld [vmem:[%s3366_s14 + $0x120] sm:$0xff]  ;;  %v2445_v18 = vld [vmem:[%s3366_s14 + $0x108] sm:$0xff] }
 0x513   : > { %2484 = vmatpush.msrb.mxu1 %v2419_v40  ;;  %2507 = vmatpush.msrb.mxu2 %v2432_v60  ;;  %v2471_v30 = vld [vmem:[%s3366_s14 + $0x1d8] sm:$0xff]  ;;  %v2470_v40 = vld [vmem:[%s3366_s14 + $0x1d0] sm:$0xff] }
 0x514   : > { %v4823_v22 = vpop.permute.xlu2 %2072  ;;  %2527 = vmatpush.msrb.mxu3 %v2448_v38  ;;  %v2194_v38 = vperm.slane %v4815_v33, %v5370_v57 }
 0x515   : > { %v2016_v35 = vpop.permute.xlu0 %2015  ;;  %2485 = vmatpush.msrb.mxu1 %v2418_v49 }
 0x516   : > { %v2172_v14 = vperm.slane %v2016_v35, %v3746_v63  ;;  %v2335_v58 = vperm.slane %v2016_v35, %v4601_v23  ;;  %v2431_v35 = vld [vmem:[%s3366_s14 + $0x98] sm:$0xff] }
 0x517   : > { %2508 = vmatpush.msrb.mxu2 %v2431_v35  ;;  %v2467_v35 = vld [vmem:[%s3366_s14 + $0x1b8] sm:$0xff] }
 0x518   : > { %v2173_v3 = vsel %vm5263_vm5, %v2172_v14, %v2171_v27  ;;  %v2336_v10 = vsel %vm5264_vm13, %v2335_v58, %v2334_v7  ;;  %v4879_v32 = vpop.permute.xlu1 %2093  ;;  %v2417_v7 = vld [vmem:[%s3366_s14 + $0x28] sm:$0xff]  ;;  %v2416_v14 = vld [vmem:[%s3366_s14 + $0x20] sm:$0xff] }
 0x519   : > { %v2175_v26 = vsel %vm1043_vm6, %v2174_v48, %v2173_v3  ;;  %v2338_v46 = vsel %vm2292_vm9, %v2337_v34, %v2336_v10  ;;  %2486 = vmatpush.msrb.mxu1 %v2417_v7  ;;  %v2447_v34 = vld [vmem:[%s3366_s14 + $0x118] sm:$0xff]  ;;  %v2357_v7 = vperm.slane %v4815_v33, %v4559_v56 }
 0x51a   : > { %v4889_v58 = vsel %vm5438_vm7, %v2175_v26, %v2237_v39  ;;  %v4892_v48 = vsel %vm5439_vm8, %v2338_v46, %v2400_v62  ;;  %2528 = vmatpush.msrb.mxu3 %v2447_v34  ;;  %v2415_v10 = vld [vmem:[%s3366_s14 + $0x18] sm:$0xff]  ;;  %v2413_v26 = vld [vmem:[%s3366_s14 + $0x8] sm:$0xff]  ;;  %v2430_v46 = vld [vmem:[%s3366_s14 + $0x90] sm:$0xff]  ;;  %vm5440_vm7 = vcmask 1044484  }
 0x51b   : > { %2487 = vmatpush.msrb.mxu1 %v2416_v14  ;;  %2509 = vmatpush.msrb.mxu2 %v2430_v46  ;;  %vm5441_vm8 = vmmov %vm5440_vm7 }
 0x51c   : > { %v4861_v51 = vpop.permute.xlu2 %2075 }
 0x51d   : > { %v2025_v16 = vpop.permute.xlu0 %2024  ;;  %2488 = vmatpush.msrb.mxu1 %v2415_v10 }
 0x51e   : > { %v2177_v47 = vperm.slane %v2025_v16, %v5373_v12  ;;  %v2340_v50 = vperm.slane %v2025_v16, %v4536_v29  ;;  %v2446_v16 = vld [vmem:[%s3366_s14 + $0x110] sm:$0xff] }
 0x51f   : > { %2489 = vmatpush.msrb.mxu1 %v2414_v0  ;;  %2529 = vmatpush.msrb.mxu3 %v2446_v16  ;;  %v2344_v0 = vperm.slane %v4794_v8, %v4556_v1 }
 0x520   : > { %v2178_v11 = vsel %vm1019_vm0, %v2177_v47, %v2176_v31  ;;  %v2341_v17 = vsel %vm2268_vm10, %v2340_v50, %v2339_v53  ;;  %v4895_v3 = vpop.permute.xlu1 %2057  ;;  %v2412_v31 = vld [vmem:[%s3366_s14] sm:$0xff]  ;;  %v2475_v53 = vld [vmem:[%s3366_s14 + $0x1f8] sm:$0xff] }
 0x521   : > { %v4847_v52 = vsel %vm1023_vm1, %v2179_v28, %v2178_v11  ;;  %v4850_v43 = vsel %vm2272_vm11, %v2342_v41, %v2341_v17  ;;  %2490 = vmatpush.msrb.mxu1 %v2413_v26  ;;  %v2474_v41 = vld [vmem:[%s3366_s14 + $0x1f0] sm:$0xff]  ;;  %v2473_v11 = vld [vmem:[%s3366_s14 + $0x1e8] sm:$0xff]  ;;  %2530 = vmatpush.msrb.mxu3 %v2445_v18  ;;  %v2198_v14 = vperm.slane %v4895_v3, %v3754_v13 }
 0x522   : > { %v2429_v17 = vld [vmem:[%s3366_s14 + $0x88] sm:$0xff]  ;;  %v2361_v34 = vperm.slane %v4895_v3, %v4578_v59  ;;  %v2346_v18 = vperm.slane %v4842_v54, %v4578_v59 }
 0x523   : > { %2491 = vmatpush.msrb.mxu1 %v2412_v31  ;;  %2510 = vmatpush.msrb.mxu2 %v2429_v17  ;;  %v2183_v17 = vperm.slane %v4842_v54, %v3754_v13 }
 0x524   : > { %v4881_v19 = vpop.permute.xlu2 %2036 }
 0x525   : > { %v2049_v24 = vpop.permute.xlu0 %2048  ;;  %2536 = vmatpush.msra.mxu1 %v2475_v53 }
 0x526   : > { %v2192_v15 = vperm.slane %v2049_v24, %v5373_v12  ;;  %v2355_v9 = vperm.slane %v2049_v24, %v4536_v29  ;;  %v2469_v24 = vld [vmem:[%s3366_s14 + $0x1c8] sm:$0xff] }
 0x527   : > { %2537 = vmatpush.msra.mxu1 %v2474_v41  ;;  %v2466_v41 = vld [vmem:[%s3366_s14 + $0x1b0] sm:$0xff] }
 0x528   : > { %v4871_v45 = vsel %vm1019_vm0, %v2192_v15, %v2191_v36  ;;  %v4874_v5 = vsel %vm2268_vm10, %v2355_v9, %v2354_v20  ;;  %v4908_v50 = vpop.permute.xlu1 %2039  ;;  %v2428_v36 = vld [vmem:[%s3366_s14 + $0x80] sm:$0xff] }
 0x529   : > { %2538 = vmatpush.msra.mxu1 %v2473_v11  ;;  %v2444_v20 = vld [vmem:[%s3366_s14 + $0x100] sm:$0xff]  ;;  %2511 = vmatpush.msrb.mxu2 %v2428_v36  ;;  %v2195_v33 = vsel %vm1023_vm1, %v2194_v38, %v4871_v45  ;;  %v2358_v26 = vsel %vm2272_vm11, %v2357_v7, %v4874_v5  ;;  %v2345_v45 = vsel %vm2276_vm12, %v2344_v0, %v4850_v43  ;;  %v2465_v11 = vld [vmem:[%s3366_s14 + $0x1a8] sm:$0xff]  ;;  %v2463_v38 = vld [vmem:[%s3366_s14 + $0x198] sm:$0xff] }
 0x52a   : > { %v2468_v9 = vld [vmem:[%s3366_s14 + $0x1c0] sm:$0xff]  ;;  %2531 = vmatpush.msrb.mxu3 %v2444_v20  ;;  %v2348_v5 = vperm.slane %v4881_v19, %v4581_v25  ;;  %v2187_v7 = vperm.slane %v4908_v50, %v3746_v63 }
 0x52b   : > { %2539 = vmatpush.msra.mxu1 %v2472_v21  ;;  %v2464_v43 = vld [vmem:[%s3366_s14 + $0x1a0] sm:$0xff] }
 0x52c   : > { %v4898_v2 = vpop.permute.xlu2 %2099 }
 0x52d   : > { %v4883_v27 = vpop.permute.xlu0 %2069  ;;  %2540 = vmatpush.msra.mxu1 %v2471_v30 }
 0x52f   : > { %2541 = vmatpush.msra.mxu1 %v2470_v40 }
 0x530   : > { %v4920_v62 = vpop.permute.xlu1 %2102 }
 0x531   : > { %2542 = vmatpush.msra.mxu1 %v2469_v24 }
 0x533   : > { %2543 = vmatpush.msra.mxu1 %v2468_v9 }
 0x534   : > { %v4910_v28 = vpop.permute.xlu2 %2081 }
 0x535   : > { %v2055_v61 = vpop.permute.xlu0 %2054  ;;  %2544 = vmatpush.msra.mxu1 %v2467_v35  ;;  %v2350_v35 = vperm.slane %v4908_v50, %v4601_v23 }
 0x536   : > { %v2196_v60 = vperm.slane %v2055_v61, %v3727_v6  ;;  %v2359_v49 = vperm.slane %v2055_v61, %v4556_v1  ;;  %v2181_v61 = vperm.slane %v4794_v8, %v3727_v6  ;;  %v2185_v8 = vperm.slane %v4881_v19, %v3757_v42 }
 0x537   : > { %2545 = vmatpush.msra.mxu1 %v2466_v41  ;;  %v2347_v19 = vsel %vm2280_vm15, %v2346_v18, %v2345_v45  ;;  %v2206_v18 = vperm.slane %v4883_v27, %v5372_v37 }
 0x538   : > { %v2197_v46 = vsel %vm1027_vm2, %v2196_v60, %v2195_v33  ;;  %v2360_v3 = vsel %vm2276_vm12, %v2359_v49, %v2358_v26  ;;  %v2182_v53 = vsel %vm1027_vm2, %v2181_v61, %v4847_v52  ;;  %v4964_v52 = vpop.permute.xlu1 %2084  ;;  %v2349_v20 = vsel %vm2284_vm14, %v2348_v5, %v2347_v19 }
 0x539   : > { %v2199_v21 = vsel %vm1031_vm3, %v2198_v14, %v2197_v46  ;;  %v2362_v30 = vsel %vm2280_vm15, %v2361_v34, %v2360_v3  ;;  %v2184_v40 = vsel %vm1031_vm3, %v2183_v17, %v2182_v53  ;;  %2546 = vmatpush.msra.mxu1 %v2465_v11  ;;  %v2351_v50 = vsel %vm5264_vm13, %v2350_v35, %v2349_v20  ;;  %v2460_v17 = vld [vmem:[%s3366_s14 + $0x180] sm:$0xff] }
 0x53a   : > { %v2186_v54 = vsel %vm1035_vm4, %v2185_v8, %v2184_v40  ;;  %v5444_v20 = vlaneseq }
 0x53b   : > { %2547 = vmatpush.msra.mxu1 %v2464_v43  ;;  %v2188_v46 = vsel %vm5263_vm5, %v2187_v7, %v2186_v54  ;;  %v2370_v43 = vperm.slane %v4823_v22, %v4536_v29 }
 0x53c   : > { %v2064_v15 = vpop.permute.xlu2 %2063 }
 0x53d   : > { %v4906_v47 = vpop.permute.xlu0 %2096  ;;  %v2202_v9 = vperm.slane %v2064_v15, %v3746_v63  ;;  %v2365_v60 = vperm.slane %v2064_v15, %v4601_v23  ;;  %v2462_v15 = vld [vmem:[%s3366_s14 + $0x190] sm:$0xff]  ;;  %2548 = vmatpush.msra.mxu1 %v2463_v38 }
 0x53e   : > { %v2222_v19 = vperm.slane %v4906_v47, %v5373_v12 }
 0x53f   : > { %2549 = vmatpush.msra.mxu1 %v2462_v15 }
 0x544   : > { %v2067_v49 = vpop.permute.xlu2 %2066 }
 0x545   : > { %v4918_v39 = vpop.permute.xlu0 %2078  ;;  %v2204_v33 = vperm.slane %v2067_v49, %v3737_v4  ;;  %v2367_v26 = vperm.slane %v2067_v49, %v4604_v44 }
 0x546   : > { %v2374_v54 = vperm.slane %v4918_v39, %v4556_v1 }
 0x54d   : > { %v2061_v10 = vpop.permute.xlu0 %2060 }
 0x54e   : > { %v2200_v16 = vperm.slane %v2061_v10, %v3757_v42  ;;  %v2363_v31 = vperm.slane %v2061_v10, %v4581_v25 }
 0x550   : > { %v2201_v24 = vsel %vm1035_vm4, %v2200_v16, %v2199_v21  ;;  %v2364_v36 = vsel %vm2284_vm14, %v2363_v31, %v2362_v30  ;;  %v2461_v31 = vld [vmem:[%s3366_s14 + $0x188] sm:$0xff]  ;;  %v5009_v21 = vpop.permute.xlu1 %2087 }
 0x551   : > { %v2203_v34 = vsel %vm5263_vm5, %v2202_v9, %v2201_v24  ;;  %v2366_v10 = vsel %vm5264_vm13, %v2365_v60, %v2364_v36  ;;  %vm5442_vm5 = vcmask 1045509   ;;  %2550 = vmatpush.msra.mxu1 %v2461_v31  ;;  %v2385_v24 = vperm.slane %v4906_v47, %v4536_v29 }
 0x552   : > { %v2205_v53 = vsel %vm1043_vm6, %v2204_v33, %v2203_v34  ;;  %v2368_v8 = vsel %vm2292_vm9, %v2367_v26, %v2366_v10  ;;  %vm5443_vm13 = vmmov %vm5442_vm5  ;;  %v2249_v9 = vshrl.u32 %v5444_v20, 7  ;;  %v2384_v60 = vperm.slane %v4879_v32, %v4539_v55 }
 0x553   : > { %2551 = vmatpush.msra.mxu1 %v2460_v17  ;;  %v2372_v29 = vperm.slane %v4861_v51, %v4559_v56  ;;  %v2226_v47 = vperm.slane %v4920_v62, %v3727_v6  ;;  %v2213_v34 = vperm.slane %v4910_v28, %v3754_v13  ;;  %v2376_v10 = vperm.slane %v4910_v28, %v4578_v59 }
 0x554   : > { %v2386_v38 = vsel %vm2268_vm10, %v2385_v24, %v2384_v60  ;;  %v2247_v60 = vadd.s32 384, %v5372_v37 }
 0x555   : > { %v2043_v14 = vpop.permute.xlu0 %2042 }
 0x556   : > { %v2189_v61 = vperm.slane %v2043_v14, %v3737_v4  ;;  %v2352_v0 = vperm.slane %v2043_v14, %v4604_v44  ;;  %v5048_v14 = vmul.u32 64, %v2249_v9 }
 0x558   : > { %v2190_v3 = vsel %vm1043_vm6, %v2189_v61, %v2188_v46  ;;  %v2353_v16 = vsel %vm2292_vm9, %v2352_v0, %v2351_v50  ;;  %v2112_v0 = vpop.permute.xlu1 %2111  ;;  %v2380_v46 = vperm.slane %v5009_v21, %v4601_v23 }
 0x559   : > { %v2239_v45 = vsel %vm5440_vm7, %v2190_v3, %v4889_v58  ;;  %v2402_v5 = vsel %vm5441_vm8, %v2353_v16, %v4892_v48  ;;  %v2369_v58 = vperm.slane %v4883_v27, %v4539_v55  ;;  %v2207_v48 = vperm.slane %v4823_v22, %v5373_v12 }
 0x55a   : > { %v5001_v41 = vsel %vm5442_vm5, %v2205_v53, %v2239_v45  ;;  %v5004_v11 = vsel %vm5443_vm13, %v2368_v8, %v2402_v5  ;;  %v2211_v27 = vperm.slane %v4918_v39, %v3727_v6  ;;  %v2221_v22 = vperm.slane %v4879_v32, %v5372_v37 }
 0x55b   : > { %v2208_v40 = vsel %vm1019_vm0, %v2207_v48, %v2206_v18  ;;  %v2371_v36 = vsel %vm2268_vm10, %v2370_v43, %v2369_v58  ;;  %v2209_v12 = vperm.slane %v4861_v51, %v5370_v57  ;;  %v2224_v39 = vperm.slane %v4898_v2, %v5370_v57 }
 0x55c   : > { %v2223_v49 = vsel %vm1019_vm0, %v2222_v19, %v2221_v22  ;;  %v2373_v55 = vsel %vm2272_vm11, %v2372_v29, %v2371_v36  ;;  %v2387_v32 = vperm.slane %v4898_v2, %v4559_v56  ;;  %v2389_v6 = vperm.slane %v4920_v62, %v4556_v1 }
 0x55d   : > { %v2106_v30 = vpop.permute.xlu0 %2105  ;;  %v2210_v7 = vsel %vm1023_vm1, %v2209_v12, %v2208_v40  ;;  %v2375_v51 = vsel %vm2276_vm12, %v2374_v54, %v2373_v55  ;;  %v2215_v57 = vperm.slane %v4964_v52, %v3757_v42  ;;  %v2378_v56 = vperm.slane %v4964_v52, %v4581_v25  ;;  %v2091_v52 = vpop.permute.xlu2 %2090 }
 0x55e   : > { %v2212_v35 = vsel %vm1027_vm2, %v2211_v27, %v2210_v7  ;;  %v2217_v2 = vperm.slane %v5009_v21, %v3746_v63  ;;  %v2225_v15 = vsel %vm1023_vm1, %v2224_v39, %v2223_v49  ;;  %v2388_v1 = vsel %vm2272_vm11, %v2387_v32, %v2386_v38 }
 0x55f   : > { %v2214_v62 = vsel %vm1031_vm3, %v2213_v34, %v2212_v35  ;;  %v2377_v33 = vsel %vm2280_vm15, %v2376_v10, %v2375_v51  ;;  %v2228_v26 = vperm.slane %v2106_v30, %v3754_v13  ;;  %v2391_v28 = vperm.slane %v2106_v30, %v4578_v59 }
 0x560   : > { %v2255_v16 = vadd.s32 64, %v5048_v14  ;;  %v2232_v31 = vperm.slane %v2112_v0, %v3746_v63  ;;  %v2395_v53 = vperm.slane %v2112_v0, %v4601_v23  ;;  %v2227_v8 = vsel %vm1027_vm2, %v2226_v47, %v2225_v15 }
 0x561   : > { %v2245_v13 = vadd.s32 128, %v5372_v37  ;;  %v2216_v59 = vsel %vm1035_vm4, %v2215_v57, %v2214_v62  ;;  %v2379_v45 = vsel %vm2284_vm14, %v2378_v56, %v2377_v33  ;;  %v2390_v5 = vsel %vm2276_vm12, %v2389_v6, %v2388_v1 }
 0x562   : > { %v2382_v17 = vperm.slane %v2091_v52, %v4604_v44  ;;  %v2229_v63 = vsel %vm1031_vm3, %v2228_v26, %v2227_v8  ;;  %v2392_v23 = vsel %vm2280_vm15, %v2391_v28, %v2390_v5  ;;  %vm2251_vm0 = vcmp.ge.s32.totalorder %v5372_v37, %v5048_v14 }
 0x563   : > { %vm2256_vm1 = vcmp.lt.s32.totalorder %v5372_v37, %v2255_v16  ;;  %vm5445_vm2 = vcmask 458112   ;;  %vm5446_vm5 = vcmask 982912   ;;  %vm2252_vm13 = vcmp.ge.s32.totalorder %v2245_v13, %v5048_v14 }
 0x564   : > { %v2218_v58 = vsel %vm5445_vm2, %v2217_v2, %v2216_v59  ;;  %v2381_v48 = vsel %vm5446_vm5, %v2380_v46, %v2379_v45  ;;  %vm2257_vm10 = vcmp.lt.s32.totalorder %v2245_v13, %v2255_v16  ;;  %vm5448_vm11 = vmmov %vm5446_vm5  ;;  %vm5449_vm15 = vcmask 1046534  }
 0x565   : > { %v2109_v61 = vpop.permute.xlu0 %2108  ;;  %v2383_v24 = vsel %vm2292_vm9, %v2382_v17, %v2381_v48  ;;  %vm2260_vm12 = vmand %vm2251_vm0, %vm2256_vm1  ;;  %vm2254_vm0 = vcmp.ge.s32.totalorder %v2247_v60, %v5048_v14  ;;  %vm2259_vm1 = vcmp.lt.s32.totalorder %v2247_v60, %v2255_v16 }
 0x566   : > { %v2230_v50 = vperm.slane %v2109_v61, %v3757_v42  ;;  %v2393_v3 = vperm.slane %v2109_v61, %v4581_v25  ;;  %v2246_v42 = vadd.s32 256, %v5372_v37  ;;  %v2219_v25 = vperm.slane %v2091_v52, %v3737_v4  ;;  %vm5450_vm7 = vmmov %vm5449_vm15 }
 0x567   : > { %v2404_v20 = vsel %vm5450_vm7, %v2383_v24, %v5004_v11  ;;  %vm2261_vm8 = vmand %vm2252_vm13, %vm2257_vm10 }
 0x568   : > { %v2231_v18 = vsel %vm1035_vm4, %v2230_v50, %v2229_v63  ;;  %v2394_v21 = vsel %vm2284_vm14, %v2393_v3, %v2392_v23  ;;  %vm2253_vm3 = vcmp.ge.s32.totalorder %v2246_v42, %v5048_v14  ;;  %vm2258_vm4 = vcmp.lt.s32.totalorder %v2246_v42, %v2255_v16  ;;  %vm5447_vm14 = vmmov %vm5445_vm2 }
 0x569   : > { %v2220_v19 = vsel %vm1043_vm6, %v2219_v25, %v2218_v58  ;;  %v2233_v36 = vsel %vm5447_vm14, %v2232_v31, %v2231_v18  ;;  %v2396_v27 = vsel %vm5448_vm11, %v2395_v53, %v2394_v21  ;;  %vm5451_vm2 = vcmask 1047559   ;;  %vm2262_vm14 = vmand %vm2253_vm3, %vm2258_vm4 }
 0x56a   : > { %v2241_v54 = vsel %vm5449_vm15, %v2220_v19, %v5001_v41  ;;  %vm5452_vm5 = vmmov %vm5451_vm2 }
 0x56b   : > { %vm2263_vm13 = vmand %vm2254_vm0, %vm2259_vm1 }
 0x56d   : > { %v2115_v30 = vpop.permute.xlu0 %2114 }
 0x56e   : > { %v2234_v43 = vperm.slane %v2115_v30, %v3737_v4  ;;  %v2397_v40 = vperm.slane %v2115_v30, %v4604_v44 }
 0x570   : > { %v2235_v4 = vsel %vm1043_vm6, %v2234_v43, %v2233_v36  ;;  %v2398_v44 = vsel %vm2292_vm9, %v2397_v40, %v2396_v27  ;;  %vm5453_vm6 = vcmask 523264  }
 0x571   : > { %v2242_v9 = vsel %vm5451_vm2, %v2235_v4, %v2241_v54  ;;  %v2405_v22 = vsel %vm5452_vm5, %v2398_v44, %v2404_v20  ;;  %vm5454_vm9 = vmmov %vm5453_vm6 }
 0x572   : > { %v2407_v12 = vsel %vm5453_vm6, %v2242_v9, %v2405_v22  ;;  %2244 = vst.msk [vmem:[%s310_s23] sm:$0xff] %vm5454_vm9, %v2242_v9 }
 0x573   : > { %2742 = vmatmul.msk.f32.vlgmr.msrb.gmra.mxu1 %vm2260_vm12, %v2407_v12  ;;  %2743 = vmatmul.msk.f32.vlgmr.msrb.gmra.mxu2 %vm2261_vm8, %v2407_v12 }
 0x574   : > { %2744 = vmatmul.msk.f32.vlgmr.msrb.gmra.mxu3 %vm2262_vm14, %v2407_v12 }
 0x57b   : > { %2745 = vmatmul.msk.f32.vlgmr.msra.gmra.mxu1 %vm2263_vm13, %v2407_v12 }
 0x57c   : > { %3122 = shalt.err (!%p3119_p9)
}
 0x57d   : > { %2810 = dma.vmem_to_hbm [thread:$0]  (%p3307_p7), %s2590_s8, 128, %s2592_s27, %s2563_s20  }
 0x57e   : > { %s2573_s24 = scalar_lea.hbm %s5170_s4, %s2748_s2  ;;  %s303_s16 = scalar_lea.vmem [#allocation8], %s3374_s6 }
 0x57f   : > { %s2575_s23 = sshll.u32 %s303_s16, 4  ;;  %s2577_s9 = sshll.u32 %s2573_s24, 4  ;;  %s2576_s23 = int_to_ptr.vmem [resolvable:$true] %s2575_s23  ;;  %s2578_s9 = int_to_ptr.hbm [resolvable:$true] %s2577_s9 }
 0x580   : > { %s2558_s17 = scalar_lea.sflag [#allocation4], %s3362_s7  ;;  %s3137_s26 = sshra.s32 %s2578_s9, 4  ;;  %s3138_s26 = int_to_ptr.hbm [resolvable:$true] %s3137_s26 }
 0x581   : > { %s3139_s8 = scalar_lea.hbm %s3138_s26, 8  ;;  %s3143_s6 = scalar_lea.hbm %s5170_s4, 16 }
 0x582   : > { %p3140_p12 = scmp.ne.s32.totalorder %s3138_s26, %s3139_s8  ;;  %p3144_p3 = scmp.lt.s32.totalorder %s3138_s26, %s5170_s4 }
 0x583   : > { %p3145_p5 = scmp.lt.s32.totalorder %s3143_s6, %s3139_s8 }
 0x584   : > { %p3141_p13 = pnand %p3140_p12, %p3307_p7 }
 0x585   : > { %p3146_p1 = por %p3145_p5, %p3144_p3 }
 0x586   : > { %p3142_p0 = pneg %p3141_p13 }
 0x588   : > { %p3147_p4 = pnand %p3146_p1, %p3142_p0 }
 0x5f0   : > { %v2493_v37 = vpop.f32.mrf.mxu1 }
 0x5f6   : > { %v2513_v41 = vpop.f32.mrf.mxu2 }
 0x5f7   : > { %v2514_v11 = vadd.f32 %v2513_v41, %v2493_v37  ;;  %v2533_v29 = vpop.f32.mrf.mxu3 }
 0x5f8   : > { %v2553_v39 = vpop.f32.mrf.mxu1 }
 0x5f9   : > { %v2534_v47 = vadd.f32 %v2533_v29, %v2514_v11 }
 0x5fb   : > { %v2554_v49 = vadd.f32 %v2553_v39, %v2534_v47 }
 0x5fd   : > { %2556 = vst [vmem:[%s303_s16] sm:$0xff] %v2554_v49 }
 0x5fe   : > { %3150 = shalt.err (!%p3147_p4)
}
 0x5ff   : > { %2809 = dma.vmem_to_hbm [thread:$0]  (%p3307_p7), %s2576_s23, 128, %s2578_s9, %s2558_s17  }
 0x600 PF: > { %s2603_s7 = sand.u32 1, %s3189_s18   ;;  %p5455_p8 = scmp.ge.s32.totalorder %s3201_s21, 2 }
 0x601   : > { %s2604_s11 = scalar_lea.sflag [#allocation4], %s2603_s7 }
 0x602   : > { %p2825_p2 = pnand %p5455_p8, %p3272_p6 }
 0x604   : > { %p2826_p10 = pneg %p2825_p2 }
 0x606   : > { %3180 = dma.done.wait (%p2826_p10), %s2604_s11, 128  }
 0x607   : > { %3182 = vsyncadd (%p2826_p10), %s2604_s11, 4294967168  ;;  %s2614_s12 = scalar_lea.sflag [#allocation10], %s2603_s7 }
 0x608   : > { %3184 = dma.done.wait (%p2826_p10), %s2614_s12, 128  }
 0x609   : > { %3186 = vsyncadd (%p2826_p10), %s2614_s12, 4294967168  ;;  %s5456_s21 = sld [smem:[#allocation17_spill]]  ;;  %s5459_s18 = smov %s3193_s19 }
 0x60a   : > { %s5457_s10 = sld [smem:[#allocation16_spill]] }
 0x60b   : > { %s5458_s20 = sld [smem:[#allocation18_spill]] }
 0x60f   : > { %p25_p7 = scmp.ge.s32.totalorder %s5456_s21, 4  }
 0x610   : > { %s5460_s19 = smov %s5457_s10 }
 0x611   :  { %27 = sbr.rel (!%p25_p7) target bundleno = 11 (0xb), region = 115 }
 0x616   :  { %2620 = vsyncpa [#allocation3], 1 }
 0x617   :  { %2622 = vsyncpa [#allocation3 + $0x1], 1 }
 0x618   :  { %2623 = vsyncpa [#allocation6], 1 }
 0x619   :  { %2625 = vsyncpa [#allocation6 + $0x1], 1 }
 0x61a   :  { %2626 = vsyncpa [#allocation4], 1 }
 0x61b   :  { %2628 = vsyncpa [#allocation4 + $0x1], 1 }
 0x61c   :  { %2629 = vsyncpa [#allocation10], 1 }
 0x61d   :  { %2631 = vsyncpa [#allocation10 + $0x1], 1 }

</bundles_post_ra>
